<compile_context>
chip_gen: v6e
topology: v6e:2x2x1
jax: 0.10.0
libtpu: 0.0.40
codegen_flags: <defaults>
</compile_context>

<pallas_src>
import jax
import jax.numpy as jnp
from jax import lax
from jax.experimental import pallas as pl
from jax.experimental.pallas import tpu as pltpu

# ---- small, module-consistent configuration -------------------------------
INPUT_DIM = 256          # patch feature dim (PyTorch default 1024, shrunk)
MLP_DIM   = 512          # patch_to_emb output is hard-coded 512 in the module
HEADS     = 8            # MCA heads (Merge default)
DIM_HEAD  = 64           # merge_h_dim default
INNER     = HEADS * DIM_HEAD        # 512
MERGE_K   = 1            # merge_k default in MHIM
N_CLASSES = 2
LN_EPS    = 1e-5
SCALE     = DIM_HEAD ** -0.5
L_PATCH   = 64           # number of patches in the example bag


# ---------------------------------------------------------------------------
# Fused kernel: patch_to_emb -> LayerNorm -> MCA(merge) -> concat -> pool -> predictor
# ---------------------------------------------------------------------------
def _mhim_fused_kernel(x_ref, w_emb_ref, b_emb_ref, gq_ref,
                       w_kv_ref, w_q_ref, w_out_ref, b_out_ref,
                       e_ref, et_ref, w_pred_ref, b_pred_ref, o_ref):
    # ---- patch_to_emb: ReLU(x @ W_emb + b)  (bf16 operands, f32 accumulate) --
    h = jnp.dot(x_ref[...], w_emb_ref[...], preferred_element_type=jnp.float32)
    h = jnp.maximum(h + b_emb_ref[...], 0.0)                       # [L, D] f32

    # ---- shared LayerNorm (gamma=1, beta=0), statistics kept in f32 ---------
    def ln(t):
        m = jnp.mean(t, axis=-1, keepdims=True)
        v = jnp.mean((t - m) ** 2, axis=-1, keepdims=True)
        return (t - m) * lax.rsqrt(v + LN_EPS)

    xn  = ln(h).astype(jnp.bfloat16)              # keys/values source   [L, D]
    gqn = ln(gq_ref[...]).astype(jnp.bfloat16)    # query source         [K, D]

    # ---- MCA projections: two large MXU matmuls (bf16 in / f32 acc) ---------
    kv = jnp.dot(xn, w_kv_ref[...], preferred_element_type=jnp.float32)   # [L, 2*INNER]
    q  = jnp.dot(gqn, w_q_ref[...], preferred_element_type=jnp.float32)   # [K=1, INNER]
    k_proj = kv[:, :INNER]      # 128-lane-aligned slices (512 boundary)
    v_proj = kv[:, INNER:]

    # ---- attention for the single merge query, all heads at once ------------
    # dots[l, h] = sum_{j in head h} q[0, j] * k[l, j]
    scores = k_proj * q                                              # VPU   [L, INNER]
    dots = jnp.dot(scores, e_ref[...],
                   preferred_element_type=jnp.float32) * SCALE       #       [L, H]

    dots = dots - jnp.max(dots, axis=0, keepdims=True)   # softmax over keys (rows)
    e = jnp.exp(dots)
    denom = jnp.sum(e, axis=0, keepdims=True)                        # [1, H]
    p = e * pl.reciprocal(denom, approx=True)                        # [L, H]

    # expand per-head weights back to a lane-aligned [L, INNER] map, weight V
    p_exp = jnp.dot(p, et_ref[...], preferred_element_type=jnp.float32)   # [L, INNER]
    out_flat = jnp.sum(p_exp * v_proj, axis=0, keepdims=True)             # [1, INNER]

    # ---- MCA output projection: one [1,INNER]@[INNER,D] matmul --------------
    z = jnp.dot(out_flat.astype(jnp.bfloat16), w_out_ref[...],
                preferred_element_type=jnp.float32) + b_out_ref[...]      # [K, D]

    # ---- concat(h, z) -> mean-pool -> predictor  (no HBM round trip) --------
    # TODO(synk): SAttention/DAttention/DSMIL online_encoder not provided;
    #             mean-pool over tokens is used as the cls-feature stand-in.
    n_tok = h.shape[0] + z.shape[0]
    feat = (jnp.sum(h, axis=0, keepdims=True)
            + jnp.sum(z, axis=0, keepdims=True)) * (1.0 / n_tok)          # [1, D]
    o_ref[...] = jnp.dot(feat, w_pred_ref[...],
                         preferred_element_type=jnp.float32) + b_pred_ref[...]


# ---------------------------------------------------------------------------
# Parameter init (deterministic, mirrors initialize_weights: xavier_normal on
# Linear weights, zero biases; global_q_mm ~ U(-val, val)).
# ---------------------------------------------------------------------------
def init_params(key):
    ks = jax.random.split(key, 6)

    def xavier(k, shape, dtype=jnp.float32):          # shape = (fan_in, fan_out)
        std = (2.0 / (shape[0] + shape[1])) ** 0.5
        return (jax.random.normal(k, shape, jnp.float32) * std).astype(dtype)

    val = (6.0 / float(3 * 16 * 16 + MLP_DIM)) ** 0.5

    # Static 0/1 head-indicator matrix (exact in any dtype): maps the (h d)
    # lane layout to heads without any 64-wide lane slices inside the kernel.
    head_ids = jnp.arange(INNER) // DIM_HEAD
    e_mat = (head_ids[:, None] == jnp.arange(HEADS)[None, :]).astype(jnp.float32)

    return dict(
        # MXU weight operands stored as bf16 (halves HBM->VMEM bytes; f32 acc).
        w_emb=xavier(ks[0], (INPUT_DIM, MLP_DIM), jnp.bfloat16),
        b_emb=jnp.zeros((1, MLP_DIM), jnp.float32),
        global_q=jax.random.uniform(ks[1], (MERGE_K, MLP_DIM),
                                    jnp.float32, -val, val),
        w_kv=xavier(ks[2], (MLP_DIM, 2 * INNER), jnp.bfloat16),
        w_q=xavier(ks[3], (MLP_DIM, INNER), jnp.bfloat16),
        w_out=xavier(ks[4], (INNER, MLP_DIM), jnp.bfloat16),
        b_out=jnp.zeros((1, MLP_DIM), jnp.float32),
        w_pred=xavier(ks[5], (MLP_DIM, N_CLASSES), jnp.float32),
        b_pred=jnp.zeros((1, N_CLASSES), jnp.float32),
        e_mat=e_mat,            # [INNER, HEADS]
        e_mat_t=e_mat.T,        # [HEADS, INNER]
    )


# ---------------------------------------------------------------------------
# Full MHIM forward (eval, select_mask=False, teacher_cls_feat=None).
# ---------------------------------------------------------------------------
def mhim_forward(params, x):
    assert x.shape[0] == 1, "MIL bag: batch size 1"
    assert MERGE_K == 1, "single-query merge path (module default merge_k=1)"
    xt = x[0].astype(jnp.bfloat16)                 # [L, INPUT_DIM] bf16 operand
    L, din = xt.shape
    ps = L
    len_keep = L + MERGE_K

    def full(shape):
        return pl.BlockSpec(shape, lambda i, _s=shape: (0,) * len(_s))

    logits = pl.pallas_call(
        _mhim_fused_kernel,
        out_shape=jax.ShapeDtypeStruct((1, N_CLASSES), jnp.float32),
        grid=(1,),
        in_specs=[
            full((L, din)),                  # x
            full((din, MLP_DIM)),            # w_emb
            full((1, MLP_DIM)),              # b_emb
            full((MERGE_K, MLP_DIM)),        # global_q
            full((MLP_DIM, 2 * INNER)),      # w_kv
            full((MLP_DIM, INNER)),          # w_q
            full((INNER, MLP_DIM)),          # w_out
            full((1, MLP_DIM)),              # b_out
            full((INNER, HEADS)),            # head indicator E
            full((HEADS, INNER)),            # E^T
            full((MLP_DIM, N_CLASSES)),      # w_pred
            full((1, N_CLASSES)),            # b_pred
        ],
        out_specs=full((1, N_CLASSES)),
        compiler_params=pltpu.CompilerParams(
            dimension_semantics=("arbitrary",),
            vmem_limit_bytes=16 * 1024 * 1024),
    )(xt, params["w_emb"], params["b_emb"], params["global_q"],
      params["w_kv"], params["w_q"], params["w_out"], params["b_out"],
      params["e_mat"], params["e_mat_t"], params["w_pred"], params["b_pred"])

    cls_loss = 0.0                                  # teacher_cls_feat is None
    return logits, cls_loss, ps, len_keep


# ---------------------------------------------------------------------------
# Pure-JAX reference for the same path (standard multi-head formulation),
# using the same bf16 operands / f32 accumulation as the kernel.
# ---------------------------------------------------------------------------
def mhim_reference(params, x):
    xt = x[0].astype(jnp.bfloat16)
    h = jax.nn.relu(jnp.dot(xt, params["w_emb"],
                            preferred_element_type=jnp.float32) + params["b_emb"])

    def ln(t):
        m = t.mean(-1, keepdims=True)
        v = ((t - m) ** 2).mean(-1, keepdims=True)
        return (t - m) / jnp.sqrt(v + LN_EPS)

    xn, gqn = ln(h).astype(jnp.bfloat16), ln(params["global_q"]).astype(jnp.bfloat16)
    kv = jnp.dot(xn, params["w_kv"], preferred_element_type=jnp.float32)
    km, vm = kv[:, :INNER], kv[:, INNER:]
    q = jnp.dot(gqn, params["w_q"], preferred_element_type=jnp.float32)
    K, L = q.shape[0], h.shape[0]
    qh = q.reshape(K, HEADS, DIM_HEAD).transpose(1, 0, 2)
    kh = km.reshape(L, HEADS, DIM_HEAD).transpose(1, 0, 2)
    vh = vm.reshape(L, HEADS, DIM_HEAD).transpose(1, 0, 2)
    dots = jnp.einsum('hkd,hld->hkl', qh, kh) * SCALE
    attn = jax.nn.softmax(dots, axis=-1)
    out = jnp.einsum('hkl,hld->hkd', attn, vh).transpose(1, 0, 2).reshape(K, INNER)
    z = jnp.dot(out.astype(jnp.bfloat16), params["w_out"],
                preferred_element_type=jnp.float32) + params["b_out"]
    x_full = jnp.concatenate([h, z], axis=0)
    feat = x_full.mean(0, keepdims=True)
    return jnp.dot(feat, params["w_pred"],
                   preferred_element_type=jnp.float32) + params["b_pred"]


if __name__ == "__main__":
    key = jax.random.PRNGKey(0)
    pkey, xkey = jax.random.split(key)
    params = init_params(pkey)
    x = jax.random.normal(xkey, (1, L_PATCH, INPUT_DIM), jnp.float32)

    logits, cls_loss, ps, len_keep = mhim_forward(params, x)
    logits = jax.block_until_ready(logits)

    ref = jax.block_until_ready(mhim_reference(params, x))
    assert logits.shape == (1, N_CLASSES)
    assert ps == L_PATCH and len_keep == L_PATCH + MERGE_K
    assert jnp.allclose(logits, ref, atol=2e-2, rtol=2e-2), (logits, ref)

    print("KERNEL_OK")
</pallas_src>

<mosaic_0001>
module attributes {stable_mosaic.version = 11 : i64} {
  func.func @_mhim_fused_kernel(%arg0: i32, %arg1: memref<64x256xbf16, #tpu.memory_space<vmem>>, %arg2: memref<256x512xbf16, #tpu.memory_space<vmem>>, %arg3: memref<1x512xf32, #tpu.memory_space<vmem>>, %arg4: memref<1x512xf32, #tpu.memory_space<vmem>>, %arg5: memref<512x1024xbf16, #tpu.memory_space<vmem>>, %arg6: memref<512x512xbf16, #tpu.memory_space<vmem>>, %arg7: memref<512x512xbf16, #tpu.memory_space<vmem>>, %arg8: memref<1x512xf32, #tpu.memory_space<vmem>>, %arg9: memref<512x8xf32, #tpu.memory_space<vmem>>, %arg10: memref<8x512xf32, #tpu.memory_space<vmem>>, %arg11: memref<512x2xf32, #tpu.memory_space<vmem>>, %arg12: memref<1x2xf32, #tpu.memory_space<vmem>>, %arg13: memref<1x2xf32, #tpu.memory_space<vmem>>) attributes {dimension_semantics = [#tpu.dimension_semantics<arbitrary>], iteration_bounds = array<i64: 1>, scalar_prefetch = 0 : i64, scratch_operands = 0 : i64, tpu.core_type = #tpu.core_type<tc>, window_params = [{pipeline_mode = #tpu.pipeline_mode<synchronous>, transform_indices = @transform_0, window_bounds = array<i64: 64, 256>}, {pipeline_mode = #tpu.pipeline_mode<synchronous>, transform_indices = @transform_1, window_bounds = array<i64: 256, 512>}, {pipeline_mode = #tpu.pipeline_mode<synchronous>, transform_indices = @transform_2, window_bounds = array<i64: 1, 512>}, {pipeline_mode = #tpu.pipeline_mode<synchronous>, transform_indices = @transform_3, window_bounds = array<i64: 1, 512>}, {pipeline_mode = #tpu.pipeline_mode<synchronous>, transform_indices = @transform_4, window_bounds = array<i64: 512, 1024>}, {pipeline_mode = #tpu.pipeline_mode<synchronous>, transform_indices = @transform_5, window_bounds = array<i64: 512, 512>}, {pipeline_mode = #tpu.pipeline_mode<synchronous>, transform_indices = @transform_6, window_bounds = array<i64: 512, 512>}, {pipeline_mode = #tpu.pipeline_mode<synchronous>, transform_indices = @transform_7, window_bounds = array<i64: 1, 512>}, {pipeline_mode = #tpu.pipeline_mode<synchronous>, transform_indices = @transform_8, window_bounds = array<i64: 512, 8>}, {pipeline_mode = #tpu.pipeline_mode<synchronous>, transform_indices = @transform_9, window_bounds = array<i64: 8, 512>}, {pipeline_mode = #tpu.pipeline_mode<synchronous>, transform_indices = @transform_10, window_bounds = array<i64: 512, 2>}, {pipeline_mode = #tpu.pipeline_mode<synchronous>, transform_indices = @transform_11, window_bounds = array<i64: 1, 2>}, {pipeline_mode = #tpu.pipeline_mode<synchronous>, transform_indices = @transform_12, window_bounds = array<i64: 1, 2>}]} {
    %c0 = arith.constant 0 : index
    %c0_0 = arith.constant 0 : index
    %0 = vector.load %arg1[%c0, %c0_0] : memref<64x256xbf16, #tpu.memory_space<vmem>>, vector<64x256xbf16>
    %c0_1 = arith.constant 0 : index
    %c0_2 = arith.constant 0 : index
    %1 = vector.load %arg2[%c0_1, %c0_2] : memref<256x512xbf16, #tpu.memory_space<vmem>>, vector<256x512xbf16>
    %cst = arith.constant dense<0.000000e+00> : vector<64x512xf32>
    %2 = tpu.matmul %0, %1, %cst {dimension_numbers = #tpu.dot_dimension_numbers<[1], [0], [0], [1], [0, 0, 1, 1], [], []>} : vector<64x256xbf16>, vector<256x512xbf16>, vector<64x512xf32> -> vector<64x512xf32>
    %c0_3 = arith.constant 0 : index
    %c0_4 = arith.constant 0 : index
    %3 = vector.load %arg3[%c0_3, %c0_4] : memref<1x512xf32, #tpu.memory_space<vmem>>, vector<1x512xf32>
    %4 = vector.broadcast %3 : vector<1x512xf32> to vector<64x512xf32>
    %5 = arith.addf %2, %4 : vector<64x512xf32>
    %cst_5 = arith.constant 0.000000e+00 : f32
    %6 = vector.broadcast %cst_5 : f32 to vector<64x512xf32>
    %7 = arith.maximumf %5, %6 : vector<64x512xf32>
    %cst_6 = arith.constant dense<0.000000e+00> : vector<64xf32>
    %8 = vector.multi_reduction <add>, %7, %cst_6 [1] : vector<64x512xf32> to vector<64xf32>
    %9 = vector.shape_cast %8 : vector<64xf32> to vector<64x1xf32>
    %cst_7 = arith.constant 5.120000e+02 : f32
    %10 = vector.broadcast %cst_7 : f32 to vector<64x1xf32>
    %11 = arith.divf %9, %10 : vector<64x1xf32>
    %12 = vector.broadcast %11 : vector<64x1xf32> to vector<64x512xf32>
    %13 = arith.subf %7, %12 : vector<64x512xf32>
    %14 = arith.mulf %13, %13 : vector<64x512xf32>
    %cst_8 = arith.constant dense<0.000000e+00> : vector<64xf32>
    %15 = vector.multi_reduction <add>, %14, %cst_8 [1] : vector<64x512xf32> to vector<64xf32>
    %16 = vector.shape_cast %15 : vector<64xf32> to vector<64x1xf32>
    %cst_9 = arith.constant 5.120000e+02 : f32
    %17 = vector.broadcast %cst_9 : f32 to vector<64x1xf32>
    %18 = arith.divf %16, %17 : vector<64x1xf32>
    %19 = vector.broadcast %11 : vector<64x1xf32> to vector<64x512xf32>
    %20 = arith.subf %7, %19 : vector<64x512xf32>
    %cst_10 = arith.constant 9.99999974E-6 : f32
    %21 = vector.broadcast %cst_10 : f32 to vector<64x1xf32>
    %22 = arith.addf %18, %21 : vector<64x1xf32>
    %23 = math.rsqrt %22 : vector<64x1xf32>
    %24 = vector.broadcast %23 : vector<64x1xf32> to vector<64x512xf32>
    %25 = arith.mulf %20, %24 : vector<64x512xf32>
    %26 = arith.truncf %25 : vector<64x512xf32> to vector<64x512xbf16>
    %c0_11 = arith.constant 0 : index
    %c0_12 = arith.constant 0 : index
    %27 = vector.load %arg4[%c0_11, %c0_12] : memref<1x512xf32, #tpu.memory_space<vmem>>, vector<1x512xf32>
    %cst_13 = arith.constant dense<0.000000e+00> : vector<1xf32>
    %28 = vector.multi_reduction <add>, %27, %cst_13 [1] : vector<1x512xf32> to vector<1xf32>
    %29 = vector.shape_cast %28 : vector<1xf32> to vector<1x1xf32>
    %cst_14 = arith.constant 5.120000e+02 : f32
    %30 = vector.broadcast %cst_14 : f32 to vector<1x1xf32>
    %31 = arith.divf %29, %30 : vector<1x1xf32>
    %32 = vector.broadcast %31 : vector<1x1xf32> to vector<1x512xf32>
    %33 = arith.subf %27, %32 : vector<1x512xf32>
    %34 = arith.mulf %33, %33 : vector<1x512xf32>
    %cst_15 = arith.constant dense<0.000000e+00> : vector<1xf32>
    %35 = vector.multi_reduction <add>, %34, %cst_15 [1] : vector<1x512xf32> to vector<1xf32>
    %36 = vector.shape_cast %35 : vector<1xf32> to vector<1x1xf32>
    %cst_16 = arith.constant 5.120000e+02 : f32
    %37 = vector.broadcast %cst_16 : f32 to vector<1x1xf32>
    %38 = arith.divf %36, %37 : vector<1x1xf32>
    %39 = vector.broadcast %31 : vector<1x1xf32> to vector<1x512xf32>
    %40 = arith.subf %27, %39 : vector<1x512xf32>
    %cst_17 = arith.constant 9.99999974E-6 : f32
    %41 = vector.broadcast %cst_17 : f32 to vector<1x1xf32>
    %42 = arith.addf %38, %41 : vector<1x1xf32>
    %43 = math.rsqrt %42 : vector<1x1xf32>
    %44 = vector.broadcast %43 : vector<1x1xf32> to vector<1x512xf32>
    %45 = arith.mulf %40, %44 : vector<1x512xf32>
    %46 = arith.truncf %45 : vector<1x512xf32> to vector<1x512xbf16>
    %c0_18 = arith.constant 0 : index
    %c0_19 = arith.constant 0 : index
    %47 = vector.load %arg5[%c0_18, %c0_19] : memref<512x1024xbf16, #tpu.memory_space<vmem>>, vector<512x1024xbf16>
    %cst_20 = arith.constant dense<0.000000e+00> : vector<64x1024xf32>
    %48 = tpu.matmul %26, %47, %cst_20 {dimension_numbers = #tpu.dot_dimension_numbers<[1], [0], [0], [1], [0, 0, 1, 1], [], []>} : vector<64x512xbf16>, vector<512x1024xbf16>, vector<64x1024xf32> -> vector<64x1024xf32>
    %c0_21 = arith.constant 0 : index
    %c0_22 = arith.constant 0 : index
    %49 = vector.load %arg6[%c0_21, %c0_22] : memref<512x512xbf16, #tpu.memory_space<vmem>>, vector<512x512xbf16>
    %cst_23 = arith.constant dense<0.000000e+00> : vector<1x512xf32>
    %50 = tpu.matmul %46, %49, %cst_23 {dimension_numbers = #tpu.dot_dimension_numbers<[1], [0], [0], [1], [0, 0, 1, 1], [], []>} : vector<1x512xbf16>, vector<512x512xbf16>, vector<1x512xf32> -> vector<1x512xf32>
    %51 = vector.extract_strided_slice %48 {offsets = [0, 0], sizes = [64, 512], strides = [1, 1]} : vector<64x1024xf32> to vector<64x512xf32>
    %52 = vector.extract_strided_slice %48 {offsets = [0, 512], sizes = [64, 512], strides = [1, 1]} : vector<64x1024xf32> to vector<64x512xf32>
    %53 = vector.broadcast %50 : vector<1x512xf32> to vector<64x512xf32>
    %54 = arith.mulf %51, %53 : vector<64x512xf32>
    %c0_24 = arith.constant 0 : index
    %c0_25 = arith.constant 0 : index
    %55 = vector.load %arg9[%c0_24, %c0_25] : memref<512x8xf32, #tpu.memory_space<vmem>>, vector<512x8xf32>
    %cst_26 = arith.constant dense<0.000000e+00> : vector<64x8xf32>
    %56 = tpu.matmul %54, %55, %cst_26 {dimension_numbers = #tpu.dot_dimension_numbers<[1], [0], [0], [1], [0, 0, 1, 1], [], []>} : vector<64x512xf32>, vector<512x8xf32>, vector<64x8xf32> -> vector<64x8xf32>
    %cst_27 = arith.constant 1.250000e-01 : f32
    %57 = vector.broadcast %cst_27 : f32 to vector<64x8xf32>
    %58 = arith.mulf %56, %57 : vector<64x8xf32>
    %cst_28 = arith.constant dense<0xFF800000> : vector<8xf32>
    %59 = vector.multi_reduction <maximumf>, %58, %cst_28 [0] : vector<64x8xf32> to vector<8xf32>
    %60 = vector.shape_cast %59 : vector<8xf32> to vector<1x8xf32>
    %61 = vector.broadcast %60 : vector<1x8xf32> to vector<64x8xf32>
    %62 = arith.subf %58, %61 : vector<64x8xf32>
    %63 = math.exp %62 : vector<64x8xf32>
    %cst_29 = arith.constant dense<0.000000e+00> : vector<8xf32>
    %64 = vector.multi_reduction <add>, %63, %cst_29 [0] : vector<64x8xf32> to vector<8xf32>
    %65 = vector.shape_cast %64 : vector<8xf32> to vector<1x8xf32>
    %66 = tpu.reciprocal %65 {approx = true} : vector<1x8xf32> -> vector<1x8xf32>
    %67 = vector.broadcast %66 : vector<1x8xf32> to vector<64x8xf32>
    %68 = arith.mulf %63, %67 : vector<64x8xf32>
    %c0_30 = arith.constant 0 : index
    %c0_31 = arith.constant 0 : index
    %69 = vector.load %arg10[%c0_30, %c0_31] : memref<8x512xf32, #tpu.memory_space<vmem>>, vector<8x512xf32>
    %cst_32 = arith.constant dense<0.000000e+00> : vector<64x512xf32>
    %70 = tpu.matmul %68, %69, %cst_32 {dimension_numbers = #tpu.dot_dimension_numbers<[1], [0], [0], [1], [0, 0, 1, 1], [], []>} : vector<64x8xf32>, vector<8x512xf32>, vector<64x512xf32> -> vector<64x512xf32>
    %71 = arith.mulf %70, %52 : vector<64x512xf32>
    %cst_33 = arith.constant dense<0.000000e+00> : vector<512xf32>
    %72 = vector.multi_reduction <add>, %71, %cst_33 [0] : vector<64x512xf32> to vector<512xf32>
    %73 = vector.shape_cast %72 : vector<512xf32> to vector<1x512xf32>
    %74 = arith.truncf %73 : vector<1x512xf32> to vector<1x512xbf16>
    %c0_34 = arith.constant 0 : index
    %c0_35 = arith.constant 0 : index
    %75 = vector.load %arg7[%c0_34, %c0_35] : memref<512x512xbf16, #tpu.memory_space<vmem>>, vector<512x512xbf16>
    %cst_36 = arith.constant dense<0.000000e+00> : vector<1x512xf32>
    %76 = tpu.matmul %74, %75, %cst_36 {dimension_numbers = #tpu.dot_dimension_numbers<[1], [0], [0], [1], [0, 0, 1, 1], [], []>} : vector<1x512xbf16>, vector<512x512xbf16>, vector<1x512xf32> -> vector<1x512xf32>
    %c0_37 = arith.constant 0 : index
    %c0_38 = arith.constant 0 : index
    %77 = vector.load %arg8[%c0_37, %c0_38] : memref<1x512xf32, #tpu.memory_space<vmem>>, vector<1x512xf32>
    %78 = arith.addf %76, %77 : vector<1x512xf32>
    %cst_39 = arith.constant dense<0.000000e+00> : vector<512xf32>
    %79 = vector.multi_reduction <add>, %7, %cst_39 [0] : vector<64x512xf32> to vector<512xf32>
    %80 = vector.shape_cast %79 : vector<512xf32> to vector<1x512xf32>
    %cst_40 = arith.constant dense<0.000000e+00> : vector<512xf32>
    %81 = vector.multi_reduction <add>, %78, %cst_40 [0] : vector<1x512xf32> to vector<512xf32>
    %82 = vector.shape_cast %81 : vector<512xf32> to vector<1x512xf32>
    %83 = arith.addf %80, %82 : vector<1x512xf32>
    %cst_41 = arith.constant 0.0153846154 : f32
    %84 = vector.broadcast %cst_41 : f32 to vector<1x512xf32>
    %85 = arith.mulf %83, %84 : vector<1x512xf32>
    %c0_42 = arith.constant 0 : index
    %c0_43 = arith.constant 0 : index
    %86 = vector.load %arg11[%c0_42, %c0_43] : memref<512x2xf32, #tpu.memory_space<vmem>>, vector<512x2xf32>
    %cst_44 = arith.constant dense<0.000000e+00> : vector<1x2xf32>
    %87 = tpu.matmul %85, %86, %cst_44 {dimension_numbers = #tpu.dot_dimension_numbers<[1], [0], [0], [1], [0, 0, 1, 1], [], []>} : vector<1x512xf32>, vector<512x2xf32>, vector<1x2xf32> -> vector<1x2xf32>
    %c0_45 = arith.constant 0 : index
    %c0_46 = arith.constant 0 : index
    %88 = vector.load %arg12[%c0_45, %c0_46] : memref<1x2xf32, #tpu.memory_space<vmem>>, vector<1x2xf32>
    %89 = arith.addf %87, %88 : vector<1x2xf32>
    %c0_47 = arith.constant 0 : index
    %c0_48 = arith.constant 0 : index
    %90 = vector.load %arg13[%c0_47, %c0_48] : memref<1x2xf32, #tpu.memory_space<vmem>>, vector<1x2xf32>
    tpu.vector_store %arg13[%c0_47, %c0_48], %89 {strides = array<i32>} : memref<1x2xf32, #tpu.memory_space<vmem>>, vector<1x2xf32>,
    return
  }
  func.func @transform_0(%arg0: i32) -> (i32, i32) {
    %c0_i32 = arith.constant 0 : i32
    %c0_i32_0 = arith.constant 0 : i32
    %c0_i32_1 = arith.constant 0 : i32
    return %c0_i32, %c0_i32_0 : i32, i32
  }
  func.func @transform_1(%arg0: i32) -> (i32, i32) {
    %c0_i32 = arith.constant 0 : i32
    %c0_i32_0 = arith.constant 0 : i32
    %c0_i32_1 = arith.constant 0 : i32
    return %c0_i32, %c0_i32_0 : i32, i32
  }
  func.func @transform_2(%arg0: i32) -> (i32, i32) {
    %c0_i32 = arith.constant 0 : i32
    %c0_i32_0 = arith.constant 0 : i32
    %c0_i32_1 = arith.constant 0 : i32
    return %c0_i32, %c0_i32_0 : i32, i32
  }
  func.func @transform_3(%arg0: i32) -> (i32, i32) {
    %c0_i32 = arith.constant 0 : i32
    %c0_i32_0 = arith.constant 0 : i32
    %c0_i32_1 = arith.constant 0 : i32
    return %c0_i32, %c0_i32_0 : i32, i32
  }
  func.func @transform_4(%arg0: i32) -> (i32, i32) {
    %c0_i32 = arith.constant 0 : i32
    %c0_i32_0 = arith.constant 0 : i32
    %c0_i32_1 = arith.constant 0 : i32
    return %c0_i32, %c0_i32_0 : i32, i32
  }
  func.func @transform_5(%arg0: i32) -> (i32, i32) {
    %c0_i32 = arith.constant 0 : i32
    %c0_i32_0 = arith.constant 0 : i32
    %c0_i32_1 = arith.constant 0 : i32
    return %c0_i32, %c0_i32_0 : i32, i32
  }
  func.func @transform_6(%arg0: i32) -> (i32, i32) {
    %c0_i32 = arith.constant 0 : i32
    %c0_i32_0 = arith.constant 0 : i32
    %c0_i32_1 = arith.constant 0 : i32
    return %c0_i32, %c0_i32_0 : i32, i32
  }
  func.func @transform_7(%arg0: i32) -> (i32, i32) {
    %c0_i32 = arith.constant 0 : i32
    %c0_i32_0 = arith.constant 0 : i32
    %c0_i32_1 = arith.constant 0 : i32
    return %c0_i32, %c0_i32_0 : i32, i32
  }
  func.func @transform_8(%arg0: i32) -> (i32, i32) {
    %c0_i32 = arith.constant 0 : i32
    %c0_i32_0 = arith.constant 0 : i32
    %c0_i32_1 = arith.constant 0 : i32
    return %c0_i32, %c0_i32_0 : i32, i32
  }
  func.func @transform_9(%arg0: i32) -> (i32, i32) {
    %c0_i32 = arith.constant 0 : i32
    %c0_i32_0 = arith.constant 0 : i32
    %c0_i32_1 = arith.constant 0 : i32
    return %c0_i32, %c0_i32_0 : i32, i32
  }
  func.func @transform_10(%arg0: i32) -> (i32, i32) {
    %c0_i32 = arith.constant 0 : i32
    %c0_i32_0 = arith.constant 0 : i32
    %c0_i32_1 = arith.constant 0 : i32
    return %c0_i32, %c0_i32_0 : i32, i32
  }
  func.func @transform_11(%arg0: i32) -> (i32, i32) {
    %c0_i32 = arith.constant 0 : i32
    %c0_i32_0 = arith.constant 0 : i32
    %c0_i32_1 = arith.constant 0 : i32
    return %c0_i32, %c0_i32_0 : i32, i32
  }
  func.func @transform_12(%arg0: i32) -> (i32, i32) {
    %c0_i32 = arith.constant 0 : i32
    %c0_i32_0 = arith.constant 0 : i32
    %c0_i32_1 = arith.constant 0 : i32
    return %c0_i32, %c0_i32_0 : i32, i32
  }
}

</mosaic_0001>

<bundles_post_ra>
// kernel: tpu_custom_call.1
= control target key start
LH: loop header
LB: loop body
LE: loop exit
PB: predicated region body
PF: predicated region fallthrough
CT: control target
= control target key end

     0   :  { %17 = vsyncpa [#allocation3], 0  ;;  %s9323_s0 = inlined_call_operand.hbm [shape: bf16[64,256], index: 0, kind: input, shape index: {}]   ;;  %s9324_s1 = inlined_call_operand.hbm [shape: bf16[256,512], index: 1, kind: input, shape index: {}]   ;;  %s9325_s2 = inlined_call_operand.vmem [shape: f32[1,512], index: 2, kind: input, shape index: {}]   ;;  %s9326_s3 = inlined_call_operand.vmem [shape: f32[1,512], index: 3, kind: input, shape index: {}]   ;;  %s9327_s4 = inlined_call_operand.hbm [shape: bf16[512,1024], index: 4, kind: input, shape index: {}]   ;;  %s9328_s5 = inlined_call_operand.vmem [shape: bf16[512,512], index: 5, kind: input, shape index: {}]   ;;  %s9329_s6 = inlined_call_operand.hbm [shape: bf16[512,512], index: 6, kind: input, shape index: {}]   ;;  %s9330_s7 = inlined_call_operand.vmem [shape: f32[1,512], index: 7, kind: input, shape index: {}]   ;;  %s9331_s8 = inlined_call_operand.vmem [shape: f32[512,8], index: 8, kind: input, shape index: {}]   ;;  %s9332_s9 = inlined_call_operand.vmem [shape: f32[8,512], index: 9, kind: input, shape index: {}]   ;;  %s9333_s10 = inlined_call_operand.vmem [shape: f32[512,2], index: 10, kind: input, shape index: {}]   ;;  %s9334_s11 = inlined_call_operand.vmem [shape: f32[1,2], index: 11, kind: input, shape index: {}]   ;;  %s9335_s12 = inlined_call_operand.hbm [shape: f32[1,2], index: 12, kind: output, shape index: {}]  }
   0x1   :  { %18 = vsyncpa [#allocation6], 0 }
   0x2   :  { %19 = vsyncpa [#allocation9], 0 }
   0x3   :  { %20 = vsyncpa [#allocation4], 0  ;;  %s7532_s21 = smov [#allocation5]  }
   0x4   :  { %s38_s22 = sshll.u32 %s7532_s21, 4  ;;  %s39_s22 = int_to_ptr.vmem [resolvable:$true] %s38_s22 }
   0x5   :  { %s7432_s23 = scalar_lea.vmem %s39_s22, 8192  ;;  %p7437_p1 = scmp.lt.s32.totalorder %s39_s22, %s39_s22 }
   0x6   :  { %p7433_p0 = scmp.ne.s32.totalorder %s39_s22, %s7432_s23  ;;  %p7438_p2 = scmp.lt.s32.totalorder %s7432_s23, %s7432_s23 }
   0x8   :  { %p7439_p3 = por %p7438_p2, %p7437_p1 }
   0xa   :  { %p7440_p4 = pnand %p7439_p3, %p7433_p0 }
   0xc   :  { %7443 = shalt.err (!%p7440_p4)
}
   0xd   :  { %s7533_s24 = smov 256   ;;  %s7534_s25 = smov 16  }
   0xe   :  { %44 = dma.hbm_to_vmem [thread:$0]  %s9324_s1, 8192, %s39_s22, [#allocation6], %s7533_s24, %s7533_s24, %s7534_s25  }
   0xf   :  { %s7535_s28 = smov [#allocation2]  }
  0x10   :  { %s26_s29 = sshll.u32 %s7535_s28, 4  ;;  %s27_s29 = int_to_ptr.vmem [resolvable:$true] %s26_s29 }
  0x11   :  { %s7452_s30 = scalar_lea.vmem %s27_s29, 1024  ;;  %p7457_p6 = scmp.lt.s32.totalorder %s27_s29, %s27_s29 }
  0x12   :  { %p7453_p5 = scmp.ne.s32.totalorder %s27_s29, %s7452_s30  ;;  %p7458_p7 = scmp.lt.s32.totalorder %s7452_s30, %s7452_s30 }
  0x14   :  { %p7459_p8 = por %p7458_p7, %p7457_p6 }
  0x16   :  { %p7460_p9 = pnand %p7459_p8, %p7453_p5 }
  0x18   :  { %7463 = shalt.err (!%p7460_p9)
}
  0x19   :  { %s7536_s13 = smov 128   ;;  %s7537_s14 = smov 8  }
  0x1a   :  { %32 = dma.hbm_to_vmem [thread:$0]  %s9323_s0, 1024, %s27_s29, [#allocation3], %s7536_s13, %s7536_s13, %s7537_s14  }
  0x1b   :  { %s7538_s17 = smov [#allocation7]  }
  0x1c   :  { %s54_s18 = sshll.u32 %s7538_s17, 4  ;;  %s55_s18 = int_to_ptr.vmem [resolvable:$true] %s54_s18 }
  0x1d   :  { %s7472_s1 = scalar_lea.vmem %s55_s18, 32768  ;;  %p7477_p11 = scmp.lt.s32.totalorder %s55_s18, %s55_s18 }
  0x1e   :  { %p7473_p10 = scmp.ne.s32.totalorder %s55_s18, %s7472_s1  ;;  %p7478_p12 = scmp.lt.s32.totalorder %s7472_s1, %s7472_s1 }
  0x20   :  { %p7479_p13 = por %p7478_p12, %p7477_p11 }
  0x22   :  { %p7480_p0 = pnand %p7479_p13, %p7473_p10 }
  0x24   :  { %7483 = shalt.err (!%p7480_p0)
}
  0x25   :  { %s7539_s19 = smov 512   ;;  %s7540_s20 = smov 32  }
  0x26   :  { %60 = dma.hbm_to_vmem [thread:$0]  %s9327_s4, 32768, %s55_s18, [#allocation6], %s7539_s19, %s7539_s19, %s7540_s20  }
  0x27   :  { %s7541_s23 = smov [#allocation8]  }
  0x28   :  { %s68_s26 = sshll.u32 %s7541_s23, 4  ;;  %s69_s26 = int_to_ptr.vmem [resolvable:$true] %s68_s26 }
  0x29   :  { %s7492_s0 = scalar_lea.vmem %s69_s26, 16384  ;;  %p7497_p2 = scmp.lt.s32.totalorder %s69_s26, %s69_s26 }
  0x2a   :  { %p7493_p1 = scmp.ne.s32.totalorder %s69_s26, %s7492_s0  ;;  %p7498_p3 = scmp.lt.s32.totalorder %s7492_s0, %s7492_s0 }
  0x2c   :  { %p7499_p4 = por %p7498_p3, %p7497_p2 }
  0x2e   :  { %p7500_p5 = pnand %p7499_p4, %p7493_p1 }
  0x30   :  { %7503 = shalt.err (!%p7500_p5)
}
  0x31   :  { %74 = dma.hbm_to_vmem [thread:$0]  %s9329_s6, 16384, %s69_s26, [#allocation9], %s7533_s24, %s7533_s24, %s7534_s25  }
  0x32   :  { %7524 = dma.done.wait [#allocation3], 1024  }
  0x33   :  { %7525 = vsyncadd [#allocation3], 4294966272 }
  0x34   :  { %7526 = dma.done.wait [#allocation6], 40960  }
  0x35   :  { %7527 = vsyncadd [#allocation6], 4294926336 }
  0x36   :  { %7528 = dma.done.wait [#allocation9], 16384  }
  0x37   :  { %7529 = vsyncadd [#allocation9], 4294950912  ;;  %v6896_v0 = vld [vmem:[#allocation5 + $0xe4] ss:$16 sps:$4 sm:$0xff]   ;;  %v6898_v1 = vld [vmem:[#allocation5 + $0xec] ss:$16 sps:$4 sm:$0xff]  }
  0x38   :  { %551 = vmatprep.subr.bf16.mxu0 %v6896_v0  ;;  %v6900_v2 = vld [vmem:[#allocation5 + $0xe0] ss:$16 sps:$4 sm:$0xff]   ;;  %v6901_v3 = vld [vmem:[#allocation5 + $0xe8] ss:$16 sps:$4 sm:$0xff]   ;;  %624 = vmatprep.subr.bf16.mxu1 %v6898_v1  ;;  %v6902_v4 = vld [vmem:[#allocation5 + $0xc4] ss:$16 sps:$4 sm:$0xff]  }
  0x39   :  { %552 = vmatpush1.bf16.msra.mxu0 %v6900_v2  ;;  %625 = vmatpush1.bf16.msra.mxu1 %v6901_v3  ;;  %v6904_v5 = vld [vmem:[#allocation5 + $0xcc] ss:$16 sps:$4 sm:$0xff]   ;;  %v6906_v6 = vld [vmem:[#allocation5 + $0xc0] ss:$16 sps:$4 sm:$0xff]   ;;  %v6907_v7 = vld [vmem:[#allocation5 + $0xc8] ss:$16 sps:$4 sm:$0xff]  }
  0x3a   :  { %553 = vmatprep.subr.bf16.mxu0 %v6902_v4  ;;  %626 = vmatprep.subr.bf16.mxu1 %v6904_v5  ;;  %v6908_v8 = vld [vmem:[#allocation5 + $0xa4] ss:$16 sps:$4 sm:$0xff]   ;;  %v6910_v9 = vld [vmem:[#allocation5 + $0xac] ss:$16 sps:$4 sm:$0xff]   ;;  %v6912_v10 = vld [vmem:[#allocation5 + $0xa0] ss:$16 sps:$4 sm:$0xff]  }
  0x3b   :  { %v6913_v11 = vld [vmem:[#allocation5 + $0xa8] ss:$16 sps:$4 sm:$0xff]   ;;  %v6914_v12 = vld [vmem:[#allocation5 + $0x84] ss:$16 sps:$4 sm:$0xff]   ;;  %v6916_v13 = vld [vmem:[#allocation5 + $0x8c] ss:$16 sps:$4 sm:$0xff]  }
  0x3c   :  { %v6918_v14 = vld [vmem:[#allocation5 + $0x80] ss:$16 sps:$4 sm:$0xff]   ;;  %v6919_v15 = vld [vmem:[#allocation5 + $0x88] ss:$16 sps:$4 sm:$0xff]   ;;  %v6920_v16 = vld [vmem:[#allocation5 + $0x64] ss:$16 sps:$4 sm:$0xff]  }
  0x3d   :  { %554 = vmatpush1.bf16.msra.mxu0 %v6906_v6  ;;  %627 = vmatpush1.bf16.msra.mxu1 %v6907_v7  ;;  %v6922_v17 = vld [vmem:[#allocation5 + $0x6c] ss:$16 sps:$4 sm:$0xff]   ;;  %v6924_v18 = vld [vmem:[#allocation5 + $0x60] ss:$16 sps:$4 sm:$0xff]   ;;  %v6925_v19 = vld [vmem:[#allocation5 + $0x68] ss:$16 sps:$4 sm:$0xff]  }
  0x3e   :  { %555 = vmatprep.subr.bf16.mxu0 %v6908_v8  ;;  %628 = vmatprep.subr.bf16.mxu1 %v6910_v9  ;;  %v6926_v20 = vld [vmem:[#allocation5 + $0x44] ss:$16 sps:$4 sm:$0xff]   ;;  %v6928_v21 = vld [vmem:[#allocation5 + $0x4c] ss:$16 sps:$4 sm:$0xff]   ;;  %v6930_v22 = vld [vmem:[#allocation5 + $0x40] ss:$16 sps:$4 sm:$0xff]   ;;  %v171_v8 = vlaneseq }
  0x3f   :  { %v6931_v23 = vld [vmem:[#allocation5 + $0x48] ss:$16 sps:$4 sm:$0xff]   ;;  %v6932_v24 = vld [vmem:[#allocation5 + $0x24] ss:$16 sps:$4 sm:$0xff]   ;;  %v6934_v25 = vld [vmem:[#allocation5 + $0x2c] ss:$16 sps:$4 sm:$0xff]  }
  0x40   :  { %v6936_v26 = vld [vmem:[#allocation5 + $0x20] ss:$16 sps:$4 sm:$0xff]   ;;  %v6937_v27 = vld [vmem:[#allocation5 + $0x28] ss:$16 sps:$4 sm:$0xff]   ;;  %v6938_v28 = vld [vmem:[#allocation5 + $0x4] ss:$16 sps:$4 sm:$0xff]  }
  0x41   :  { %556 = vmatpush1.bf16.msra.mxu0 %v6912_v10  ;;  %629 = vmatpush1.bf16.msra.mxu1 %v6913_v11  ;;  %v6940_v29 = vld [vmem:[#allocation5 + $0xc] ss:$16 sps:$4 sm:$0xff]   ;;  %v6942_v30 = vld [vmem:[#allocation5] ss:$16 sps:$4 sm:$0xff]   ;;  %v6943_v31 = vld [vmem:[#allocation5 + $0x8] ss:$16 sps:$4 sm:$0xff]  }
  0x42   :  { %557 = vmatprep.subr.bf16.mxu0 %v6914_v12  ;;  %630 = vmatprep.subr.bf16.mxu1 %v6916_v13  ;;  %v6944_v32 = vld [vmem:[#allocation5 + $0x1e4] ss:$16 sps:$4 sm:$0xff]   ;;  %v6946_v33 = vld [vmem:[#allocation5 + $0x1ec] ss:$16 sps:$4 sm:$0xff]   ;;  %v6948_v34 = vld [vmem:[#allocation5 + $0x1e0] ss:$16 sps:$4 sm:$0xff]  }
  0x43   :  { %v6949_v35 = vld [vmem:[#allocation5 + $0x1e8] ss:$16 sps:$4 sm:$0xff]   ;;  %v6950_v36 = vld [vmem:[#allocation5 + $0x1c4] ss:$16 sps:$4 sm:$0xff]   ;;  %v6952_v37 = vld [vmem:[#allocation5 + $0x1cc] ss:$16 sps:$4 sm:$0xff]  }
  0x44   :  { %v6954_v38 = vld [vmem:[#allocation5 + $0x1c0] ss:$16 sps:$4 sm:$0xff]   ;;  %v6955_v39 = vld [vmem:[#allocation5 + $0x1c8] ss:$16 sps:$4 sm:$0xff]   ;;  %v6956_v40 = vld [vmem:[#allocation5 + $0x1a4] ss:$16 sps:$4 sm:$0xff]  }
  0x45   :  { %558 = vmatpush1.bf16.msra.mxu0 %v6918_v14  ;;  %631 = vmatpush1.bf16.msra.mxu1 %v6919_v15  ;;  %v6958_v41 = vld [vmem:[#allocation5 + $0x1ac] ss:$16 sps:$4 sm:$0xff]   ;;  %v6960_v42 = vld [vmem:[#allocation5 + $0x1a0] ss:$16 sps:$4 sm:$0xff]   ;;  %v6961_v43 = vld [vmem:[#allocation5 + $0x1a8] ss:$16 sps:$4 sm:$0xff]  }
  0x46   :  { %559 = vmatprep.subr.bf16.mxu0 %v6920_v16  ;;  %632 = vmatprep.subr.bf16.mxu1 %v6922_v17  ;;  %v6962_v44 = vld [vmem:[#allocation5 + $0x184] ss:$16 sps:$4 sm:$0xff]   ;;  %v6964_v45 = vld [vmem:[#allocation5 + $0x18c] ss:$16 sps:$4 sm:$0xff]   ;;  %v6966_v46 = vld [vmem:[#allocation5 + $0x180] ss:$16 sps:$4 sm:$0xff]  }
  0x47   :  { %v6967_v47 = vld [vmem:[#allocation5 + $0x188] ss:$16 sps:$4 sm:$0xff]   ;;  %v6994_v48 = vld [vmem:[#allocation2 + $0x4] ss:$8 sps:$4 sm:$0xff]   ;;  %v6972_v51 = vld [vmem:[#allocation5 + $0x160] ss:$16 sps:$4 sm:$0xff]  }
  0x48   :  { %v6968_v49 = vld [vmem:[#allocation5 + $0x164] ss:$16 sps:$4 sm:$0xff]   ;;  %v6970_v50 = vld [vmem:[#allocation5 + $0x16c] ss:$16 sps:$4 sm:$0xff]   ;;  %583 = vmatprep.mubr.bf16.mxu0 %v6994_v48  ;;  %656 = vmatprep.mubr.bf16.mxu1 %v6994_v48  ;;  %v6973_v52 = vld [vmem:[#allocation5 + $0x168] ss:$16 sps:$4 sm:$0xff]  }
  0x49   :  { %560 = vmatpush1.bf16.msra.mxu0 %v6924_v18  ;;  %633 = vmatpush1.bf16.msra.mxu1 %v6925_v19  ;;  %v6974_v53 = vld [vmem:[#allocation5 + $0x144] ss:$16 sps:$4 sm:$0xff]   ;;  %v6976_v54 = vld [vmem:[#allocation5 + $0x14c] ss:$16 sps:$4 sm:$0xff]   ;;  %v6978_v55 = vld [vmem:[#allocation5 + $0x140] ss:$16 sps:$4 sm:$0xff]  }
  0x4a   :  { %561 = vmatprep.subr.bf16.mxu0 %v6926_v20  ;;  %634 = vmatprep.subr.bf16.mxu1 %v6928_v21  ;;  %v6979_v56 = vld [vmem:[#allocation5 + $0x148] ss:$16 sps:$4 sm:$0xff]   ;;  %v6980_v57 = vld [vmem:[#allocation5 + $0x124] ss:$16 sps:$4 sm:$0xff]   ;;  %v6982_v58 = vld [vmem:[#allocation5 + $0x12c] ss:$16 sps:$4 sm:$0xff]  }
  0x4b   :  { %v6984_v59 = vld [vmem:[#allocation5 + $0x120] ss:$16 sps:$4 sm:$0xff]   ;;  %v6985_v60 = vld [vmem:[#allocation5 + $0x128] ss:$16 sps:$4 sm:$0xff]   ;;  %v6986_v61 = vld [vmem:[#allocation5 + $0x104] ss:$16 sps:$4 sm:$0xff]  }
  0x4c   :  { %v6988_v62 = vld [vmem:[#allocation5 + $0x10c] ss:$16 sps:$4 sm:$0xff]   ;;  %v6990_v63 = vld [vmem:[#allocation5 + $0x100] ss:$16 sps:$4 sm:$0xff]   ;;  %v6991_v0 = vld [vmem:[#allocation5 + $0x108] ss:$16 sps:$4 sm:$0xff]  }
  0x4d   :  { %562 = vmatpush1.bf16.msra.mxu0 %v6930_v22  ;;  %635 = vmatpush1.bf16.msra.mxu1 %v6931_v23  ;;  %v6992_v1 = vld [vmem:[#allocation2] ss:$8 sps:$4 sm:$0xff]   ;;  %v6995_v2 = vld [vmem:[#allocation2 + $0x14] ss:$8 sps:$4 sm:$0xff]   ;;  %v6997_v3 = vld [vmem:[#allocation2 + $0x10] ss:$8 sps:$4 sm:$0xff]  }
  0x4e   :  { %563 = vmatprep.subr.bf16.mxu0 %v6932_v24  ;;  %636 = vmatprep.subr.bf16.mxu1 %v6934_v25  ;;  %v6998_v4 = vld [vmem:[#allocation2 + $0x24] ss:$8 sps:$4 sm:$0xff]   ;;  %v7000_v5 = vld [vmem:[#allocation2 + $0x20] ss:$8 sps:$4 sm:$0xff]   ;;  %v7001_v6 = vld [vmem:[#allocation2 + $0x34] ss:$8 sps:$4 sm:$0xff]  }
  0x4f   :  { %v7003_v7 = vld [vmem:[#allocation2 + $0x30] ss:$8 sps:$4 sm:$0xff]   ;;  %v172_v9 = vshrl.u32 %v171_v8, 7  ;;  %v169_v12 = vld [vmem:[%s9325_s2] sm:$0xf]  ;;  %vm976_vm0 = vcmask 1040384  }
  0x50   :  { %vm4442_vm1 = vcmask 64512   ;;  %s7543_s6 = smov [#allocation10]   ;;  %vm6083_vm2 = vcmask 8192  }
  0x51   :  { %564 = vmatpush1.bf16.msra.mxu0 %v6936_v26  ;;  %637 = vmatpush1.bf16.msra.mxu1 %v6937_v27  ;;  %v7627_v10 = vsub.s32 0, %v172_v9  ;;  %v7629_v11 = vsub.s32 2, %v172_v9  ;;  %v7634_v13 = vsub.s32 1, %v172_v9  ;;  %v7636_v14 = vsub.s32 3, %v172_v9 }
  0x52   :  { %565 = vmatprep.subr.bf16.mxu0 %v6938_v28  ;;  %638 = vmatprep.subr.bf16.mxu1 %v6940_v29 }
  0x53   :  { %9371 = vst [vmem:[#allocation15_spill] sm:$0xff] %v7629_v11  ;;  %9372 = vst [vmem:[#allocation16_spill] sm:$0xff] %v7634_v13  ;;  %v7639_v15 = vrot.slane %v169_v12, %v7627_v10  ;;  %v7642_v16 = vrot.slane %v169_v12, %v7629_v11  ;;  %v7645_v17 = vrot.slane %v169_v12, %v7634_v13 }
  0x54   :  { %9373 = vst [vmem:[#allocation17_spill] sm:$0xff] %v7636_v14  ;;  %v7648_v20 = vrot.slane %v169_v12, %v7636_v14 }
  0x55   :  { %566 = vmatpush1.bf16.msra.mxu0 %v6942_v30  ;;  %639 = vmatpush1.bf16.msra.mxu1 %v6943_v31 }
  0x56   :  { %567 = vmatprep.subr.bf16.mxu0 %v6944_v32  ;;  %640 = vmatprep.subr.bf16.mxu1 %v6946_v33 }
  0x59   :  { %568 = vmatpush2.bf16.msra.mxu0 %v6948_v34  ;;  %641 = vmatpush2.bf16.msra.mxu1 %v6949_v35 }
  0x5a   :  { %569 = vmatprep.subr.bf16.mxu0 %v6950_v36  ;;  %642 = vmatprep.subr.bf16.mxu1 %v6952_v37 }
  0x5d   :  { %570 = vmatpush2.bf16.msra.mxu0 %v6954_v38  ;;  %643 = vmatpush2.bf16.msra.mxu1 %v6955_v39 }
  0x5e   :  { %571 = vmatprep.subr.bf16.mxu0 %v6956_v40  ;;  %644 = vmatprep.subr.bf16.mxu1 %v6958_v41 }
  0x61   :  { %572 = vmatpush2.bf16.msra.mxu0 %v6960_v42  ;;  %645 = vmatpush2.bf16.msra.mxu1 %v6961_v43 }
  0x62   :  { %573 = vmatprep.subr.bf16.mxu0 %v6962_v44  ;;  %646 = vmatprep.subr.bf16.mxu1 %v6964_v45 }
  0x65   :  { %574 = vmatpush2.bf16.msra.mxu0 %v6966_v46  ;;  %647 = vmatpush2.bf16.msra.mxu1 %v6967_v47 }
  0x66   :  { %575 = vmatprep.subr.bf16.mxu0 %v6968_v49  ;;  %648 = vmatprep.subr.bf16.mxu1 %v6970_v50 }
  0x69   :  { %576 = vmatpush2.bf16.msra.mxu0 %v6972_v51  ;;  %649 = vmatpush2.bf16.msra.mxu1 %v6973_v52 }
  0x6a   :  { %577 = vmatprep.subr.bf16.mxu0 %v6974_v53  ;;  %650 = vmatprep.subr.bf16.mxu1 %v6976_v54 }
  0x6d   :  { %578 = vmatpush2.bf16.msra.mxu0 %v6978_v55  ;;  %651 = vmatpush2.bf16.msra.mxu1 %v6979_v56 }
  0x6e   :  { %579 = vmatprep.subr.bf16.mxu0 %v6980_v57  ;;  %652 = vmatprep.subr.bf16.mxu1 %v6982_v58 }
  0x71   :  { %580 = vmatpush2.bf16.msra.mxu0 %v6984_v59  ;;  %653 = vmatpush2.bf16.msra.mxu1 %v6985_v60 }
  0x72   :  { %581 = vmatprep.subr.bf16.mxu0 %v6986_v61  ;;  %654 = vmatprep.subr.bf16.mxu1 %v6988_v62 }
  0x75   :  { %582 = vmatpush2.bf16.msra.mxu0 %v6990_v63  ;;  %655 = vmatpush2.bf16.msra.mxu1 %v6991_v0 }
  0x78   :  { %584 = vmatmul.mubr.bf16.vlgmr.msra.gmra.mxu0 %v6992_v1  ;;  %657 = vmatmul.mubr.bf16.vlgmr.msra.gmra.mxu1 %v6992_v1 }
  0x79   :  { %593 = vmatprep.mubr.bf16.mxu0 %v6995_v2  ;;  %666 = vmatprep.mubr.bf16.mxu1 %v6995_v2 }
  0x80   :  { %594 = vmatmul.mubr.bf16.gmra.mxu0 %v6997_v3  ;;  %667 = vmatmul.mubr.bf16.gmra.mxu1 %v6997_v3 }
  0x81   :  { %603 = vmatprep.mubr.bf16.mxu0 %v6998_v4  ;;  %676 = vmatprep.mubr.bf16.mxu1 %v6998_v4 }
  0x88   :  { %604 = vmatmul.mubr.bf16.gmra.mxu0 %v7000_v5  ;;  %677 = vmatmul.mubr.bf16.gmra.mxu1 %v7000_v5 }
  0x89   :  { %613 = vmatprep.mubr.bf16.mxu0 %v7001_v6  ;;  %686 = vmatprep.mubr.bf16.mxu1 %v7001_v6 }
  0x90   :  { %614 = vmatmul.mubr.bf16.gmra.mxu0 %v7003_v7  ;;  %687 = vmatmul.mubr.bf16.gmra.mxu1 %v7003_v7 }
 0x138   :  { %v585_v18 = vpop.f32.mrf.mxu0  ;;  %v658_v19 = vpop.f32.mrf.mxu1 }
 0x139   :  { %v586_v21 = vadd.f32 %v585_v18, %v7639_v15  ;;  %v659_v22 = vadd.f32 %v658_v19, %v7642_v16 }
 0x13a   :  { %v587_v23 = vpop.f32.mrf.mxu0  ;;  %v660_v24 = vpop.f32.mrf.mxu1 }
 0x13b   :  { %v588_v25 = vadd.f32 %v587_v23, %v7645_v17  ;;  %v661_v29 = vadd.f32 %v660_v24, %v7648_v20  ;;  %v7656_v30 = vmax.f32 %v586_v21, 0.0  ;;  %v7658_v31 = vmax.f32 %v659_v22, 0.0 }
 0x13c   :  { %v589_v26 = vpop.f32.mrf.mxu0  ;;  %v662_v27 = vpop.f32.mrf.mxu1 }
 0x13d   :  { %v7653_v28 = vmax.f32 %v588_v25, 0.0  ;;  %9375 = vst [vmem:[#allocation19_spill] sm:$0xff] %v7656_v30  ;;  %9376 = vst [vmem:[#allocation20_spill] sm:$0xff] %v7658_v31  ;;  %v590_v32 = vadd.f32 %v589_v26, %v7639_v15  ;;  %v663_v36 = vadd.f32 %v662_v27, %v7642_v16  ;;  %v7665_v40 = vmax.f32 %v661_v29, 0.0 }
 0x13e   :  { %v591_v33 = vpop.f32.mrf.mxu0  ;;  %v664_v34 = vpop.f32.mrf.mxu1 }
 0x13f   :  { %9374 = vst [vmem:[#allocation18_spill] sm:$0xff] %v7653_v28  ;;  %v592_v35 = vadd.f32 %v591_v33, %v7645_v17  ;;  %v729_v39 = vadd.f32 %v7653_v28, %v7656_v30  ;;  %9377 = vst [vmem:[#allocation21_spill] sm:$0xff] %v7665_v40  ;;  %v7669_v42 = vmax.f32 %v590_v32, 0.0  ;;  %v665_v43 = vadd.f32 %v664_v34, %v7648_v20 }
 0x140   :  { %v595_v37 = vpop.f32.mrf.mxu0  ;;  %v668_v38 = vpop.f32.mrf.mxu1  ;;  %v7676_v50 = vmax.f32 %v663_v36, 0.0 }
 0x141   :  { %v7667_v41 = vmax.f32 %v592_v35, 0.0  ;;  %9379 = vst [vmem:[#allocation23_spill] sm:$0xff] %v7669_v42  ;;  %v596_v44 = vadd.f32 %v595_v37, %v7639_v15  ;;  %v730_v47 = vadd.f32 %v729_v39, %v7658_v31  ;;  %v669_v48 = vadd.f32 %v668_v38, %v7642_v16 }
 0x142   :  { %v597_v45 = vpop.f32.mrf.mxu0  ;;  %v670_v46 = vpop.f32.mrf.mxu1  ;;  %9380 = vst [vmem:[#allocation24_spill] sm:$0xff] %v7676_v50  ;;  %v7684_v57 = vmax.f32 %v665_v43, 0.0 }
 0x143   :  { %9378 = vst [vmem:[#allocation22_spill] sm:$0xff] %v7667_v41  ;;  %v598_v49 = vadd.f32 %v597_v45, %v7645_v17  ;;  %v731_v53 = vadd.f32 %v730_v47, %v7665_v40  ;;  %v734_v54 = vadd.f32 %v7667_v41, %v7669_v42  ;;  %v671_v56 = vadd.f32 %v670_v46, %v7648_v20 }
 0x144   :  { %v599_v51 = vpop.f32.mrf.mxu0  ;;  %v672_v52 = vpop.f32.mrf.mxu1  ;;  %9382 = vst [vmem:[#allocation26_spill] sm:$0xff] %v7684_v57  ;;  %v7686_v58 = vmax.f32 %v596_v44, 0.0  ;;  %v7690_v63 = vmax.f32 %v669_v48, 0.0 }
 0x145   :  { %v7681_v55 = vmax.f32 %v598_v49, 0.0  ;;  %v600_v59 = vadd.f32 %v599_v51, %v7639_v15  ;;  %732 = vadd.xlane.f32.xlu0 %v731_v53  ;;  %v735_v62 = vadd.f32 %v734_v54, %v7676_v50  ;;  %v673_v0 = vadd.f32 %v672_v52, %v7642_v16 }
 0x146   :  { %9383 = vst [vmem:[#allocation27_spill] sm:$0xff] %v7686_v58  ;;  %v601_v60 = vpop.f32.mrf.mxu0  ;;  %v674_v61 = vpop.f32.mrf.mxu1  ;;  %9384 = vst [vmem:[#allocation28_spill] sm:$0xff] %v7690_v63  ;;  %v7697_v6 = vmax.f32 %v671_v56, 0.0 }
 0x147   :  { %9381 = vst [vmem:[#allocation25_spill] sm:$0xff] %v7681_v55  ;;  %v602_v1 = vadd.f32 %v601_v60, %v7645_v17  ;;  %v736_v4 = vadd.f32 %v735_v62, %v7684_v57  ;;  %v739_v5 = vadd.f32 %v7681_v55, %v7686_v58  ;;  %v675_v7 = vadd.f32 %v674_v61, %v7648_v20 }
 0x148   :  { %v605_v2 = vpop.f32.mrf.mxu0  ;;  %v678_v3 = vpop.f32.mrf.mxu1  ;;  %9385 = vst [vmem:[#allocation29_spill] sm:$0xff] %v7697_v6  ;;  %v7700_v8 = vmax.f32 %v600_v59, 0.0  ;;  %v7707_v23 = vmax.f32 %v673_v0, 0.0 }
 0x149   :  { %v7702_v9 = vmax.f32 %v602_v1, 0.0  ;;  %v606_v12 = vadd.f32 %v605_v2, %v7639_v15  ;;  %737 = vadd.xlane.f32.xlu0 %v736_v4  ;;  %v740_v21 = vadd.f32 %v739_v5, %v7690_v63  ;;  %v679_v24 = vadd.f32 %v678_v3, %v7642_v16 }
 0x14a   :  { %9386 = vst [vmem:[#allocation30_spill] sm:$0xff] %v7700_v8  ;;  %v607_v18 = vpop.f32.mrf.mxu0  ;;  %v680_v19 = vpop.f32.mrf.mxu1  ;;  %9388 = vst [vmem:[#allocation32_spill] sm:$0xff] %v7707_v23  ;;  %v7713_v32 = vmax.f32 %v675_v7, 0.0 }
 0x14b   :  { %9387 = vst [vmem:[#allocation31_spill] sm:$0xff] %v7702_v9  ;;  %v608_v22 = vadd.f32 %v607_v18, %v7645_v17  ;;  %v741_v27 = vadd.f32 %v740_v21, %v7697_v6  ;;  %v744_v29 = vadd.f32 %v7702_v9, %v7700_v8  ;;  %v7717_v34 = vmax.f32 %v606_v12, 0.0 }
 0x14c   :  { %v609_v25 = vpop.f32.mrf.mxu0  ;;  %v682_v26 = vpop.f32.mrf.mxu1  ;;  %9389 = vst [vmem:[#allocation33_spill] sm:$0xff] %v7713_v32  ;;  %v681_v35 = vadd.f32 %v680_v19, %v7648_v20  ;;  %v7724_v45 = vmax.f32 %v679_v24, 0.0 }
 0x14d   :  { %v7715_v33 = vmax.f32 %v608_v22, 0.0  ;;  %9391 = vst [vmem:[#allocation35_spill] sm:$0xff] %v7717_v34  ;;  %v610_v36 = vadd.f32 %v609_v25, %v7639_v15  ;;  %742 = vadd.xlane.f32.xlu1 %v741_v27  ;;  %v745_v39 = vadd.f32 %v744_v29, %v7707_v23  ;;  %v683_v43 = vadd.f32 %v682_v26, %v7642_v16 }
 0x14e   :  { %v611_v37 = vpop.f32.mrf.mxu0  ;;  %v684_v38 = vpop.f32.mrf.mxu1  ;;  %9392 = vst [vmem:[#allocation36_spill] sm:$0xff] %v7724_v45  ;;  %v7733_v54 = vmax.f32 %v681_v35, 0.0 }
 0x14f   :  { %9390 = vst [vmem:[#allocation34_spill] sm:$0xff] %v7715_v33  ;;  %v612_v44 = vadd.f32 %v611_v37, %v7645_v17  ;;  %v746_v48 = vadd.f32 %v745_v39, %v7713_v32  ;;  %v749_v49 = vadd.f32 %v7715_v33, %v7717_v34  ;;  %v685_v52 = vadd.f32 %v684_v38, %v7648_v20 }
 0x150   :  { %v615_v46 = vpop.f32.mrf.mxu0  ;;  %v688_v47 = vpop.f32.mrf.mxu1  ;;  %9394 = vst [vmem:[#allocation38_spill] sm:$0xff] %v7733_v54  ;;  %v7735_v56 = vmax.f32 %v610_v36, 0.0  ;;  %v7738_v62 = vmax.f32 %v683_v43, 0.0 }
 0x151   :  { %v7729_v51 = vmax.f32 %v612_v44, 0.0  ;;  %v616_v53 = vadd.f32 %v615_v46, %v7639_v15  ;;  %747 = vadd.xlane.f32.xlu1 %v746_v48  ;;  %v750_v61 = vadd.f32 %v749_v49, %v7724_v45  ;;  %v689_v0 = vadd.f32 %v688_v47, %v7642_v16  ;;  %v1116_v49 = vld [vmem:[#allocation7 + $0x1c0] sm:$0xff] }
 0x152   :  { %9395 = vst [vmem:[#allocation39_spill] sm:$0xff] %v7735_v56  ;;  %v617_v59 = vpop.f32.mrf.mxu0  ;;  %v690_v60 = vpop.f32.mrf.mxu1  ;;  %9396 = vst [vmem:[#allocation40_spill] sm:$0xff] %v7738_v62  ;;  %v7745_v7 = vmax.f32 %v685_v52, 0.0  ;;  %v1244_v52 = vld [vmem:[#allocation7 + $0x5c0] sm:$0xff] }
 0x153   :  { %9393 = vst [vmem:[#allocation37_spill] sm:$0xff] %v7729_v51  ;;  %v618_v1 = vadd.f32 %v617_v59, %v7645_v17  ;;  %v751_v4 = vadd.f32 %v750_v61, %v7733_v54  ;;  %v754_v5 = vadd.f32 %v7729_v51, %v7735_v56  ;;  %v7747_v12 = vmax.f32 %v616_v53, 0.0  ;;  %v1108_v61 = vld [vmem:[#allocation7 + $0x180] sm:$0xff] }
 0x154   :  { %v619_v2 = vpop.f32.mrf.mxu0  ;;  %v692_v3 = vpop.f32.mrf.mxu1  ;;  %9397 = vst [vmem:[#allocation41_spill] sm:$0xff] %v7745_v7  ;;  %v691_v19 = vadd.f32 %v690_v60, %v7648_v20  ;;  %v7755_v27 = vmax.f32 %v689_v0, 0.0  ;;  %v1248_v60 = vld [vmem:[#allocation7 + $0x5e0] sm:$0xff] }
 0x155   :  { %9398 = vst [vmem:[#allocation42_spill] sm:$0xff] %v7747_v12  ;;  %v7749_v18 = vmax.f32 %v618_v1, 0.0  ;;  %v620_v21 = vadd.f32 %v619_v2, %v7639_v15  ;;  %752 = vadd.xlane.f32.xlu0 %v751_v4  ;;  %v755_v24 = vadd.f32 %v754_v5, %v7738_v62  ;;  %v693_v29 = vadd.f32 %v692_v3, %v7642_v16  ;;  %v1112_v0 = vld [vmem:[#allocation7 + $0x1a0] sm:$0xff] }
 0x156   :  { %v621_v22 = vpop.f32.mrf.mxu0  ;;  %v694_v26 = vpop.f32.mrf.mxu1  ;;  %9400 = vst [vmem:[#allocation44_spill] sm:$0xff] %v7755_v27  ;;  %v7763_v38 = vmax.f32 %v691_v19, 0.0  ;;  %v6358_v1 = vcombine.low %v1244_v52, %v1248_v60  ;;  %v6359_v2 = vcombine.high %v1244_v52, %v1248_v60  ;;  %v6223_v3 = vcombine.high %v1108_v61, %v1112_v0  ;;  %v1236_v4 = vld [vmem:[#allocation7 + $0x580] sm:$0xff] }
 0x157   :  { %9399 = vst [vmem:[#allocation43_spill] sm:$0xff] %v7749_v18  ;;  %v622_v25 = vadd.f32 %v621_v22, %v7645_v17  ;;  %v756_v35 = vadd.f32 %v755_v24, %v7745_v7  ;;  %v759_v36 = vadd.f32 %v7749_v18, %v7747_v12  ;;  %v7765_v15 = vmax.f32 %v620_v21, 0.0  ;;  %v1240_v5 = vld [vmem:[#allocation7 + $0x5a0] sm:$0xff] }
 0x158   :  { %9402 = vst [vmem:[#allocation46_spill] sm:$0xff] %v7763_v38  ;;  %v695_v39 = vadd.f32 %v694_v26, %v7648_v20  ;;  %v7769_v43 = vmax.f32 %v693_v29, 0.0  ;;  %v1120_v20 = vld [vmem:[#allocation7 + $0x1e0] sm:$0xff]  ;;  %v6351_v21 = vcombine.high %v1236_v4, %v1240_v5  ;;  %2669 = vmatprep.subr.bf16.mxu1 %v6359_v2  ;;  %v6222_v26 = vcombine.low %v1108_v61, %v1112_v0 }
 0x159   :  { %v7761_v37 = vmax.f32 %v622_v25, 0.0  ;;  %9403 = vst [vmem:[#allocation47_spill] sm:$0xff] %v7765_v15  ;;  %757 = vadd.xlane.f32.xlu1 %v756_v35  ;;  %v760_v17 = vadd.f32 %v759_v36, %v7755_v27  ;;  %v6230_v53 = vcombine.low %v1116_v49, %v1120_v20  ;;  %v6231_v59 = vcombine.high %v1116_v49, %v1120_v20  ;;  %v1100_v19 = vld [vmem:[#allocation7 + $0x140] sm:$0xff] }
 0x15a   :  { %9404 = vst [vmem:[#allocation48_spill] sm:$0xff] %v7769_v43  ;;  %v7774_v46 = vmax.f32 %v695_v39, 0.0  ;;  %v1104_v22 = vld [vmem:[#allocation7 + $0x160] sm:$0xff]  ;;  %2670 = vmatpush1.bf16.msra.mxu1 %v6358_v1  ;;  %v6350_v29 = vcombine.low %v1236_v4, %v1240_v5 }
 0x15b   :  { %9401 = vst [vmem:[#allocation45_spill] sm:$0xff] %v7761_v37  ;;  %v761_v16 = vadd.f32 %v760_v17, %v7763_v38  ;;  %v764_v44 = vadd.f32 %v7761_v37, %v7765_v15  ;;  %2596 = vmatprep.subr.bf16.mxu0 %v6231_v59  ;;  %v1228_v24 = vld [vmem:[#allocation7 + $0x540] sm:$0xff]  ;;  %v6215_v35 = vcombine.high %v1100_v19, %v1104_v22 }
 0x15c   :  { %9405 = vst [vmem:[#allocation49_spill] sm:$0xff] %v7774_v46  ;;  %v1232_v25 = vld [vmem:[#allocation7 + $0x560] sm:$0xff]  ;;  %2597 = vmatpush1.bf16.msra.mxu0 %v6230_v53  ;;  %2671 = vmatprep.subr.bf16.mxu1 %v6351_v21 }
 0x15d   :  { %762 = vadd.xlane.f32.xlu0 %v761_v16  ;;  %v765_v47 = vadd.f32 %v764_v44, %v7769_v43  ;;  %2598 = vmatprep.subr.bf16.mxu0 %v6223_v3  ;;  %v6343_v36 = vcombine.high %v1228_v24, %v1232_v25  ;;  %v1092_v39 = vld [vmem:[#allocation7 + $0x100] sm:$0xff] }
 0x15e   :  { %v1096_v17 = vld [vmem:[#allocation7 + $0x120] sm:$0xff]  ;;  %2672 = vmatpush1.bf16.msra.mxu1 %v6350_v29 }
 0x15f   :  { %v766_v48 = vadd.f32 %v765_v47, %v7774_v46  ;;  %v1220_v16 = vld [vmem:[#allocation7 + $0x500] sm:$0xff]  ;;  %v6214_v47 = vcombine.low %v1100_v19, %v1104_v22  ;;  %v6207_v49 = vcombine.high %v1092_v39, %v1096_v17  ;;  %2673 = vmatprep.subr.bf16.mxu1 %v6343_v36  ;;  %v6206_v61 = vcombine.low %v1092_v39, %v1096_v17 }
 0x160   :  { %v1224_v44 = vld [vmem:[#allocation7 + $0x520] sm:$0xff]  ;;  %2599 = vmatpush1.bf16.msra.mxu0 %v6222_v26 }
 0x161   :  { %767 = vadd.xlane.f32.xlu1 %v766_v48  ;;  %2600 = vmatprep.subr.bf16.mxu0 %v6215_v35  ;;  %v6342_v48 = vcombine.low %v1228_v24, %v1232_v25  ;;  %v6335_v20 = vcombine.high %v1220_v16, %v1224_v44  ;;  %v1084_v52 = vld [vmem:[#allocation7 + $0xc0] sm:$0xff]  ;;  %v6334_v0 = vcombine.low %v1220_v16, %v1224_v44 }
 0x162   :  { %v1088_v53 = vld [vmem:[#allocation7 + $0xe0] sm:$0xff] }
 0x163   :  { %v1212_v59 = vld [vmem:[#allocation7 + $0x4c0] sm:$0xff]  ;;  %2674 = vmatpush1.bf16.msra.mxu1 %v6342_v48  ;;  %v6199_v1 = vcombine.high %v1084_v52, %v1088_v53  ;;  %v6198_v21 = vcombine.low %v1084_v52, %v1088_v53 }
 0x164   :  { %v1216_v60 = vld [vmem:[#allocation7 + $0x4e0] sm:$0xff]  ;;  %2601 = vmatpush1.bf16.msra.mxu0 %v6214_v47  ;;  %2675 = vmatprep.subr.bf16.mxu1 %v6335_v20 }
 0x165   :  { %2602 = vmatprep.subr.bf16.mxu0 %v6207_v49  ;;  %v6327_v2 = vcombine.high %v1212_v59, %v1216_v60  ;;  %v1076_v3 = vld [vmem:[#allocation7 + $0x80] sm:$0xff]  ;;  %v6326_v22 = vcombine.low %v1212_v59, %v1216_v60 }
 0x166   :  { %v1080_v4 = vld [vmem:[#allocation7 + $0xa0] sm:$0xff] }
 0x167   :  { %v1204_v5 = vld [vmem:[#allocation7 + $0x480] sm:$0xff]  ;;  %2676 = vmatpush1.bf16.msra.mxu1 %v6334_v0  ;;  %v6191_v24 = vcombine.high %v1076_v3, %v1080_v4  ;;  %v6190_v39 = vcombine.low %v1076_v3, %v1080_v4 }
 0x168   :  { %v1208_v19 = vld [vmem:[#allocation7 + $0x4a0] sm:$0xff]  ;;  %2603 = vmatpush1.bf16.msra.mxu0 %v6206_v61  ;;  %2677 = vmatprep.subr.bf16.mxu1 %v6327_v2 }
 0x169   :  { %2604 = vmatprep.subr.bf16.mxu0 %v6199_v1  ;;  %v6319_v25 = vcombine.high %v1204_v5, %v1208_v19  ;;  %v1068_v26 = vld [vmem:[#allocation7 + $0x40] sm:$0xff]  ;;  %v6318_v17 = vcombine.low %v1204_v5, %v1208_v19 }
 0x16a   :  { %v1072_v29 = vld [vmem:[#allocation7 + $0x60] sm:$0xff] }
 0x16b   :  { %v1196_v35 = vld [vmem:[#allocation7 + $0x440] sm:$0xff]  ;;  %2678 = vmatpush1.bf16.msra.mxu1 %v6326_v22  ;;  %v6183_v16 = vcombine.high %v1068_v26, %v1072_v29  ;;  %v6182_v52 = vcombine.low %v1068_v26, %v1072_v29 }
 0x16c   :  { %v1200_v36 = vld [vmem:[#allocation7 + $0x460] sm:$0xff]  ;;  %2605 = vmatpush1.bf16.msra.mxu0 %v6198_v21  ;;  %2679 = vmatprep.subr.bf16.mxu1 %v6319_v25 }
 0x16d   :  { %2606 = vmatprep.subr.bf16.mxu0 %v6191_v24  ;;  %v6311_v44 = vcombine.high %v1196_v35, %v1200_v36  ;;  %v1060_v47 = vld [vmem:[#allocation7] sm:$0xff]  ;;  %v6310_v53 = vcombine.low %v1196_v35, %v1200_v36 }
 0x16e   :  { %v1064_v48 = vld [vmem:[#allocation7 + $0x20] sm:$0xff] }
 0x16f   :  { %v1188_v49 = vld [vmem:[#allocation7 + $0x400] sm:$0xff]  ;;  %2680 = vmatpush1.bf16.msra.mxu1 %v6318_v17  ;;  %v6175_v59 = vcombine.high %v1060_v47, %v1064_v48  ;;  %v6174_v3 = vcombine.low %v1060_v47, %v1064_v48 }
 0x170   :  { %v1192_v20 = vld [vmem:[#allocation7 + $0x420] sm:$0xff]  ;;  %2607 = vmatpush1.bf16.msra.mxu0 %v6190_v39  ;;  %2681 = vmatprep.subr.bf16.mxu1 %v6311_v44 }
 0x171   :  { %2608 = vmatprep.subr.bf16.mxu0 %v6183_v16  ;;  %v6303_v60 = vcombine.high %v1188_v49, %v1192_v20  ;;  %v1180_v61 = vld [vmem:[#allocation7 + $0x3c0] sm:$0xff]  ;;  %v6302_v4 = vcombine.low %v1188_v49, %v1192_v20 }
 0x172   :  { %v1184_v0 = vld [vmem:[#allocation7 + $0x3e0] sm:$0xff] }
 0x173   :  { %v1308_v1 = vld [vmem:[#allocation7 + $0x7c0] sm:$0xff]  ;;  %2682 = vmatpush1.bf16.msra.mxu1 %v6310_v53  ;;  %v6295_v5 = vcombine.high %v1180_v61, %v1184_v0  ;;  %v6294_v26 = vcombine.low %v1180_v61, %v1184_v0 }
 0x174   :  { %v1312_v2 = vld [vmem:[#allocation7 + $0x7e0] sm:$0xff]  ;;  %2609 = vmatpush1.bf16.msra.mxu0 %v6182_v52  ;;  %2683 = vmatprep.subr.bf16.mxu1 %v6303_v60 }
 0x175   :  { %2610 = vmatprep.subr.bf16.mxu0 %v6175_v59  ;;  %v6423_v19 = vcombine.high %v1308_v1, %v1312_v2  ;;  %v1172_v21 = vld [vmem:[#allocation7 + $0x380] sm:$0xff]  ;;  %v6422_v29 = vcombine.low %v1308_v1, %v1312_v2 }
 0x176   :  { %v1176_v22 = vld [vmem:[#allocation7 + $0x3a0] sm:$0xff] }
 0x177   :  { %v1300_v24 = vld [vmem:[#allocation7 + $0x780] sm:$0xff]  ;;  %2684 = vmatpush1.bf16.msra.mxu1 %v6302_v4  ;;  %v6287_v35 = vcombine.high %v1172_v21, %v1176_v22  ;;  %v6286_v39 = vcombine.low %v1172_v21, %v1176_v22 }
 0x178   :  { %v1304_v25 = vld [vmem:[#allocation7 + $0x7a0] sm:$0xff]  ;;  %2611 = vmatpush1.bf16.msra.mxu0 %v6174_v3  ;;  %2685 = vmatprep.subr.bf16.mxu1 %v6423_v19 }
 0x179   :  { %2612 = vmatprep.subr.bf16.mxu0 %v6295_v5  ;;  %v6415_v36 = vcombine.high %v1300_v24, %v1304_v25  ;;  %v6414_v17 = vcombine.low %v1300_v24, %v1304_v25 }
 0x17b   :  { %2686 = vmatpush2.bf16.msra.mxu1 %v6422_v29 }
 0x17c   :  { %2613 = vmatpush2.bf16.msra.mxu0 %v6294_v26  ;;  %2687 = vmatprep.subr.bf16.mxu1 %v6415_v36 }
 0x17d   :  { %2614 = vmatprep.subr.bf16.mxu0 %v6287_v35 }
 0x17f   :  { %2688 = vmatpush2.bf16.msra.mxu1 %v6414_v17  ;;  %v7825_v17 = vld [vmem:[%s9326_s3] sm:$0xf] }
 0x180   :  { %2615 = vmatpush2.bf16.msra.mxu0 %v6286_v39 }
 0x1ce   :  { %v733_v16 = vpop.xlane.xlu0 %732 }
 0x1cf   :  { %v770_v44 = vmul.f32 0.001953125, %v733_v16 }
 0x1d1   :  { %v7779_v47 = vsub.f32 %v7656_v30, %v770_v44  ;;  %v7782_v48 = vsub.f32 %v7653_v28, %v770_v44  ;;  %v7785_v49 = vsub.f32 %v7658_v31, %v770_v44  ;;  %v7788_v52 = vsub.f32 %v7665_v40, %v770_v44 }
 0x1d2   :  { %v738_v20 = vpop.xlane.xlu0 %737 }
 0x1d3   :  { %v771_v53 = vmul.f32 0.001953125, %v738_v20  ;;  %v810_v59 = vmul.f32 %v7779_v47, %v7779_v47  ;;  %v811_v60 = vmul.f32 %v7782_v48, %v7782_v48  ;;  %v812_v61 = vmul.f32 %v7785_v49, %v7785_v49 }
 0x1d4   :  { %v813_v5 = vmul.f32 %v7788_v52, %v7788_v52 }
 0x1d5   :  { %v7797_v0 = vsub.f32 %v7669_v42, %v771_v53  ;;  %v7800_v1 = vsub.f32 %v7667_v41, %v771_v53  ;;  %v842_v2 = vadd.f32 %v811_v60, %v810_v59  ;;  %v7803_v3 = vsub.f32 %v7676_v50, %v771_v53 }
 0x1d6   :  { %v743_v4 = vpop.xlane.xlu1 %742  ;;  %v7808_v19 = vsub.f32 %v7684_v57, %v771_v53 }
 0x1d7   :  { %v772_v21 = vmul.f32 0.001953125, %v743_v4  ;;  %v843_v22 = vadd.f32 %v842_v2, %v812_v61  ;;  %v814_v24 = vmul.f32 %v7797_v0, %v7797_v0  ;;  %v815_v25 = vmul.f32 %v7800_v1, %v7800_v1 }
 0x1d8   :  { %v816_v26 = vmul.f32 %v7803_v3, %v7803_v3  ;;  %v817_v44 = vmul.f32 %v7808_v19, %v7808_v19 }
 0x1d9   :  { %v7817_v29 = vsub.f32 %v7686_v58, %v772_v21  ;;  %v7820_v35 = vsub.f32 %v7681_v55, %v772_v21  ;;  %v844_v36 = vadd.f32 %v843_v22, %v813_v5  ;;  %v847_v39 = vadd.f32 %v815_v25, %v814_v24  ;;  %v1160_v55 = vld [vmem:[#allocation7 + $0x320] sm:$0xff] }
 0x1da   :  { %v748_v16 = vpop.xlane.xlu1 %747  ;;  %v7830_v20 = vsub.f32 %v7690_v63, %v772_v21  ;;  %v7833_v53 = vsub.f32 %v7697_v6, %v772_v21  ;;  %v959_v5 = vrot.slane %v7825_v17, %v7627_v10  ;;  %v963_v22 = vrot.slane %v7825_v17, %v7634_v13 }
 0x1db   :  { %v773_v59 = vmul.f32 0.001953125, %v748_v16  ;;  %845 = vadd.xlane.f32.xlu0 %v844_v36  ;;  %v848_v60 = vadd.f32 %v847_v39, %v816_v26  ;;  %v818_v61 = vmul.f32 %v7817_v29, %v7817_v29  ;;  %v819_v2 = vmul.f32 %v7820_v35, %v7820_v35 }
 0x1dc   :  { %v820_v4 = vmul.f32 %v7830_v20, %v7830_v20  ;;  %v821_v39 = vmul.f32 %v7833_v53, %v7833_v53 }
 0x1dd   :  { %v7846_v21 = vsub.f32 %v7700_v8, %v773_v59  ;;  %v7849_v24 = vsub.f32 %v7702_v9, %v773_v59  ;;  %v849_v25 = vadd.f32 %v848_v60, %v817_v44  ;;  %v852_v26 = vadd.f32 %v819_v2, %v818_v61 }
 0x1de   :  { %v753_v36 = vpop.xlane.xlu0 %752  ;;  %v7854_v16 = vsub.f32 %v7707_v23, %v773_v59  ;;  %v7857_v6 = vsub.f32 %v7713_v32, %v773_v59  ;;  %v967_v61 = vrot.slane %v7825_v17, %v7629_v11  ;;  %v977_v2 = vsel %vm976_vm0, %v959_v5, 0.0 }
 0x1df   :  { %v774_v63 = vmul.f32 0.001953125, %v753_v36  ;;  %850 = vadd.xlane.f32.xlu1 %v849_v25  ;;  %v853_v57 = vadd.f32 %v852_v26, %v820_v4  ;;  %v822_v40 = vmul.f32 %v7846_v21, %v7846_v21  ;;  %v823_v44 = vmul.f32 %v7849_v24, %v7849_v24 }
 0x1e0   :  { %v824_v60 = vmul.f32 %v7854_v16, %v7854_v16  ;;  %v978_v59 = vsel %vm976_vm0, %v963_v22, 0.0  ;;  %v825_v23 = vmul.f32 %v7857_v6, %v7857_v6 }
 0x1e1   :  { %v7870_v36 = vsub.f32 %v7717_v34, %v774_v63  ;;  %v7873_v4 = vsub.f32 %v7715_v33, %v774_v63  ;;  %v854_v25 = vadd.f32 %v853_v57, %v821_v39  ;;  %v857_v26 = vadd.f32 %v823_v44, %v822_v40  ;;  %v1292_v33 = vld [vmem:[#allocation7 + $0x740] sm:$0xff] }
 0x1e2   :  { %v758_v32 = vpop.xlane.xlu1 %757  ;;  %v7878_v50 = vsub.f32 %v7724_v45, %v774_v63  ;;  %v7881_v31 = vsub.f32 %v7733_v54, %v774_v63  ;;  %v979_v44 = vadd.f32 %v978_v59, %v977_v2  ;;  %v980_v45 = vsel %vm976_vm0, %v967_v61, 0.0  ;;  %v1168_v54 = vld [vmem:[#allocation7 + $0x360] sm:$0xff] }
 0x1e3   :  { %v775_v5 = vmul.f32 0.001953125, %v758_v32  ;;  %855 = vadd.xlane.f32.xlu0 %v854_v25  ;;  %v858_v22 = vadd.f32 %v857_v26, %v824_v60  ;;  %v826_v34 = vmul.f32 %v7870_v36, %v7870_v36  ;;  %v827_v57 = vmul.f32 %v7873_v4, %v7873_v4  ;;  %v1164_v26 = vld [vmem:[#allocation7 + $0x340] sm:$0xff] }
 0x1e4   :  { %v828_v40 = vmul.f32 %v7878_v50, %v7878_v50  ;;  %v829_v8 = vmul.f32 %v7881_v31, %v7881_v31  ;;  %v6279_v2 = vcombine.high %v1164_v26, %v1168_v54  ;;  %v1296_v59 = vld [vmem:[#allocation7 + $0x760] sm:$0xff] }
 0x1e5   :  { %v7893_v63 = vsub.f32 %v7735_v56, %v775_v5  ;;  %v7896_v32 = vsub.f32 %v7729_v51, %v775_v5  ;;  %v859_v60 = vadd.f32 %v858_v22, %v825_v23  ;;  %v862_v25 = vadd.f32 %v827_v57, %v826_v34 }
 0x1e6   :  { %v763_v9 = vpop.xlane.xlu0 %762  ;;  %v7901_v39 = vsub.f32 %v7738_v62, %v775_v5  ;;  %v7904_v61 = vsub.f32 %v7745_v7, %v775_v5  ;;  %v6278_v62 = vcombine.low %v1164_v26, %v1168_v54  ;;  %2616 = vmatprep.subr.bf16.mxu0 %v6279_v2  ;;  %v6406_v5 = vcombine.low %v1292_v33, %v1296_v59 }
 0x1e7   :  { %v776_v56 = vmul.f32 0.001953125, %v763_v9  ;;  %860 = vadd.xlane.f32.xlu1 %v859_v60  ;;  %v863_v51 = vadd.f32 %v862_v25, %v828_v40  ;;  %v830_v23 = vmul.f32 %v7893_v63, %v7893_v63  ;;  %v831_v34 = vmul.f32 %v7896_v32, %v7896_v32  ;;  %v1156_v25 = vld [vmem:[#allocation7 + $0x300] sm:$0xff] }
 0x1e8   :  { %v832_v22 = vmul.f32 %v7901_v39, %v7901_v39  ;;  %v833_v57 = vmul.f32 %v7904_v61, %v7904_v61  ;;  %v6407_v54 = vcombine.high %v1292_v33, %v1296_v59  ;;  %2617 = vmatpush2.bf16.msra.mxu0 %v6278_v62  ;;  %v6271_v26 = vcombine.high %v1156_v25, %v1160_v55 }
 0x1e9   :  { %v7915_v7 = vsub.f32 %v7747_v12, %v776_v56  ;;  %v7918_v9 = vsub.f32 %v7749_v18, %v776_v56  ;;  %v864_v40 = vadd.f32 %v863_v51, %v829_v8  ;;  %v867_v60 = vadd.f32 %v831_v34, %v830_v23  ;;  %v1284_v51 = vld [vmem:[#allocation7 + $0x700] sm:$0xff] }
 0x1ea   :  { %v768_v58 = vpop.xlane.xlu1 %767  ;;  %v7921_v41 = vsub.f32 %v7755_v27, %v776_v56  ;;  %v7924_v28 = vsub.f32 %v7763_v38, %v776_v56  ;;  %v1288_v23 = vld [vmem:[#allocation7 + $0x720] sm:$0xff]  ;;  %v981_v27 = vadd.f32 %v980_v45, %v979_v44  ;;  %2689 = vmatprep.subr.bf16.mxu1 %v6407_v54  ;;  %v6270_v56 = vcombine.low %v1156_v25, %v1160_v55 }
 0x1eb   :  { %v777_v2 = vmul.f32 0.001953125, %v768_v58  ;;  %865 = vadd.xlane.f32.xlu0 %v864_v40  ;;  %v868_v12 = vadd.f32 %v867_v60, %v832_v22  ;;  %v834_v18 = vmul.f32 %v7915_v7, %v7915_v7  ;;  %v835_v8 = vmul.f32 %v7918_v9, %v7918_v9  ;;  %2618 = vmatprep.subr.bf16.mxu0 %v6271_v26  ;;  %v1148_v22 = vld [vmem:[#allocation7 + $0x2c0] sm:$0xff] }
 0x1ec   :  { %v836_v34 = vmul.f32 %v7921_v41, %v7921_v41  ;;  %2690 = vmatpush2.bf16.msra.mxu1 %v6406_v5  ;;  %v1152_v40 = vld [vmem:[#allocation7 + $0x2e0] sm:$0xff]  ;;  %v837_v60 = vmul.f32 %v7924_v28, %v7924_v28  ;;  %v6398_v45 = vcombine.low %v1284_v51, %v1288_v23  ;;  %v6399_v55 = vcombine.high %v1284_v51, %v1288_v23 }
 0x1ed   :  { %v7933_v33 = vsub.f32 %v7765_v15, %v777_v2  ;;  %v7936_v58 = vsub.f32 %v7761_v37, %v777_v2  ;;  %v869_v62 = vadd.f32 %v868_v12, %v833_v57  ;;  %v872_v59 = vadd.f32 %v835_v8, %v834_v18  ;;  %2619 = vmatpush2.bf16.msra.mxu0 %v6270_v56  ;;  %v1276_v44 = vld [vmem:[#allocation7 + $0x6c0] sm:$0xff] }
 0x1ee   :  { %v7941_v38 = vsub.f32 %v7769_v43, %v777_v2  ;;  %v1280_v25 = vld [vmem:[#allocation7 + $0x6e0] sm:$0xff]  ;;  %v7944_v26 = vsub.f32 %v7774_v46, %v777_v2  ;;  %v9406_v5 = vrot.slane %v7825_v17, %v7636_v14  ;;  %2691 = vmatprep.subr.bf16.mxu1 %v6399_v55  ;;  %v6262_v51 = vcombine.low %v1148_v22, %v1152_v40 }
 0x1ef   :  { %870 = vadd.xlane.f32.xlu1 %v869_v62  ;;  %v873_v54 = vadd.f32 %v872_v59, %v836_v34  ;;  %v838_v12 = vmul.f32 %v7933_v33, %v7933_v33  ;;  %v839_v18 = vmul.f32 %v7936_v58, %v7936_v58  ;;  %v6263_v23 = vcombine.high %v1148_v22, %v1152_v40  ;;  %v1140_v59 = vld [vmem:[#allocation7 + $0x280] sm:$0xff] }
 0x1f0   :  { %v840_v57 = vmul.f32 %v7941_v38, %v7941_v38  ;;  %v982_v8 = vsel %vm976_vm0, %v9406_v5, 0.0  ;;  %2692 = vmatpush2.bf16.msra.mxu1 %v6398_v45  ;;  %v6390_v56 = vcombine.low %v1276_v44, %v1280_v25  ;;  %v6391_v62 = vcombine.high %v1276_v44, %v1280_v25  ;;  %v1144_v46 = vld [vmem:[#allocation7 + $0x2a0] sm:$0xff] }
 0x1f1   :  { %v874_v34 = vadd.f32 %v873_v54, %v837_v60  ;;  %v877_v2 = vadd.f32 %v839_v18, %v838_v12  ;;  %v1268_v43 = vld [vmem:[#allocation7 + $0x680] sm:$0xff]  ;;  %2620 = vmatprep.subr.bf16.mxu0 %v6263_v23  ;;  %v6255_v37 = vcombine.high %v1140_v59, %v1144_v46  ;;  %v841_v42 = vmul.f32 %v7944_v26, %v7944_v26  ;;  %v7958_v23 = vld [vmem:[#allocation7 + $0x1c8] sm:$0xff] }
 0x1f2   :  { %v1272_v15 = vld [vmem:[#allocation7 + $0x6a0] sm:$0xff]  ;;  %v983_v5 = vadd.f32 %v982_v8, %v981_v27  ;;  %2693 = vmatprep.subr.bf16.mxu1 %v6391_v62  ;;  %2621 = vmatpush2.bf16.msra.mxu0 %v6262_v51  ;;  %v6254_v22 = vcombine.low %v1140_v59, %v1144_v46  ;;  %v7966_v62 = vld [vmem:[#allocation7 + $0x5e8] sm:$0xff] }
 0x1f3   :  { %875 = vadd.xlane.f32.xlu0 %v874_v34  ;;  %v878_v30 = vadd.f32 %v877_v2, %v840_v57  ;;  %v6383_v40 = vcombine.high %v1268_v43, %v1272_v15  ;;  %2622 = vmatprep.subr.bf16.mxu0 %v6255_v37  ;;  %v6382_v45 = vcombine.low %v1268_v43, %v1272_v15  ;;  %v1132_v55 = vld [vmem:[#allocation7 + $0x240] sm:$0xff]  ;;  %v7960_v34 = vld [vmem:[#allocation7 + $0x1e8] sm:$0xff] }
 0x1f4   :  { %2694 = vmatpush2.bf16.msra.mxu1 %v6390_v56  ;;  %v1136_v44 = vld [vmem:[#allocation7 + $0x260] sm:$0xff]  ;;  %v7962_v2 = vld [vmem:[#allocation7 + $0x5c8] sm:$0xff]  ;;  %v6233_v56 = vcombine.high %v7958_v23, %v7960_v34  ;;  %v6232_v59 = vcombine.low %v7958_v23, %v7960_v34 }
 0x1f5   :  { %v879_v60 = vadd.f32 %v878_v30, %v841_v42  ;;  %v1260_v25 = vld [vmem:[#allocation7 + $0x640] sm:$0xff]  ;;  %2695 = vmatprep.subr.bf16.mxu1 %v6383_v40  ;;  %v6247_v54 = vcombine.high %v1132_v55, %v1136_v44  ;;  %v6246_v57 = vcombine.low %v1132_v55, %v1136_v44 }
 0x1f6   :  { %v1264_v12 = vld [vmem:[#allocation7 + $0x660] sm:$0xff]  ;;  %2623 = vmatpush2.bf16.msra.mxu0 %v6254_v22  ;;  %v6361_v22 = vcombine.high %v7962_v2, %v7966_v62 }
 0x1f7   :  { %880 = vadd.xlane.f32.xlu1 %v879_v60  ;;  %984 = vadd.xlane.f32.xlu0 %v983_v5  ;;  %v6375_v18 = vcombine.high %v1260_v25, %v1264_v12  ;;  %v6374_v27 = vcombine.low %v1260_v25, %v1264_v12  ;;  %v1124_v46 = vld [vmem:[#allocation7 + $0x200] sm:$0xff]  ;;  %v6360_v5 = vcombine.low %v7962_v2, %v7966_v62 }
 0x1f8   :  { %2696 = vmatpush2.bf16.msra.mxu1 %v6382_v45  ;;  %2624 = vmatprep.subr.bf16.mxu0 %v6247_v54  ;;  %v1128_v8 = vld [vmem:[#allocation7 + $0x220] sm:$0xff] }
 0x1f9   :  { %v1252_v30 = vld [vmem:[#allocation7 + $0x600] sm:$0xff]  ;;  %2697 = vmatprep.subr.bf16.mxu1 %v6375_v18  ;;  %v6239_v42 = vcombine.high %v1124_v46, %v1128_v8  ;;  %v6238_v43 = vcombine.low %v1124_v46, %v1128_v8 }
 0x1fa   :  { %v1256_v37 = vld [vmem:[#allocation7 + $0x620] sm:$0xff]  ;;  %2625 = vmatpush2.bf16.msra.mxu0 %v6246_v57 }
 0x1fb   :  { %v6367_v15 = vcombine.high %v1252_v30, %v1256_v37  ;;  %2626 = vmatprep.subr.bf16.mxu0 %v6239_v42  ;;  %v6366_v51 = vcombine.low %v1252_v30, %v1256_v37 }
 0x1fc   :  { %2698 = vmatpush2.bf16.msra.mxu1 %v6374_v27 }
 0x1fd   :  { %2699 = vmatprep.subr.bf16.mxu1 %v6367_v15 }
 0x1fe   :  { %2627 = vmatpush2.bf16.msra.mxu0 %v6238_v43 }
 0x1ff   :  { %2742 = vmatprep.subr.bf16.mxu0 %v6233_v56  ;;  %v7976_v56 = vld [vmem:[#allocation7 + $0x1a8] sm:$0xff] }
 0x200   :  { %2700 = vmatpush2.bf16.msra.mxu1 %v6366_v51  ;;  %v7974_v51 = vld [vmem:[#allocation7 + $0x188] sm:$0xff] }
 0x201   :  { %2815 = vmatprep.subr.bf16.mxu1 %v6361_v22 }
 0x264   :  { %v846_v40 = vpop.xlane.xlu0 %845 }
 0x265   :  { %v882_v60 = vmul.f32 0.001953125, %v846_v40 }
 0x267   :  { %v890_v45 = vadd.f32 1e-05, %v882_v60 }
 0x268   :  { %v851_v55 = vpop.xlane.xlu1 %850 }
 0x269   :  { %v883_v44 = vmul.f32 0.001953125, %v851_v55  ;;  %7388 = vrsqrt.f32 %v890_v45 }
 0x26b   :  { %v891_v25 = vadd.f32 1e-05, %v883_v44 }
 0x26c   :  { %v856_v54 = vpop.xlane.xlu0 %855 }
 0x26d   :  { %7390 = vrsqrt.f32 %v891_v25  ;;  %v884_v12 = vmul.f32 0.001953125, %v856_v54  ;;  %v1237_v54 = vld [vmem:[#allocation7 + $0x588] sm:$0xff] }
 0x26f   :  { %v892_v18 = vadd.f32 1e-05, %v884_v12  ;;  %v1241_v12 = vld [vmem:[#allocation7 + $0x5a8] sm:$0xff] }
 0x270   :  { %v861_v57 = vpop.xlane.xlu1 %860 }
 0x271   :  { %v885_v27 = vmul.f32 0.001953125, %v861_v57  ;;  %7392 = vrsqrt.f32 %v892_v18 }
 0x273   :  { %v893_v46 = vadd.f32 1e-05, %v885_v27 }
 0x274   :  { %v866_v8 = vpop.xlane.xlu0 %865 }
 0x275   :  { %7394 = vrsqrt.f32 %v893_v46  ;;  %v886_v30 = vmul.f32 0.001953125, %v866_v8  ;;  %v7990_v8 = vld [vmem:[#allocation7 + $0x168] sm:$0xff] }
 0x276   :  { %v7389_v42 = vpop.eup %7388 }
 0x277   :  { %v894_v37 = vadd.f32 1e-05, %v886_v30  ;;  %v907_v40 = vmul.f32 %v7389_v42, %v7782_v48  ;;  %v909_v60 = vmul.f32 %v7389_v42, %v7788_v52  ;;  %v906_v57 = vmul.f32 %v7389_v42, %v7779_v47  ;;  %v7988_v52 = vld [vmem:[#allocation7 + $0x148] sm:$0xff] }
 0x278   :  { %v871_v15 = vpop.xlane.xlu1 %870  ;;  %v908_v27 = vmul.f32 %v7389_v42, %v7785_v49  ;;  %v6225_v48 = vcombine.high %v7974_v51, %v7976_v56  ;;  %v7998_v47 = vld [vmem:[#allocation7 + $0x568] sm:$0xff] }
 0x279   :  { %7396 = vrsqrt.f32 %v894_v37  ;;  %v887_v43 = vmul.f32 0.001953125, %v871_v15  ;;  %v8000_v49 = vld [vmem:[#allocation7 + $0x108] sm:$0xff]  ;;  %v6224_v15 = vcombine.low %v7974_v51, %v7976_v56 }
 0x27a   :  { %v7391_v22 = vpop.eup %7390 }
 0x27b   :  { %v895_v45 = vadd.f32 1e-05, %v887_v43  ;;  %v911_v55 = vmul.f32 %v7391_v22, %v7800_v1  ;;  %v913_v44 = vmul.f32 %v7391_v22, %v7808_v19  ;;  %v910_v25 = vmul.f32 %v7391_v22, %v7797_v0  ;;  %v7992_v1 = vld [vmem:[#allocation7 + $0x548] sm:$0xff] }
 0x27c   :  { %v876_v18 = vpop.xlane.xlu0 %875  ;;  %v912_v46 = vmul.f32 %v7391_v22, %v7803_v3  ;;  %v8002_v3 = vld [vmem:[#allocation7 + $0x128] sm:$0xff]  ;;  %v6353_v43 = vcombine.high %v1237_v54, %v1241_v12  ;;  %v6344_v56 = vcombine.low %v7992_v1, %v7998_v47 }
 0x27d   :  { %7398 = vrsqrt.f32 %v895_v45  ;;  %v888_v0 = vmul.f32 0.001953125, %v876_v18  ;;  %v7994_v19 = vpack.c.bf16 %v911_v55, %v907_v40  ;;  %v7996_v30 = vpack.c.bf16 %v913_v44, %v909_v60  ;;  %v8016_v44 = vld [vmem:[#allocation7 + $0x508] sm:$0xff] }
 0x27e   :  { %v8004_v42 = vpack.c.bf16 %v910_v25, %v906_v57  ;;  %v8006_v37 = vpack.c.bf16 %v912_v46, %v908_v27  ;;  %v7393_v22 = vpop.eup %7392  ;;  %v6352_v40 = vcombine.low %v1237_v54, %v1241_v12  ;;  %v6216_v60 = vcombine.low %v7988_v52, %v7990_v8  ;;  %v8018_v25 = vld [vmem:[#allocation7 + $0x528] sm:$0xff] }
 0x27f   :  { %v896_v45 = vadd.f32 1e-05, %v888_v0  ;;  %2628 = vmatprep.mubr.bf16.mxu0 %v7994_v19  ;;  %2701 = vmatprep.mubr.bf16.mxu1 %v7996_v30  ;;  %v6217_v55 = vcombine.high %v7988_v52, %v7990_v8  ;;  %v6345_v54 = vcombine.high %v7992_v1, %v7998_v47  ;;  %v6208_v12 = vcombine.low %v8000_v49, %v8002_v3  ;;  %v8047_v47 = vld [vmem:[#allocation7 + $0xc8] sm:$0xff] }
 0x280   :  { %v881_v18 = vpop.xlane.xlu1 %880  ;;  %2629 = vmatmul.mubr.bf16.vlgmr.msra.gmra.mxu0 %v8004_v42  ;;  %2702 = vmatmul.mubr.bf16.vlgmr.msra.gmra.mxu1 %v8006_v37  ;;  %v985_v51 = vpop.xlane.xlu0 %984  ;;  %v6209_v46 = vcombine.high %v8000_v49, %v8002_v3  ;;  %v915_v8 = vmul.f32 %v7393_v22, %v7820_v35  ;;  %v917_v1 = vmul.f32 %v7393_v22, %v7833_v53  ;;  %v8049_v53 = vld [vmem:[#allocation7 + $0xe8] sm:$0xff] }
 0x281   :  { %7400 = vrsqrt.f32 %v896_v45  ;;  %v889_v57 = vmul.f32 0.001953125, %v881_v18  ;;  %2743 = vmatpush1.bf16.msra.mxu0 %v6232_v59  ;;  %2816 = vmatpush1.bf16.msra.mxu1 %v6360_v5  ;;  %v986_v27 = vmul.f32 0.001953125, %v985_v51  ;;  %v6336_v0 = vcombine.low %v8016_v44, %v8018_v25  ;;  %v1197_v49 = vld [vmem:[#allocation7 + $0x448] sm:$0xff] }
 0x282   :  { %v7395_v52 = vpop.eup %7394  ;;  %2744 = vmatprep.subr.bf16.mxu0 %v6225_v48  ;;  %2817 = vmatprep.subr.bf16.mxu1 %v6353_v43  ;;  %v914_v59 = vmul.f32 %v7393_v22, %v7817_v29  ;;  %v916_v48 = vmul.f32 %v7393_v22, %v7830_v20  ;;  %v8058_v29 = vld [vmem:[#allocation7 + $0x4c8] sm:$0xff]  ;;  %v6200_v45 = vcombine.low %v8047_v47, %v8049_v53 }
 0x283   :  { %v897_v23 = vadd.f32 1e-05, %v889_v57  ;;  %v991_v34 = vrot.slane %v986_v27, %v7627_v10  ;;  %v919_v2 = vmul.f32 %v7395_v52, %v7849_v24  ;;  %v921_v62 = vmul.f32 %v7395_v52, %v7857_v6  ;;  %v8086_v57 = vld [vmem:[#allocation7 + $0x88] sm:$0xff] }
 0x284   :  { %v918_v5 = vmul.f32 %v7395_v52, %v7846_v21  ;;  %v920_v35 = vmul.f32 %v7395_v52, %v7854_v16  ;;  %v8060_v21 = vld [vmem:[#allocation7 + $0x4e8] sm:$0xff] }
 0x285   :  { %7402 = vrsqrt.f32 %v897_v23  ;;  %v8052_v43 = vsub.f32 %v7825_v17, %v991_v34  ;;  %2745 = vmatpush1.bf16.msra.mxu0 %v6224_v15  ;;  %2818 = vmatpush1.bf16.msra.mxu1 %v6352_v40  ;;  %v8054_v24 = vpack.c.bf16 %v919_v2, %v915_v8  ;;  %v8056_v6 = vpack.c.bf16 %v921_v62, %v917_v1  ;;  %v8088_v27 = vld [vmem:[#allocation7 + $0xa8] sm:$0xff] }
 0x286   :  { %v7397_v20 = vpop.eup %7396  ;;  %2746 = vmatprep.subr.bf16.mxu0 %v6217_v55  ;;  %2819 = vmatprep.subr.bf16.mxu1 %v6345_v54  ;;  %v8062_v16 = vpack.c.bf16 %v918_v5, %v914_v59  ;;  %v8064_v22 = vpack.c.bf16 %v920_v35, %v916_v48  ;;  %v6337_v17 = vcombine.high %v8016_v44, %v8018_v25  ;;  %v1205_v2 = vld [vmem:[#allocation7 + $0x488] sm:$0xff] }
 0x287   :  { %v994_v15 = vmul.f32 %v8052_v43, %v8052_v43  ;;  %2638 = vmatprep.mubr.bf16.mxu0 %v8054_v24  ;;  %2711 = vmatprep.mubr.bf16.mxu1 %v8056_v6  ;;  %v6201_v40 = vcombine.high %v8047_v47, %v8049_v53  ;;  %v923_v55 = vmul.f32 %v7397_v20, %v7873_v4  ;;  %v1209_v62 = vld [vmem:[#allocation7 + $0x4a8] sm:$0xff] }
 0x288   :  { %2639 = vmatmul.mubr.bf16.gmra.mxu0 %v8062_v16  ;;  %2712 = vmatmul.mubr.bf16.gmra.mxu1 %v8064_v22  ;;  %v6328_v44 = vcombine.low %v8058_v29, %v8060_v21  ;;  %v6329_v25 = vcombine.high %v8058_v29, %v8060_v21  ;;  %v925_v4 = vmul.f32 %v7397_v20, %v7881_v31  ;;  %v1073_v53 = vld [vmem:[#allocation7 + $0x68] sm:$0xff] }
 0x289   :  { %2747 = vmatpush1.bf16.msra.mxu0 %v6216_v60  ;;  %2820 = vmatpush1.bf16.msra.mxu1 %v6344_v56  ;;  %v999_v18 = vrot.slane %v994_v15, %v7627_v10  ;;  %v1003_v51 = vrot.slane %v994_v15, %v7634_v13  ;;  %v1007_v54 = vrot.slane %v994_v15, %v7629_v11  ;;  %v1201_v3 = vld [vmem:[#allocation7 + $0x468] sm:$0xff] }
 0x28a   :  { %v7399_v52 = vpop.eup %7398  ;;  %2748 = vmatprep.subr.bf16.mxu0 %v6209_v46  ;;  %2821 = vmatprep.subr.bf16.mxu1 %v6337_v17  ;;  %v922_v8 = vmul.f32 %v7397_v20, %v7870_v36  ;;  %v1011_v60 = vrot.slane %v994_v15, %v7636_v14  ;;  %v924_v59 = vmul.f32 %v7397_v20, %v7878_v50 }
 0x28b   :  { %v927_v56 = vmul.f32 %v7399_v52, %v7896_v32  ;;  %v929_v1 = vmul.f32 %v7399_v52, %v7904_v61  ;;  %v926_v23 = vmul.f32 %v7399_v52, %v7893_v63  ;;  %v928_v34 = vmul.f32 %v7399_v52, %v7901_v39  ;;  %v1069_v61 = vld [vmem:[#allocation7 + $0x48] sm:$0xff] }
 0x28c   :  { %v1016_v46 = vsel %vm976_vm0, %v999_v18, 0.0  ;;  %v1017_v31 = vsel %vm976_vm0, %v1003_v51, 0.0  ;;  %v6193_v36 = vcombine.high %v8086_v57, %v8088_v27  ;;  %v1019_v50 = vsel %vm976_vm0, %v1007_v54, 0.0 }
 0x28d   :  { %2749 = vmatpush1.bf16.msra.mxu0 %v6208_v12  ;;  %2822 = vmatpush1.bf16.msra.mxu1 %v6336_v0  ;;  %v8105_v32 = vpack.c.bf16 %v927_v56, %v923_v55  ;;  %v8107_v63 = vpack.c.bf16 %v929_v1, %v925_v4  ;;  %v8109_v39 = vpack.c.bf16 %v926_v23, %v922_v8  ;;  %v1021_v12 = vsel %vm976_vm0, %v1011_v60, 0.0  ;;  %v1065_v4 = vld [vmem:[#allocation7 + $0x28] sm:$0xff] }
 0x28e   :  { %v7401_v5 = vpop.eup %7400  ;;  %2750 = vmatprep.subr.bf16.mxu0 %v6201_v40  ;;  %2823 = vmatprep.subr.bf16.mxu1 %v6329_v25  ;;  %v8112_v48 = vpack.c.bf16 %v928_v34, %v924_v59  ;;  %v1018_v35 = vadd.f32 %v1017_v31, %v1016_v46  ;;  %v6321_v47 = vcombine.high %v1205_v2, %v1209_v62  ;;  %v1189_v8 = vld [vmem:[#allocation7 + $0x408] sm:$0xff] }
 0x28f   :  { %2648 = vmatprep.mubr.bf16.mxu0 %v8105_v32  ;;  %2721 = vmatprep.mubr.bf16.mxu1 %v8107_v63  ;;  %v6192_v29 = vcombine.low %v8086_v57, %v8088_v27  ;;  %v6320_v21 = vcombine.low %v1205_v2, %v1209_v62  ;;  %v931_v20 = vmul.f32 %v7401_v5, %v7918_v9  ;;  %v1193_v60 = vld [vmem:[#allocation7 + $0x428] sm:$0xff] }
 0x290   :  { %2649 = vmatmul.mubr.bf16.gmra.mxu0 %v8109_v39  ;;  %2722 = vmatmul.mubr.bf16.gmra.mxu1 %v8112_v48  ;;  %v1020_v0 = vadd.f32 %v1019_v50, %v1018_v35  ;;  %v6185_v17 = vcombine.high %v1069_v61, %v1073_v53  ;;  %v6313_v15 = vcombine.high %v1197_v49, %v1201_v3  ;;  %v1185_v56 = vld [vmem:[#allocation7 + $0x3e8] sm:$0xff] }
 0x291   :  { %2751 = vmatpush1.bf16.msra.mxu0 %v6200_v45  ;;  %2824 = vmatpush1.bf16.msra.mxu1 %v6328_v44  ;;  %v933_v25 = vmul.f32 %v7401_v5, %v7924_v28  ;;  %v930_v18 = vmul.f32 %v7401_v5, %v7915_v7  ;;  %v1061_v44 = vld [vmem:[#allocation7 + $0x8] sm:$0xff]  ;;  %v6184_v9 = vcombine.low %v1069_v61, %v1073_v53 }
 0x292   :  { %v7403_v40 = vpop.eup %7402  ;;  %v1022_v55 = vadd.f32 %v1021_v12, %v1020_v0  ;;  %2752 = vmatprep.subr.bf16.mxu0 %v6193_v36  ;;  %2825 = vmatprep.subr.bf16.mxu1 %v6321_v47  ;;  %v6312_v27 = vcombine.low %v1197_v49, %v1201_v3  ;;  %v932_v52 = vmul.f32 %v7401_v5, %v7921_v41  ;;  %v1309_v1 = vld [vmem:[#allocation7 + $0x7c8] sm:$0xff] }
 0x293   :  { %v935_v51 = vmul.f32 %v7403_v40, %v7936_v58  ;;  %v937_v54 = vmul.f32 %v7403_v40, %v7944_v26  ;;  %v934_v57 = vmul.f32 %v7403_v40, %v7933_v33  ;;  %v936_v45 = vmul.f32 %v7403_v40, %v7941_v38  ;;  %v1181_v33 = vld [vmem:[#allocation7 + $0x3c8] sm:$0xff] }
 0x294   :  { %1023 = vadd.xlane.f32.xlu1 %v1022_v55  ;;  %v6177_v41 = vcombine.high %v1061_v44, %v1065_v4  ;;  %v6305_v26 = vcombine.high %v1189_v8, %v1193_v60  ;;  %v1313_v23 = vld [vmem:[#allocation7 + $0x7e8] sm:$0xff]  ;;  %v6176_v34 = vcombine.low %v1061_v44, %v1065_v4  ;;  %v6304_v2 = vcombine.low %v1189_v8, %v1193_v60 }
 0x295   :  { %2753 = vmatpush1.bf16.msra.mxu0 %v6192_v29  ;;  %2826 = vmatpush1.bf16.msra.mxu1 %v6320_v21  ;;  %v8129_v28 = vpack.c.bf16 %v935_v51, %v931_v20  ;;  %v8131_v7 = vpack.c.bf16 %v937_v54, %v933_v25  ;;  %v8133_v58 = vpack.c.bf16 %v934_v57, %v930_v18  ;;  %v1173_v46 = vld [vmem:[#allocation7 + $0x388] sm:$0xff] }
 0x296   :  { %2754 = vmatprep.subr.bf16.mxu0 %v6185_v17  ;;  %2827 = vmatprep.subr.bf16.mxu1 %v6313_v15  ;;  %v8135_v38 = vpack.c.bf16 %v936_v45, %v932_v52  ;;  %v6297_v62 = vcombine.high %v1181_v33, %v1185_v56  ;;  %v6425_v59 = vcombine.high %v1309_v1, %v1313_v23  ;;  %v1177_v31 = vld [vmem:[#allocation7 + $0x3a8] sm:$0xff] }
 0x297   :  { %2658 = vmatprep.mubr.bf16.mxu0 %v8129_v28  ;;  %2731 = vmatprep.mubr.bf16.mxu1 %v8131_v7  ;;  %v1301_v36 = vld [vmem:[#allocation7 + $0x788] sm:$0xff]  ;;  %v6296_v61 = vcombine.low %v1181_v33, %v1185_v56  ;;  %v6424_v5 = vcombine.low %v1309_v1, %v1313_v23  ;;  %v6289_v35 = vcombine.high %v1173_v46, %v1177_v31 }
 0x298   :  { %2659 = vmatmul.mubr.bf16.gmra.mxu0 %v8133_v58  ;;  %2732 = vmatmul.mubr.bf16.gmra.mxu1 %v8135_v38  ;;  %v1305_v50 = vld [vmem:[#allocation7 + $0x7a8] sm:$0xff]  ;;  %v6288_v0 = vcombine.low %v1173_v46, %v1177_v31 }
 0x299   :  { %2755 = vmatpush1.bf16.msra.mxu0 %v6184_v9  ;;  %2828 = vmatpush1.bf16.msra.mxu1 %v6312_v27  ;;  %v6417_v47 = vcombine.high %v1301_v36, %v1305_v50  ;;  %v1165_v53 = vld [vmem:[#allocation7 + $0x348] sm:$0xff]  ;;  %v6416_v29 = vcombine.low %v1301_v36, %v1305_v50 }
 0x29a   :  { %2774 = vmatprep.mubr.bf16.mxu0 %v7994_v19  ;;  %2847 = vmatprep.mubr.bf16.mxu1 %v7996_v30  ;;  %v1169_v49 = vld [vmem:[#allocation7 + $0x368] sm:$0xff] }
 0x29b   :  { %2756 = vmatprep.subr.bf16.mxu0 %v6177_v41  ;;  %2829 = vmatprep.subr.bf16.mxu1 %v6305_v26  ;;  %v1293_v3 = vld [vmem:[#allocation7 + $0x748] sm:$0xff]  ;;  %v6281_v21 = vcombine.high %v1165_v53, %v1169_v49  ;;  %v6280_v25 = vcombine.low %v1165_v53, %v1169_v49 }
 0x29c   :  { %v1297_v12 = vld [vmem:[#allocation7 + $0x768] sm:$0xff] }
 0x29d   :  { %2757 = vmatpush1.bf16.msra.mxu0 %v6176_v34  ;;  %2830 = vmatpush1.bf16.msra.mxu1 %v6304_v2  ;;  %v6409_v20 = vcombine.high %v1293_v3, %v1297_v12  ;;  %v1157_v17 = vld [vmem:[#allocation7 + $0x308] sm:$0xff]  ;;  %v6408_v18 = vcombine.low %v1293_v3, %v1297_v12 }
 0x29e   :  { %2758 = vmatprep.subr.bf16.mxu0 %v6297_v62  ;;  %2831 = vmatprep.subr.bf16.mxu1 %v6425_v59  ;;  %v1161_v15 = vld [vmem:[#allocation7 + $0x328] sm:$0xff] }
 0x29f   :  { %v1285_v40 = vld [vmem:[#allocation7 + $0x708] sm:$0xff]  ;;  %v6273_v51 = vcombine.high %v1157_v17, %v1161_v15  ;;  %v6272_v27 = vcombine.low %v1157_v17, %v1161_v15  ;;  %v1250_v17 = vld [vmem:[#allocation7 + $0x5f0] sm:$0xff] }
 0x2a0   :  { %v1289_v55 = vld [vmem:[#allocation7 + $0x728] sm:$0xff] }
 0x2a1   :  { %2759 = vmatpush2.bf16.msra.mxu0 %v6296_v61  ;;  %2832 = vmatpush2.bf16.msra.mxu1 %v6424_v5  ;;  %v6401_v54 = vcombine.high %v1285_v40, %v1289_v55  ;;  %v1149_v57 = vld [vmem:[#allocation7 + $0x2c8] sm:$0xff]  ;;  %v6400_v52 = vcombine.low %v1285_v40, %v1289_v55 }
 0x2a2   :  { %2760 = vmatprep.subr.bf16.mxu0 %v6289_v35  ;;  %2833 = vmatprep.subr.bf16.mxu1 %v6417_v47  ;;  %v1153_v45 = vld [vmem:[#allocation7 + $0x2e8] sm:$0xff] }
 0x2a3   :  { %v1277_v44 = vld [vmem:[#allocation7 + $0x6c8] sm:$0xff]  ;;  %v6265_v4 = vcombine.high %v1149_v57, %v1153_v45  ;;  %v6264_v56 = vcombine.low %v1149_v57, %v1153_v45  ;;  %v1242_v57 = vld [vmem:[#allocation7 + $0x5b0] sm:$0xff] }
 0x2a4   :  { %v1281_v9 = vld [vmem:[#allocation7 + $0x6e8] sm:$0xff] }
 0x2a5   :  { %2761 = vmatpush2.bf16.msra.mxu0 %v6288_v0  ;;  %2834 = vmatpush2.bf16.msra.mxu1 %v6416_v29  ;;  %v6393_v8 = vcombine.high %v1277_v44, %v1281_v9  ;;  %v1141_v60 = vld [vmem:[#allocation7 + $0x288] sm:$0xff]  ;;  %v6392_v1 = vcombine.low %v1277_v44, %v1281_v9  ;;  %v1118_v29 = vld [vmem:[#allocation7 + $0x1d0] sm:$0xff] }
 0x2a6   :  { %2762 = vmatprep.subr.bf16.mxu0 %v6281_v21  ;;  %2835 = vmatprep.subr.bf16.mxu1 %v6409_v20  ;;  %v1145_v33 = vld [vmem:[#allocation7 + $0x2a8] sm:$0xff]  ;;  %v1122_v21 = vld [vmem:[#allocation7 + $0x1f0] sm:$0xff] }
 0x2a7   :  { %v1269_v41 = vld [vmem:[#allocation7 + $0x688] sm:$0xff]  ;;  %v6257_v23 = vcombine.high %v1141_v60, %v1145_v33  ;;  %v6256_v31 = vcombine.low %v1141_v60, %v1145_v33  ;;  %v1246_v20 = vld [vmem:[#allocation7 + $0x5d0] sm:$0xff]  ;;  %v6235_v55 = vcombine.high %v1118_v29, %v1122_v21  ;;  %v6234_v45 = vcombine.low %v1118_v29, %v1122_v21 }
 0x2a8   :  { %v1273_v26 = vld [vmem:[#allocation7 + $0x6a8] sm:$0xff]  ;;  %v6362_v44 = vcombine.low %v1246_v20, %v1250_v17  ;;  %v1234_v60 = vld [vmem:[#allocation7 + $0x570] sm:$0xff] }
 0x2a9   :  { %2763 = vmatpush2.bf16.msra.mxu0 %v6280_v25  ;;  %2836 = vmatpush2.bf16.msra.mxu1 %v6408_v18  ;;  %v6385_v34 = vcombine.high %v1269_v41, %v1273_v26  ;;  %v1133_v2 = vld [vmem:[#allocation7 + $0x248] sm:$0xff]  ;;  %v6384_v36 = vcombine.low %v1269_v41, %v1273_v26  ;;  %v6363_v25 = vcombine.high %v1246_v20, %v1250_v17  ;;  %v1110_v18 = vld [vmem:[#allocation7 + $0x190] sm:$0xff] }
 0x2aa   :  { %2764 = vmatprep.subr.bf16.mxu0 %v6273_v51  ;;  %2837 = vmatprep.subr.bf16.mxu1 %v6401_v54  ;;  %v1137_v62 = vld [vmem:[#allocation7 + $0x268] sm:$0xff]  ;;  %v1114_v51 = vld [vmem:[#allocation7 + $0x1b0] sm:$0xff] }
 0x2ab   :  { %v1261_v59 = vld [vmem:[#allocation7 + $0x648] sm:$0xff]  ;;  %v6249_v50 = vcombine.high %v1133_v2, %v1137_v62  ;;  %v6248_v49 = vcombine.low %v1133_v2, %v1137_v62  ;;  %v1238_v54 = vld [vmem:[#allocation7 + $0x590] sm:$0xff]  ;;  %v6227_v9 = vcombine.high %v1110_v18, %v1114_v51  ;;  %v6226_v33 = vcombine.low %v1110_v18, %v1114_v51 }
 0x2ac   :  { %v1265_v46 = vld [vmem:[#allocation7 + $0x668] sm:$0xff]  ;;  %v6354_v41 = vcombine.low %v1238_v54, %v1242_v57  ;;  %v1226_v2 = vld [vmem:[#allocation7 + $0x530] sm:$0xff] }
 0x2ad   :  { %2765 = vmatpush2.bf16.msra.mxu0 %v6272_v27  ;;  %2838 = vmatpush2.bf16.msra.mxu1 %v6400_v52  ;;  %v6377_v61 = vcombine.high %v1261_v59, %v1265_v46  ;;  %v1125_v5 = vld [vmem:[#allocation7 + $0x208] sm:$0xff]  ;;  %v6376_v3 = vcombine.low %v1261_v59, %v1265_v46  ;;  %v6355_v27 = vcombine.high %v1238_v54, %v1242_v57  ;;  %v1102_v52 = vld [vmem:[#allocation7 + $0x150] sm:$0xff] }
 0x2ae   :  { %2766 = vmatprep.subr.bf16.mxu0 %v6265_v4  ;;  %2839 = vmatprep.subr.bf16.mxu1 %v6393_v8  ;;  %v1129_v35 = vld [vmem:[#allocation7 + $0x228] sm:$0xff]  ;;  %v1106_v4 = vld [vmem:[#allocation7 + $0x170] sm:$0xff] }
 0x2af   :  { %v1253_v47 = vld [vmem:[#allocation7 + $0x608] sm:$0xff]  ;;  %v6241_v12 = vcombine.high %v1125_v5, %v1129_v35  ;;  %v6240_v15 = vcombine.low %v1125_v5, %v1129_v35  ;;  %v1230_v8 = vld [vmem:[#allocation7 + $0x550] sm:$0xff]  ;;  %v6219_v26 = vcombine.high %v1102_v52, %v1106_v4  ;;  %v6218_v62 = vcombine.low %v1102_v52, %v1106_v4 }
 0x2b0   :  { %v1257_v53 = vld [vmem:[#allocation7 + $0x628] sm:$0xff]  ;;  %v6346_v59 = vcombine.low %v1230_v8, %v1234_v60  ;;  %v1218_v5 = vld [vmem:[#allocation7 + $0x4f0] sm:$0xff] }
 0x2b1   :  { %2767 = vmatpush2.bf16.msra.mxu0 %v6264_v56  ;;  %2840 = vmatpush2.bf16.msra.mxu1 %v6392_v1  ;;  %v6369_v0 = vcombine.high %v1253_v47, %v1257_v53  ;;  %v6368_v40 = vcombine.low %v1253_v47, %v1257_v53  ;;  %v6347_v56 = vcombine.high %v1230_v8, %v1234_v60  ;;  %v1094_v1 = vld [vmem:[#allocation7 + $0x110] sm:$0xff] }
 0x2b2   :  { %2768 = vmatprep.subr.bf16.mxu0 %v6257_v23  ;;  %2841 = vmatprep.subr.bf16.mxu1 %v6385_v34  ;;  %v1098_v23 = vld [vmem:[#allocation7 + $0x130] sm:$0xff] }
 0x2b3   :  { %v1222_v34 = vld [vmem:[#allocation7 + $0x510] sm:$0xff]  ;;  %v6211_v46 = vcombine.high %v1094_v1, %v1098_v23  ;;  %v6210_v35 = vcombine.low %v1094_v1, %v1098_v23 }
 0x2b4   :  { %v6338_v47 = vcombine.low %v1222_v34, %v1226_v2  ;;  %v1210_v29 = vld [vmem:[#allocation7 + $0x4b0] sm:$0xff] }
 0x2b5   :  { %2769 = vmatpush2.bf16.msra.mxu0 %v6256_v31  ;;  %2842 = vmatpush2.bf16.msra.mxu1 %v6384_v36  ;;  %v6339_v31 = vcombine.high %v1222_v34, %v1226_v2  ;;  %v1086_v36 = vld [vmem:[#allocation7 + $0xd0] sm:$0xff] }
 0x2b6   :  { %2770 = vmatprep.subr.bf16.mxu0 %v6249_v50  ;;  %2843 = vmatprep.subr.bf16.mxu1 %v6377_v61  ;;  %v1090_v50 = vld [vmem:[#allocation7 + $0xf0] sm:$0xff] }
 0x2b7   :  { %v1214_v61 = vld [vmem:[#allocation7 + $0x4d0] sm:$0xff]  ;;  %v6203_v53 = vcombine.high %v1086_v36, %v1090_v50  ;;  %v6202_v21 = vcombine.low %v1086_v36, %v1090_v50 }
 0x2b8   :  { %v6330_v20 = vcombine.low %v1214_v61, %v1218_v5  ;;  %v1202_v18 = vld [vmem:[#allocation7 + $0x470] sm:$0xff] }
 0x2b9   :  { %2771 = vmatpush2.bf16.msra.mxu0 %v6248_v49  ;;  %2844 = vmatpush2.bf16.msra.mxu1 %v6376_v3  ;;  %v6331_v49 = vcombine.high %v1214_v61, %v1218_v5  ;;  %v1078_v3 = vld [vmem:[#allocation7 + $0x90] sm:$0xff] }
 0x2ba   :  { %2772 = vmatprep.subr.bf16.mxu0 %v6241_v12  ;;  %2845 = vmatprep.subr.bf16.mxu1 %v6369_v0  ;;  %v1082_v12 = vld [vmem:[#allocation7 + $0xb0] sm:$0xff] }
 0x2bb   :  { %v1206_v0 = vld [vmem:[#allocation7 + $0x490] sm:$0xff]  ;;  %v6195_v17 = vcombine.high %v1078_v3, %v1082_v12  ;;  %v6194_v51 = vcombine.low %v1078_v3, %v1082_v12 }
 0x2bc   :  { %v6322_v54 = vcombine.low %v1206_v0, %v1210_v29  ;;  %v1194_v52 = vld [vmem:[#allocation7 + $0x430] sm:$0xff] }
 0x2bd   :  { %2773 = vmatpush2.bf16.msra.mxu0 %v6240_v15  ;;  %2846 = vmatpush2.bf16.msra.mxu1 %v6368_v40  ;;  %v6323_v15 = vcombine.high %v1206_v0, %v1210_v29  ;;  %v1070_v40 = vld [vmem:[#allocation7 + $0x50] sm:$0xff] }
 0x2be   :  { %2888 = vmatprep.subr.bf16.mxu0 %v6235_v55  ;;  %2961 = vmatprep.subr.bf16.mxu1 %v6363_v25  ;;  %v1074_v55 = vld [vmem:[#allocation7 + $0x70] sm:$0xff] }
 0x2bf   :  { %v1198_v25 = vld [vmem:[#allocation7 + $0x450] sm:$0xff]  ;;  %v6187_v57 = vcombine.high %v1070_v40, %v1074_v55  ;;  %v6186_v4 = vcombine.low %v1070_v40, %v1074_v55 }
 0x2c0   :  { %2775 = vmatmul.mubr.bf16.vlgmr.msra.gmra.mxu0 %v8004_v42  ;;  %2848 = vmatmul.mubr.bf16.vlgmr.msra.gmra.mxu1 %v8006_v37  ;;  %v6314_v8 = vcombine.low %v1198_v25, %v1202_v18  ;;  %v1314_v1 = vld [vmem:[#allocation7 + $0x7f0] sm:$0xff] }
 0x2c1   :  { %2784 = vmatprep.mubr.bf16.mxu0 %v8054_v24  ;;  %2857 = vmatprep.mubr.bf16.mxu1 %v8056_v6  ;;  %v1306_v36 = vld [vmem:[#allocation7 + $0x7b0] sm:$0xff] }
 0x2c2   :  { %2889 = vmatpush1.bf16.msra.mxu0 %v6234_v45  ;;  %2962 = vmatpush1.bf16.msra.mxu1 %v6362_v44  ;;  %v6315_v45 = vcombine.high %v1198_v25, %v1202_v18  ;;  %v1062_v44 = vld [vmem:[#allocation7 + $0x10] sm:$0xff] }
 0x2c3   :  { %2890 = vmatprep.subr.bf16.mxu0 %v6227_v9  ;;  %2963 = vmatprep.subr.bf16.mxu1 %v6355_v27  ;;  %v1066_v9 = vld [vmem:[#allocation7 + $0x30] sm:$0xff] }
 0x2c4   :  { %v1190_v27 = vld [vmem:[#allocation7 + $0x410] sm:$0xff]  ;;  %v6179_v60 = vcombine.high %v1062_v44, %v1066_v9  ;;  %v6178_v23 = vcombine.low %v1062_v44, %v1066_v9 }
 0x2c5   :  { %v6306_v34 = vcombine.low %v1190_v27, %v1194_v52  ;;  %v1298_v3 = vld [vmem:[#allocation7 + $0x770] sm:$0xff] }
 0x2c6   :  { %2891 = vmatpush1.bf16.msra.mxu0 %v6226_v33  ;;  %2964 = vmatpush1.bf16.msra.mxu1 %v6354_v41  ;;  %v6307_v33 = vcombine.high %v1190_v27, %v1194_v52  ;;  %v1182_v41 = vld [vmem:[#allocation7 + $0x3d0] sm:$0xff] }
 0x2c7   :  { %2892 = vmatprep.subr.bf16.mxu0 %v6219_v26  ;;  %2965 = vmatprep.subr.bf16.mxu1 %v6347_v56  ;;  %v1186_v26 = vld [vmem:[#allocation7 + $0x3f0] sm:$0xff] }
 0x2c8   :  { %2785 = vmatmul.mubr.bf16.gmra.mxu0 %v8062_v16  ;;  %2858 = vmatmul.mubr.bf16.gmra.mxu1 %v8064_v22  ;;  %v1310_v56 = vld [vmem:[#allocation7 + $0x7d0] sm:$0xff]  ;;  %v6299_v2 = vcombine.high %v1182_v41, %v1186_v26  ;;  %v6298_v50 = vcombine.low %v1182_v41, %v1186_v26 }
 0x2c9   :  { %2794 = vmatprep.mubr.bf16.mxu0 %v8105_v32  ;;  %2867 = vmatprep.mubr.bf16.mxu1 %v8107_v63  ;;  %v6426_v61 = vcombine.low %v1310_v56, %v1314_v1  ;;  %v1290_v40 = vld [vmem:[#allocation7 + $0x730] sm:$0xff] }
 0x2ca   :  { %2893 = vmatpush1.bf16.msra.mxu0 %v6218_v62  ;;  %2966 = vmatpush1.bf16.msra.mxu1 %v6346_v59  ;;  %v6427_v62 = vcombine.high %v1310_v56, %v1314_v1  ;;  %v1174_v59 = vld [vmem:[#allocation7 + $0x390] sm:$0xff] }
 0x2cb   :  { %2894 = vmatprep.subr.bf16.mxu0 %v6211_v46  ;;  %2967 = vmatprep.subr.bf16.mxu1 %v6339_v31  ;;  %v1178_v46 = vld [vmem:[#allocation7 + $0x3b0] sm:$0xff] }
 0x2cc   :  { %v1302_v31 = vld [vmem:[#allocation7 + $0x790] sm:$0xff]  ;;  %v6291_v5 = vcombine.high %v1174_v59, %v1178_v46  ;;  %v6290_v12 = vcombine.low %v1174_v59, %v1178_v46 }
 0x2cd   :  { %v6418_v0 = vcombine.low %v1302_v31, %v1306_v36  ;;  %v1282_v44 = vld [vmem:[#allocation7 + $0x6f0] sm:$0xff] }
 0x2ce   :  { %2895 = vmatpush1.bf16.msra.mxu0 %v6210_v35  ;;  %2968 = vmatpush1.bf16.msra.mxu1 %v6338_v47  ;;  %v6419_v35 = vcombine.high %v1302_v31, %v1306_v36  ;;  %v1166_v47 = vld [vmem:[#allocation7 + $0x350] sm:$0xff] }
 0x2cf   :  { %2896 = vmatprep.subr.bf16.mxu0 %v6203_v53  ;;  %2969 = vmatprep.subr.bf16.mxu1 %v6331_v49  ;;  %v1170_v53 = vld [vmem:[#allocation7 + $0x370] sm:$0xff] }
 0x2d0   :  { %2795 = vmatmul.mubr.bf16.gmra.mxu0 %v8109_v39  ;;  %2868 = vmatmul.mubr.bf16.gmra.mxu1 %v8112_v48  ;;  %v1294_v49 = vld [vmem:[#allocation7 + $0x750] sm:$0xff]  ;;  %v6283_v29 = vcombine.high %v1166_v47, %v1170_v53  ;;  %v6282_v55 = vcombine.low %v1166_v47, %v1170_v53 }
 0x2d1   :  { %2804 = vmatprep.mubr.bf16.mxu0 %v8129_v28  ;;  %2877 = vmatprep.mubr.bf16.mxu1 %v8131_v7  ;;  %v6410_v25 = vcombine.low %v1294_v49, %v1298_v3  ;;  %v1274_v41 = vld [vmem:[#allocation7 + $0x6b0] sm:$0xff] }
 0x2d2   :  { %2897 = vmatpush1.bf16.msra.mxu0 %v6202_v21  ;;  %2970 = vmatpush1.bf16.msra.mxu1 %v6330_v20  ;;  %v6411_v21 = vcombine.high %v1294_v49, %v1298_v3  ;;  %v1158_v20 = vld [vmem:[#allocation7 + $0x310] sm:$0xff] }
 0x2d3   :  { %2898 = vmatprep.subr.bf16.mxu0 %v6195_v17  ;;  %2971 = vmatprep.subr.bf16.mxu1 %v6323_v15  ;;  %v1162_v17 = vld [vmem:[#allocation7 + $0x330] sm:$0xff] }
 0x2d4   :  { %v1286_v15 = vld [vmem:[#allocation7 + $0x710] sm:$0xff]  ;;  %v6275_v18 = vcombine.high %v1158_v20, %v1162_v17  ;;  %v6274_v9 = vcombine.low %v1158_v20, %v1162_v17  ;;  %v1251_v20 = vld [vmem:[#allocation7 + $0x5f8] sm:$0xff] }
 0x2d5   :  { %v6402_v27 = vcombine.low %v1286_v15, %v1290_v40  ;;  %v1266_v59 = vld [vmem:[#allocation7 + $0x670] sm:$0xff] }
 0x2d6   :  { %2899 = vmatpush1.bf16.msra.mxu0 %v6194_v51  ;;  %2972 = vmatpush1.bf16.msra.mxu1 %v6322_v54  ;;  %v6403_v51 = vcombine.high %v1286_v15, %v1290_v40  ;;  %v1150_v54 = vld [vmem:[#allocation7 + $0x2d0] sm:$0xff] }
 0x2d7   :  { %2900 = vmatprep.subr.bf16.mxu0 %v6187_v57  ;;  %2973 = vmatprep.subr.bf16.mxu1 %v6315_v45  ;;  %v1154_v57 = vld [vmem:[#allocation7 + $0x2f0] sm:$0xff] }
 0x2d8   :  { %2805 = vmatmul.mubr.bf16.gmra.mxu0 %v8133_v58  ;;  %2878 = vmatmul.mubr.bf16.gmra.mxu1 %v8135_v38  ;;  %v1278_v45 = vld [vmem:[#allocation7 + $0x6d0] sm:$0xff]  ;;  %v6267_v52 = vcombine.high %v1150_v54, %v1154_v57  ;;  %v6266_v26 = vcombine.low %v1150_v54, %v1154_v57  ;;  %v1243_v54 = vld [vmem:[#allocation7 + $0x5b8] sm:$0xff] }
 0x2d9   :  { %2920 = vmatprep.mubr.bf16.mxu0 %v7994_v19  ;;  %2993 = vmatprep.mubr.bf16.mxu1 %v7996_v30  ;;  %v6394_v56 = vcombine.low %v1278_v45, %v1282_v44  ;;  %v1258_v47 = vld [vmem:[#allocation7 + $0x630] sm:$0xff] }
 0x2da   :  { %2901 = vmatpush1.bf16.msra.mxu0 %v6186_v4  ;;  %2974 = vmatpush1.bf16.msra.mxu1 %v6314_v8  ;;  %v6395_v4 = vcombine.high %v1278_v45, %v1282_v44  ;;  %v1142_v8 = vld [vmem:[#allocation7 + $0x290] sm:$0xff] }
 0x2db   :  { %2902 = vmatprep.subr.bf16.mxu0 %v6179_v60  ;;  %2975 = vmatprep.subr.bf16.mxu1 %v6307_v33  ;;  %v1146_v60 = vld [vmem:[#allocation7 + $0x2b0] sm:$0xff] }
 0x2dc   :  { %v1270_v33 = vld [vmem:[#allocation7 + $0x690] sm:$0xff]  ;;  %v6259_v1 = vcombine.high %v1142_v8, %v1146_v60  ;;  %v6258_v46 = vcombine.low %v1142_v8, %v1146_v60  ;;  %v1235_v8 = vld [vmem:[#allocation7 + $0x578] sm:$0xff] }
 0x2dd   :  { %v6386_v31 = vcombine.low %v1270_v33, %v1274_v41 }
 0x2de   :  { %2903 = vmatpush1.bf16.msra.mxu0 %v6178_v23  ;;  %2976 = vmatpush1.bf16.msra.mxu1 %v6306_v34  ;;  %v6387_v23 = vcombine.high %v1270_v33, %v1274_v41  ;;  %v1134_v34 = vld [vmem:[#allocation7 + $0x250] sm:$0xff] }
 0x2df   :  { %2904 = vmatprep.subr.bf16.mxu0 %v6299_v2  ;;  %2977 = vmatprep.subr.bf16.mxu1 %v6427_v62  ;;  %v1138_v2 = vld [vmem:[#allocation7 + $0x270] sm:$0xff] }
 0x2e0   :  { %v1262_v62 = vld [vmem:[#allocation7 + $0x650] sm:$0xff]  ;;  %v6251_v36 = vcombine.high %v1134_v34, %v1138_v2  ;;  %v6250_v53 = vcombine.low %v1134_v34, %v1138_v2  ;;  %v1227_v34 = vld [vmem:[#allocation7 + $0x538] sm:$0xff] }
 0x2e1   :  { %v6378_v49 = vcombine.low %v1262_v62, %v1266_v59 }
 0x2e2   :  { %2905 = vmatpush2.bf16.msra.mxu0 %v6298_v50  ;;  %2978 = vmatpush2.bf16.msra.mxu1 %v6426_v61  ;;  %v6379_v50 = vcombine.high %v1262_v62, %v1266_v59  ;;  %v1126_v61 = vld [vmem:[#allocation7 + $0x210] sm:$0xff] }
 0x2e3   :  { %2906 = vmatprep.subr.bf16.mxu0 %v6291_v5  ;;  %2979 = vmatprep.subr.bf16.mxu1 %v6419_v35  ;;  %v1130_v5 = vld [vmem:[#allocation7 + $0x230] sm:$0xff] }
 0x2e4   :  { %v1254_v35 = vld [vmem:[#allocation7 + $0x610] sm:$0xff]  ;;  %v6243_v3 = vcombine.high %v1126_v61, %v1130_v5  ;;  %v6242_v17 = vcombine.low %v1126_v61, %v1130_v5  ;;  %v1219_v61 = vld [vmem:[#allocation7 + $0x4f8] sm:$0xff] }
 0x2e5   :  { %v6370_v15 = vcombine.low %v1254_v35, %v1258_v47 }
 0x2e6   :  { %2907 = vmatpush2.bf16.msra.mxu0 %v6290_v12  ;;  %2980 = vmatpush2.bf16.msra.mxu1 %v6418_v0  ;;  %v6371_v12 = vcombine.high %v1254_v35, %v1258_v47  ;;  %v1119_v0 = vld [vmem:[#allocation7 + $0x1d8] sm:$0xff] }
 0x2e7   :  { %2908 = vmatprep.subr.bf16.mxu0 %v6283_v29  ;;  %2981 = vmatprep.subr.bf16.mxu1 %v6411_v21  ;;  %v1123_v29 = vld [vmem:[#allocation7 + $0x1f8] sm:$0xff] }
 0x2e8   :  { %v1247_v21 = vld [vmem:[#allocation7 + $0x5d8] sm:$0xff]  ;;  %v6237_v40 = vcombine.high %v1119_v0, %v1123_v29  ;;  %v6236_v57 = vcombine.low %v1119_v0, %v1123_v29 }
 0x2e9   :  { %v6364_v45 = vcombine.low %v1247_v21, %v1251_v20  ;;  %v1211_v0 = vld [vmem:[#allocation7 + $0x4b8] sm:$0xff] }
 0x2ea   :  { %2909 = vmatpush2.bf16.msra.mxu0 %v6282_v55  ;;  %2982 = vmatpush2.bf16.msra.mxu1 %v6410_v25  ;;  %v6365_v55 = vcombine.high %v1247_v21, %v1251_v20  ;;  %v1111_v25 = vld [vmem:[#allocation7 + $0x198] sm:$0xff] }
 0x2eb   :  { %2910 = vmatprep.subr.bf16.mxu0 %v6275_v18  ;;  %2983 = vmatprep.subr.bf16.mxu1 %v6403_v51  ;;  %v1115_v18 = vld [vmem:[#allocation7 + $0x1b8] sm:$0xff] }
 0x2ec   :  { %v1239_v51 = vld [vmem:[#allocation7 + $0x598] sm:$0xff]  ;;  %v6229_v44 = vcombine.high %v1111_v25, %v1115_v18  ;;  %v6228_v60 = vcombine.low %v1111_v25, %v1115_v18 }
 0x2ed   :  { %v6356_v33 = vcombine.low %v1239_v51, %v1243_v54  ;;  %v1203_v25 = vld [vmem:[#allocation7 + $0x478] sm:$0xff] }
 0x2ee   :  { %2911 = vmatpush2.bf16.msra.mxu0 %v6274_v9  ;;  %2984 = vmatpush2.bf16.msra.mxu1 %v6402_v27  ;;  %v6357_v9 = vcombine.high %v1239_v51, %v1243_v54  ;;  %v1103_v27 = vld [vmem:[#allocation7 + $0x158] sm:$0xff] }
 0x2ef   :  { %2912 = vmatprep.subr.bf16.mxu0 %v6267_v52  ;;  %2985 = vmatprep.subr.bf16.mxu1 %v6395_v4  ;;  %v1107_v52 = vld [vmem:[#allocation7 + $0x178] sm:$0xff] }
 0x2f0   :  { %v1231_v4 = vld [vmem:[#allocation7 + $0x558] sm:$0xff]  ;;  %v6221_v41 = vcombine.high %v1103_v27, %v1107_v52  ;;  %v6220_v2 = vcombine.low %v1103_v27, %v1107_v52 }
 0x2f1   :  { %v6348_v62 = vcombine.low %v1231_v4, %v1235_v8  ;;  %v1195_v27 = vld [vmem:[#allocation7 + $0x438] sm:$0xff] }
 0x2f2   :  { %2913 = vmatpush2.bf16.msra.mxu0 %v6266_v26  ;;  %2986 = vmatpush2.bf16.msra.mxu1 %v6394_v56  ;;  %v6349_v26 = vcombine.high %v1231_v4, %v1235_v8  ;;  %v1095_v56 = vld [vmem:[#allocation7 + $0x118] sm:$0xff] }
 0x2f3   :  { %2914 = vmatprep.subr.bf16.mxu0 %v6259_v1  ;;  %2987 = vmatprep.subr.bf16.mxu1 %v6387_v23  ;;  %v1099_v1 = vld [vmem:[#allocation7 + $0x138] sm:$0xff] }
 0x2f4   :  { %v1223_v23 = vld [vmem:[#allocation7 + $0x518] sm:$0xff]  ;;  %v6213_v59 = vcombine.high %v1095_v56, %v1099_v1  ;;  %v6212_v5 = vcombine.low %v1095_v56, %v1099_v1 }
 0x2f5   :  { %v6340_v35 = vcombine.low %v1223_v23, %v1227_v34  ;;  %v1315_v56 = vld [vmem:[#allocation7 + $0x7f8] sm:$0xff] }
 0x2f6   :  { %2915 = vmatpush2.bf16.msra.mxu0 %v6258_v46  ;;  %2988 = vmatpush2.bf16.msra.mxu1 %v6386_v31  ;;  %v6341_v46 = vcombine.high %v1223_v23, %v1227_v34  ;;  %v1087_v31 = vld [vmem:[#allocation7 + $0xd8] sm:$0xff] }
 0x2f7   :  { %2916 = vmatprep.subr.bf16.mxu0 %v6251_v36  ;;  %2989 = vmatprep.subr.bf16.mxu1 %v6379_v50  ;;  %v1091_v36 = vld [vmem:[#allocation7 + $0xf8] sm:$0xff] }
 0x2f8   :  { %v1215_v50 = vld [vmem:[#allocation7 + $0x4d8] sm:$0xff]  ;;  %v6205_v47 = vcombine.high %v1087_v31, %v1091_v36  ;;  %v6204_v29 = vcombine.low %v1087_v31, %v1091_v36 }
 0x2f9   :  { %v6332_v21 = vcombine.low %v1215_v50, %v1219_v61  ;;  %v1307_v31 = vld [vmem:[#allocation7 + $0x7b8] sm:$0xff] }
 0x2fa   :  { %2917 = vmatpush2.bf16.msra.mxu0 %v6250_v53  ;;  %2990 = vmatpush2.bf16.msra.mxu1 %v6378_v49  ;;  %v6333_v53 = vcombine.high %v1215_v50, %v1219_v61  ;;  %v1079_v49 = vld [vmem:[#allocation7 + $0x98] sm:$0xff] }
 0x2fb   :  { %2918 = vmatprep.subr.bf16.mxu0 %v6243_v3  ;;  %2991 = vmatprep.subr.bf16.mxu1 %v6371_v12  ;;  %v1083_v3 = vld [vmem:[#allocation7 + $0xb8] sm:$0xff] }
 0x2fc   :  { %v1207_v12 = vld [vmem:[#allocation7 + $0x498] sm:$0xff]  ;;  %v6197_v20 = vcombine.high %v1079_v49, %v1083_v3  ;;  %v6196_v18 = vcombine.low %v1079_v49, %v1083_v3 }
 0x2fd   :  { %v6324_v51 = vcombine.low %v1207_v12, %v1211_v0  ;;  %v1167_v61 = vld [vmem:[#allocation7 + $0x358] sm:$0xff] }
 0x2fe   :  { %2919 = vmatpush2.bf16.msra.mxu0 %v6242_v17  ;;  %2992 = vmatpush2.bf16.msra.mxu1 %v6370_v15  ;;  %v6325_v17 = vcombine.high %v1207_v12, %v1211_v0  ;;  %v1071_v15 = vld [vmem:[#allocation7 + $0x58] sm:$0xff] }
 0x2ff   :  { %3034 = vmatprep.subr.bf16.mxu0 %v6237_v40  ;;  %3107 = vmatprep.subr.bf16.mxu1 %v6365_v55  ;;  %v1075_v40 = vld [vmem:[#allocation7 + $0x78] sm:$0xff] }
 0x300   :  { %v1199_v55 = vld [vmem:[#allocation7 + $0x458] sm:$0xff]  ;;  %v6189_v54 = vcombine.high %v1071_v15, %v1075_v40  ;;  %v6188_v52 = vcombine.low %v1071_v15, %v1075_v40 }
 0x301   :  { %2921 = vmatmul.mubr.bf16.vlgmr.msra.gmra.mxu0 %v8004_v42  ;;  %2994 = vmatmul.mubr.bf16.vlgmr.msra.gmra.mxu1 %v8006_v37  ;;  %v6316_v4 = vcombine.low %v1199_v55, %v1203_v25  ;;  %v1159_v0 = vld [vmem:[#allocation7 + $0x318] sm:$0xff] }
 0x302   :  { %2930 = vmatprep.mubr.bf16.mxu0 %v8054_v24  ;;  %3003 = vmatprep.mubr.bf16.mxu1 %v8056_v6 }
 0x303   :  { %3035 = vmatpush1.bf16.msra.mxu0 %v6236_v57  ;;  %3108 = vmatpush1.bf16.msra.mxu1 %v6364_v45  ;;  %v6317_v57 = vcombine.high %v1199_v55, %v1203_v25  ;;  %v1063_v45 = vld [vmem:[#allocation7 + $0x18] sm:$0xff] }
 0x304   :  { %3036 = vmatprep.subr.bf16.mxu0 %v6229_v44  ;;  %3109 = vmatprep.subr.bf16.mxu1 %v6357_v9  ;;  %v1067_v44 = vld [vmem:[#allocation7 + $0x38] sm:$0xff] }
 0x305   :  { %v1191_v9 = vld [vmem:[#allocation7 + $0x418] sm:$0xff]  ;;  %v6181_v8 = vcombine.high %v1063_v45, %v1067_v44  ;;  %v6180_v1 = vcombine.low %v1063_v45, %v1067_v44 }
 0x306   :  { %v6308_v23 = vcombine.low %v1191_v9, %v1195_v27  ;;  %v1151_v25 = vld [vmem:[#allocation7 + $0x2d8] sm:$0xff] }
 0x307   :  { %3037 = vmatpush1.bf16.msra.mxu0 %v6228_v60  ;;  %3110 = vmatpush1.bf16.msra.mxu1 %v6356_v33  ;;  %v6309_v60 = vcombine.high %v1191_v9, %v1195_v27  ;;  %v1183_v33 = vld [vmem:[#allocation7 + $0x3d8] sm:$0xff] }
 0x308   :  { %3038 = vmatprep.subr.bf16.mxu0 %v6221_v41  ;;  %3111 = vmatprep.subr.bf16.mxu1 %v6349_v26  ;;  %v1187_v41 = vld [vmem:[#allocation7 + $0x3f8] sm:$0xff] }
 0x309   :  { %2931 = vmatmul.mubr.bf16.gmra.mxu0 %v8062_v16  ;;  %3004 = vmatmul.mubr.bf16.gmra.mxu1 %v8064_v22  ;;  %v1311_v26 = vld [vmem:[#allocation7 + $0x7d8] sm:$0xff]  ;;  %v6301_v34 = vcombine.high %v1183_v33, %v1187_v41  ;;  %v6300_v36 = vcombine.low %v1183_v33, %v1187_v41 }
 0x30a   :  { %2940 = vmatprep.mubr.bf16.mxu0 %v8105_v32  ;;  %3013 = vmatprep.mubr.bf16.mxu1 %v8107_v63  ;;  %v6428_v50 = vcombine.low %v1311_v26, %v1315_v56  ;;  %v1143_v27 = vld [vmem:[#allocation7 + $0x298] sm:$0xff] }
 0x30b   :  { %3039 = vmatpush1.bf16.msra.mxu0 %v6220_v2  ;;  %3112 = vmatpush1.bf16.msra.mxu1 %v6348_v62  ;;  %v6429_v2 = vcombine.high %v1311_v26, %v1315_v56  ;;  %v1175_v62 = vld [vmem:[#allocation7 + $0x398] sm:$0xff] }
 0x30c   :  { %3040 = vmatprep.subr.bf16.mxu0 %v6213_v59  ;;  %3113 = vmatprep.subr.bf16.mxu1 %v6341_v46  ;;  %v1179_v59 = vld [vmem:[#allocation7 + $0x3b8] sm:$0xff] }
 0x30d   :  { %v1303_v46 = vld [vmem:[#allocation7 + $0x798] sm:$0xff] }
 0x30e   :  { %v6420_v49 = vcombine.low %v1303_v46, %v1307_v31  ;;  %v1135_v56 = vld [vmem:[#allocation7 + $0x258] sm:$0xff] }
 0x30f   :  { %3041 = vmatpush1.bf16.msra.mxu0 %v6212_v5  ;;  %3114 = vmatpush1.bf16.msra.mxu1 %v6340_v35  ;;  %v1171_v5 = vld [vmem:[#allocation7 + $0x378] sm:$0xff] }
 0x310   :  { %3042 = vmatprep.subr.bf16.mxu0 %v6205_v47  ;;  %3115 = vmatprep.subr.bf16.mxu1 %v6333_v53  ;;  %v1295_v35 = vld [vmem:[#allocation7 + $0x758] sm:$0xff]  ;;  %v6292_v53 = vcombine.low %v1175_v62, %v1179_v59  ;;  %v6285_v3 = vcombine.high %v1167_v61, %v1171_v5 }
 0x311   :  { %2941 = vmatmul.mubr.bf16.gmra.mxu0 %v8109_v39  ;;  %3014 = vmatmul.mubr.bf16.gmra.mxu1 %v8112_v48  ;;  %v1299_v47 = vld [vmem:[#allocation7 + $0x778] sm:$0xff] }
 0x312   :  { %2950 = vmatprep.mubr.bf16.mxu0 %v8129_v28  ;;  %3023 = vmatprep.mubr.bf16.mxu1 %v8131_v7  ;;  %v6413_v12 = vcombine.high %v1295_v35, %v1299_v47  ;;  %v6412_v15 = vcombine.low %v1295_v35, %v1299_v47 }
 0x313   :  { %3043 = vmatpush1.bf16.msra.mxu0 %v6204_v29  ;;  %3116 = vmatpush1.bf16.msra.mxu1 %v6332_v21  ;;  %v1163_v29 = vld [vmem:[#allocation7 + $0x338] sm:$0xff] }
 0x314   :  { %3044 = vmatprep.subr.bf16.mxu0 %v6197_v20  ;;  %3117 = vmatprep.subr.bf16.mxu1 %v6325_v17  ;;  %v1287_v21 = vld [vmem:[#allocation7 + $0x718] sm:$0xff]  ;;  %v6284_v17 = vcombine.low %v1167_v61, %v1171_v5  ;;  %v6277_v40 = vcombine.high %v1159_v0, %v1163_v29 }
 0x315   :  { %v1291_v20 = vld [vmem:[#allocation7 + $0x738] sm:$0xff] }
 0x316   :  { %v6405_v55 = vcombine.high %v1287_v21, %v1291_v20  ;;  %v6404_v45 = vcombine.low %v1287_v21, %v1291_v20  ;;  %v1259_v61 = vld [vmem:[#allocation7 + $0x638] sm:$0xff]  ;;  %v7004_v21 = vld [vmem:[%s9328_s5 + $0xe0] ss:$16 sps:$4 sm:$0xff]  }
 0x317   :  { %3045 = vmatpush1.bf16.msra.mxu0 %v6196_v18  ;;  %3118 = vmatpush1.bf16.msra.mxu1 %v6324_v51  ;;  %v1155_v18 = vld [vmem:[#allocation7 + $0x2f8] sm:$0xff]  ;;  %v7007_v20 = vld [vmem:[%s9328_s5 + $0x2e0] ss:$16 sps:$4 sm:$0xff]  }
 0x318   :  { %3046 = vmatprep.subr.bf16.mxu0 %v6189_v54  ;;  %3119 = vmatprep.subr.bf16.mxu1 %v6317_v57  ;;  %v1279_v51 = vld [vmem:[#allocation7 + $0x6d8] sm:$0xff]  ;;  %v6276_v57 = vcombine.low %v1159_v0, %v1163_v29  ;;  %v6269_v44 = vcombine.high %v1151_v25, %v1155_v18  ;;  %v7006_v0 = vld [vmem:[%s9328_s5 + $0xe4] ss:$16 sps:$4 sm:$0xff]  }
 0x319   :  { %2951 = vmatmul.mubr.bf16.gmra.mxu0 %v8133_v58  ;;  %3024 = vmatmul.mubr.bf16.gmra.mxu1 %v8135_v38  ;;  %v1283_v54 = vld [vmem:[#allocation7 + $0x6f8] sm:$0xff]  ;;  %v7009_v29 = vld [vmem:[%s9328_s5 + $0x2e4] ss:$16 sps:$4 sm:$0xff]  }
 0x31a   :  { %3066 = vmatprep.mubr.bf16.mxu0 %v7994_v19  ;;  %3139 = vmatprep.mubr.bf16.mxu1 %v7996_v30  ;;  %v6293_v19 = vcombine.high %v1175_v62, %v1179_v59  ;;  %v6421_v30 = vcombine.high %v1303_v46, %v1307_v31  ;;  %v6397_v9 = vcombine.high %v1279_v51, %v1283_v54 }
 0x31b   :  { %3047 = vmatpush1.bf16.msra.mxu0 %v6188_v52  ;;  %3120 = vmatpush1.bf16.msra.mxu1 %v6316_v4  ;;  %v1147_v52 = vld [vmem:[#allocation7 + $0x2b8] sm:$0xff]  ;;  %v6396_v33 = vcombine.low %v1279_v51, %v1283_v54  ;;  %v7010_v54 = vld [vmem:[%s9328_s5 + $0xc0] ss:$16 sps:$4 sm:$0xff]  }
 0x31c   :  { %3048 = vmatprep.subr.bf16.mxu0 %v6181_v8  ;;  %3121 = vmatprep.subr.bf16.mxu1 %v6309_v60  ;;  %v1271_v4 = vld [vmem:[#allocation7 + $0x698] sm:$0xff]  ;;  %v6268_v60 = vcombine.low %v1151_v25, %v1155_v18  ;;  %v6261_v41 = vcombine.high %v1143_v27, %v1147_v52  ;;  %v6260_v62 = vcombine.low %v1143_v27, %v1147_v52  ;;  %v7015_v25 = vld [vmem:[%s9328_s5 + $0x2c4] ss:$16 sps:$4 sm:$0xff]   ;;  %v7016_v52 = vld [vmem:[%s9328_s5 + $0xa0] ss:$16 sps:$4 sm:$0xff]  }
 0x31d   :  { %v1275_v8 = vld [vmem:[#allocation7 + $0x6b8] sm:$0xff] }
 0x31e   :  { %v6389_v26 = vcombine.high %v1271_v4, %v1275_v8  ;;  %v6388_v59 = vcombine.low %v1271_v4, %v1275_v8  ;;  %v7019_v4 = vld [vmem:[%s9328_s5 + $0x2a0] ss:$16 sps:$4 sm:$0xff]  }
 0x31f   :  { %3049 = vmatpush1.bf16.msra.mxu0 %v6180_v1  ;;  %3122 = vmatpush1.bf16.msra.mxu1 %v6308_v23  ;;  %v1139_v1 = vld [vmem:[#allocation7 + $0x278] sm:$0xff] }
 0x320   :  { %3050 = vmatprep.subr.bf16.mxu0 %v6301_v34  ;;  %3123 = vmatprep.subr.bf16.mxu1 %v6429_v2  ;;  %v1263_v23 = vld [vmem:[#allocation7 + $0x658] sm:$0xff]  ;;  %v1024_v2 = vpop.xlane.xlu1 %1023  ;;  %v6253_v46 = vcombine.high %v1135_v56, %v1139_v1  ;;  %v6252_v5 = vcombine.low %v1135_v56, %v1139_v1 }
 0x321   :  { %v1267_v34 = vld [vmem:[#allocation7 + $0x678] sm:$0xff] }
 0x322   :  { %v6381_v31 = vcombine.high %v1263_v23, %v1267_v34  ;;  %v6380_v35 = vcombine.low %v1263_v23, %v1267_v34 }
 0x323   :  { %3051 = vmatpush2.bf16.msra.mxu0 %v6300_v36  ;;  %3124 = vmatpush2.bf16.msra.mxu1 %v6428_v50  ;;  %v1127_v36 = vld [vmem:[#allocation7 + $0x218] sm:$0xff]  ;;  %v1025_v50 = vmul.f32 0.001953125, %v1024_v2  ;;  %v7022_v2 = vld [vmem:[%s9328_s5 + $0x80] ss:$16 sps:$4 sm:$0xff]  }
 0x324   :  { %3052 = vmatprep.subr.bf16.mxu0 %v6293_v19  ;;  %3125 = vmatprep.subr.bf16.mxu1 %v6421_v30  ;;  %v1131_v19 = vld [vmem:[#allocation7 + $0x238] sm:$0xff] }
 0x325   :  { %v1255_v30 = vld [vmem:[#allocation7 + $0x618] sm:$0xff]  ;;  %v6245_v47 = vcombine.high %v1127_v36, %v1131_v19 }
 0x327   :  { %3053 = vmatpush2.bf16.msra.mxu0 %v6292_v53  ;;  %3126 = vmatpush2.bf16.msra.mxu1 %v6420_v49  ;;  %v6373_v53 = vcombine.high %v1255_v30, %v1259_v61  ;;  %v1026_v49 = vadd.f32 1e-05, %v1025_v50 }
 0x328   :  { %3054 = vmatprep.subr.bf16.mxu0 %v6285_v3  ;;  %3127 = vmatprep.subr.bf16.mxu1 %v6413_v12  ;;  %v6244_v3 = vcombine.low %v1127_v36, %v1131_v19  ;;  %v6372_v12 = vcombine.low %v1255_v30, %v1259_v61  ;;  %v7028_v19 = vld [vmem:[%s9328_s5 + $0x60] ss:$16 sps:$4 sm:$0xff]  }
 0x329   :  { %7404 = vrsqrt.f32 %v1026_v49  ;;  %v7031_v30 = vld [vmem:[%s9328_s5 + $0x260] ss:$16 sps:$4 sm:$0xff]  }
 0x32b   :  { %3055 = vmatpush2.bf16.msra.mxu0 %v6284_v17  ;;  %3128 = vmatpush2.bf16.msra.mxu1 %v6412_v15 }
 0x32c   :  { %3056 = vmatprep.subr.bf16.mxu0 %v6277_v40  ;;  %3129 = vmatprep.subr.bf16.mxu1 %v6405_v55  ;;  %v7012_v55 = vld [vmem:[%s9328_s5 + $0xc4] ss:$16 sps:$4 sm:$0xff]  }
 0x32f   :  { %3057 = vmatpush2.bf16.msra.mxu0 %v6276_v57  ;;  %3130 = vmatpush2.bf16.msra.mxu1 %v6404_v45 }
 0x330   :  { %3058 = vmatprep.subr.bf16.mxu0 %v6269_v44  ;;  %3131 = vmatprep.subr.bf16.mxu1 %v6397_v9 }
 0x333   :  { %3059 = vmatpush2.bf16.msra.mxu0 %v6268_v60  ;;  %3132 = vmatpush2.bf16.msra.mxu1 %v6396_v33 }
 0x334   :  { %3060 = vmatprep.subr.bf16.mxu0 %v6261_v41  ;;  %3133 = vmatprep.subr.bf16.mxu1 %v6389_v26  ;;  %v7024_v41 = vld [vmem:[%s9328_s5 + $0x84] ss:$16 sps:$4 sm:$0xff]  }
 0x335   :  { %v7027_v26 = vld [vmem:[%s9328_s5 + $0x284] ss:$16 sps:$4 sm:$0xff]  }
 0x336   :  { %v7405_v56 = vpop.eup %7404 }
 0x337   :  { %3061 = vmatpush2.bf16.msra.mxu0 %v6260_v62  ;;  %3134 = vmatpush2.bf16.msra.mxu1 %v6388_v59 }
 0x338   :  { %3062 = vmatprep.subr.bf16.mxu0 %v6253_v46  ;;  %3135 = vmatprep.subr.bf16.mxu1 %v6381_v31  ;;  %v1032_v46 = vrot.slane %v7405_v56, %v7627_v10 }
 0x33a   :  { %v8271_v49 = vmul.f32 %v1032_v46, %v8052_v43  ;;  %v7037_v43 = vld [vmem:[%s9328_s5 + $0x240] ss:$16 sps:$4 sm:$0xff]   ;;  %v7063_v46 = vld [vmem:[%s9328_s5 + $0x3c4] ss:$16 sps:$4 sm:$0xff]  }
 0x33b   :  { %3063 = vmatpush2.bf16.msra.mxu0 %v6252_v5  ;;  %3136 = vmatpush2.bf16.msra.mxu1 %v6380_v35 }
 0x33c   :  { %3064 = vmatprep.subr.bf16.mxu0 %v6245_v47  ;;  %3137 = vmatprep.subr.bf16.mxu1 %v6373_v53  ;;  %v7036_v47 = vld [vmem:[%s9328_s5 + $0x44] ss:$16 sps:$4 sm:$0xff]  }
 0x33d   :  { %v7039_v53 = vld [vmem:[%s9328_s5 + $0x244] ss:$16 sps:$4 sm:$0xff]  }
 0x33f   :  { %3065 = vmatpush2.bf16.msra.mxu0 %v6244_v3  ;;  %3138 = vmatpush2.bf16.msra.mxu1 %v6372_v12 }
 0x340   :  { %3948 = vmatprep.subr.bf16.mxu0 %v7006_v0  ;;  %3989 = vmatprep.subr.bf16.mxu1 %v7009_v29  ;;  %v2630_v17 = vpop.f32.mrf.mxu0  ;;  %v2703_v15 = vpop.f32.mrf.mxu1  ;;  %v7034_v29 = vld [vmem:[%s9328_s5 + $0x40] ss:$16 sps:$4 sm:$0xff]  }
 0x341   :  { %v8187_v40 = vadd.f32 %v2703_v15, %v2630_v17  ;;  %v1051_v17 = vrot.slane %v8271_v49, %v7636_v14 }
 0x342   :  { %3067 = vmatmul.mubr.bf16.vlgmr.msra.gmra.mxu0 %v8004_v42  ;;  %3140 = vmatmul.mubr.bf16.vlgmr.msra.gmra.mxu1 %v8006_v37  ;;  %v8197_v18 = vpop.f32.mrf.mxu0  ;;  %v8199_v51 = vpop.f32.mrf.mxu1  ;;  %v7013_v42 = vld [vmem:[%s9328_s5 + $0x2c0] ss:$16 sps:$4 sm:$0xff]  }
 0x343   :  { %3076 = vmatprep.mubr.bf16.mxu0 %v8054_v24  ;;  %3149 = vmatprep.mubr.bf16.mxu1 %v8056_v6  ;;  %v7018_v24 = vld [vmem:[%s9328_s5 + $0xa4] ss:$16 sps:$4 sm:$0xff]  }
 0x344   :  { %3949 = vmatpush1.bf16.msra.mxu0 %v7004_v21  ;;  %3990 = vmatpush1.bf16.msra.mxu1 %v7007_v20  ;;  %v2634_v57 = vpop.f32.mrf.mxu0  ;;  %v2707_v37 = vpop.f32.mrf.mxu1  ;;  %v7021_v6 = vld [vmem:[%s9328_s5 + $0x2a4] ss:$16 sps:$4 sm:$0xff]   ;;  %v1043_v20 = vrot.slane %v8271_v49, %v7634_v13 }
 0x345   :  { %3950 = vmatprep.subr.bf16.mxu0 %v7012_v55  ;;  %3991 = vmatprep.subr.bf16.mxu1 %v7015_v25  ;;  %v8209_v45 = vadd.f32 %v2707_v37, %v2634_v57 }
 0x346   :  { %v2636_v44 = vpop.f32.mrf.mxu0  ;;  %v2709_v9 = vpop.f32.mrf.mxu1 }
 0x347   :  { %v8217_v27 = vadd.f32 %v2709_v9, %v2636_v44  ;;  %v8309_v44 = vpack.c.bf16 %v1051_v17, %v1051_v17  ;;  %v7048_v9 = vld [vmem:[%s9328_s5 + $0x4] ss:$16 sps:$4 sm:$0xff]   ;;  %v7085_v17 = vld [vmem:[%s9328_s5 + $0x340] ss:$16 sps:$4 sm:$0xff]  }
 0x348   :  { %3951 = vmatpush1.bf16.msra.mxu0 %v7010_v54  ;;  %3992 = vmatpush1.bf16.msra.mxu1 %v7013_v42  ;;  %v2640_v8 = vpop.f32.mrf.mxu0  ;;  %v2713_v60 = vpop.f32.mrf.mxu1  ;;  %v7040_v54 = vld [vmem:[%s9328_s5 + $0x20] ss:$16 sps:$4 sm:$0xff]  }
 0x349   :  { %3952 = vmatprep.subr.bf16.mxu0 %v7018_v24  ;;  %3993 = vmatprep.subr.bf16.mxu1 %v7021_v6  ;;  %v8225_v33 = vadd.f32 %v2713_v60, %v2640_v8  ;;  %v7043_v42 = vld [vmem:[%s9328_s5 + $0x220] ss:$16 sps:$4 sm:$0xff]   ;;  %v8307_v6 = vpack.c.bf16 %v1043_v20, %v1043_v20 }
 0x34a   :  { %3077 = vmatmul.mubr.bf16.gmra.mxu0 %v8062_v16  ;;  %3150 = vmatmul.mubr.bf16.gmra.mxu1 %v8064_v22  ;;  %v2642_v1 = vpop.f32.mrf.mxu0  ;;  %v2715_v23 = vpop.f32.mrf.mxu1  ;;  %v7025_v16 = vld [vmem:[%s9328_s5 + $0x280] ss:$16 sps:$4 sm:$0xff]  }
 0x34b   :  { %3086 = vmatprep.mubr.bf16.mxu0 %v8105_v32  ;;  %3159 = vmatprep.mubr.bf16.mxu1 %v8107_v63  ;;  %v8237_v34 = vadd.f32 %v2715_v23, %v2642_v1  ;;  %v7030_v32 = vld [vmem:[%s9328_s5 + $0x64] ss:$16 sps:$4 sm:$0xff]   ;;  %v7082_v20 = vld [vmem:[%s9328_s5 + $0x140] ss:$16 sps:$4 sm:$0xff]  }
 0x34c   :  { %3953 = vmatpush1.bf16.msra.mxu0 %v7016_v52  ;;  %3994 = vmatpush1.bf16.msra.mxu1 %v7019_v4  ;;  %v2644_v62 = vpop.f32.mrf.mxu0  ;;  %v2717_v22 = vpop.f32.mrf.mxu1  ;;  %v7033_v63 = vld [vmem:[%s9328_s5 + $0x264] ss:$16 sps:$4 sm:$0xff]  }
 0x34d   :  { %3954 = vmatprep.subr.bf16.mxu0 %v7024_v41  ;;  %3995 = vmatprep.subr.bf16.mxu1 %v7027_v26  ;;  %v8245_v59 = vadd.f32 %v2717_v22, %v2644_v62  ;;  %v7051_v52 = vld [vmem:[%s9328_s5 + $0x204] ss:$16 sps:$4 sm:$0xff]   ;;  %v7046_v41 = vld [vmem:[%s9328_s5] ss:$16 sps:$4 sm:$0xff]  }
 0x34e   :  { %v2646_v31 = vpop.f32.mrf.mxu0  ;;  %v2719_v36 = vpop.f32.mrf.mxu1  ;;  %v7054_v1 = vld [vmem:[%s9328_s5 + $0x1e4] ss:$16 sps:$4 sm:$0xff]   ;;  %v7052_v22 = vld [vmem:[%s9328_s5 + $0x1e0] ss:$16 sps:$4 sm:$0xff]  }
 0x34f   :  { %v8254_v50 = vadd.f32 %v2719_v36, %v2646_v31  ;;  %v7057_v23 = vld [vmem:[%s9328_s5 + $0x3e4] ss:$16 sps:$4 sm:$0xff]   ;;  %v7058_v31 = vld [vmem:[%s9328_s5 + $0x1c0] ss:$16 sps:$4 sm:$0xff]  }
 0x350   :  { %3955 = vmatpush1.bf16.msra.mxu0 %v7022_v2  ;;  %3996 = vmatpush1.bf16.msra.mxu1 %v7025_v16  ;;  %v2650_v61 = vpop.f32.mrf.mxu0  ;;  %v2723_v5 = vpop.f32.mrf.mxu1  ;;  %v7061_v36 = vld [vmem:[%s9328_s5 + $0x3c0] ss:$16 sps:$4 sm:$0xff]  }
 0x351   :  { %3956 = vmatprep.subr.bf16.mxu0 %v7030_v32  ;;  %3997 = vmatprep.subr.bf16.mxu1 %v7033_v63  ;;  %v8262_v35 = vadd.f32 %v2723_v5, %v2650_v61  ;;  %v7055_v32 = vld [vmem:[%s9328_s5 + $0x3e0] ss:$16 sps:$4 sm:$0xff]   ;;  %v7060_v63 = vld [vmem:[%s9328_s5 + $0x1c4] ss:$16 sps:$4 sm:$0xff]  }
 0x352   :  { %3087 = vmatmul.mubr.bf16.gmra.mxu0 %v8109_v39  ;;  %3160 = vmatmul.mubr.bf16.gmra.mxu1 %v8112_v48  ;;  %v2652_v3 = vpop.f32.mrf.mxu0  ;;  %v2725_v12 = vpop.f32.mrf.mxu1  ;;  %v7064_v61 = vld [vmem:[%s9328_s5 + $0x1a0] ss:$16 sps:$4 sm:$0xff]  }
 0x353   :  { %3096 = vmatprep.mubr.bf16.mxu0 %v8129_v28  ;;  %3169 = vmatprep.mubr.bf16.mxu1 %v8131_v7  ;;  %v8277_v0 = vadd.f32 %v2725_v12, %v2652_v3  ;;  %v7042_v28 = vld [vmem:[%s9328_s5 + $0x24] ss:$16 sps:$4 sm:$0xff]   ;;  %v7067_v5 = vld [vmem:[%s9328_s5 + $0x3a0] ss:$16 sps:$4 sm:$0xff]  }
 0x354   :  { %3957 = vmatpush1.bf16.msra.mxu0 %v7028_v19  ;;  %3998 = vmatpush1.bf16.msra.mxu1 %v7031_v30  ;;  %v2654_v39 = vpop.f32.mrf.mxu0  ;;  %v2727_v48 = vpop.f32.mrf.mxu1  ;;  %v7045_v7 = vld [vmem:[%s9328_s5 + $0x224] ss:$16 sps:$4 sm:$0xff]   ;;  %v7070_v3 = vld [vmem:[%s9328_s5 + $0x180] ss:$16 sps:$4 sm:$0xff]  }
 0x355   :  { %3958 = vmatprep.subr.bf16.mxu0 %v7036_v47  ;;  %3999 = vmatprep.subr.bf16.mxu1 %v7039_v53  ;;  %v8285_v21 = vadd.f32 %v2727_v48, %v2654_v39  ;;  %v7066_v19 = vld [vmem:[%s9328_s5 + $0x1a4] ss:$16 sps:$4 sm:$0xff]   ;;  %v7073_v12 = vld [vmem:[%s9328_s5 + $0x380] ss:$16 sps:$4 sm:$0xff]  }
 0x356   :  { %v2656_v15 = vpop.f32.mrf.mxu0  ;;  %v2729_v55 = vpop.f32.mrf.mxu1  ;;  %v7069_v30 = vld [vmem:[%s9328_s5 + $0x3a4] ss:$16 sps:$4 sm:$0xff]   ;;  %v7076_v39 = vld [vmem:[%s9328_s5 + $0x160] ss:$16 sps:$4 sm:$0xff]  }
 0x357   :  { %v8297_v25 = vadd.f32 %v2729_v55, %v2656_v15  ;;  %v7072_v47 = vld [vmem:[%s9328_s5 + $0x184] ss:$16 sps:$4 sm:$0xff]   ;;  %v7079_v48 = vld [vmem:[%s9328_s5 + $0x360] ss:$16 sps:$4 sm:$0xff]  }
 0x358   :  { %3959 = vmatpush1.bf16.msra.mxu0 %v7034_v29  ;;  %4000 = vmatpush1.bf16.msra.mxu1 %v7037_v43  ;;  %v2660_v57 = vpop.f32.mrf.mxu0  ;;  %v2733_v37 = vpop.f32.mrf.mxu1  ;;  %v7075_v53 = vld [vmem:[%s9328_s5 + $0x384] ss:$16 sps:$4 sm:$0xff]  }
 0x359   :  { %3960 = vmatprep.subr.bf16.mxu0 %v7042_v28  ;;  %4001 = vmatprep.subr.bf16.mxu1 %v7045_v7  ;;  %v8305_v24 = vadd.f32 %v2733_v37, %v2660_v57  ;;  %v7078_v29 = vld [vmem:[%s9328_s5 + $0x164] ss:$16 sps:$4 sm:$0xff]  }
 0x35a   :  { %3097 = vmatmul.mubr.bf16.gmra.mxu0 %v8133_v58  ;;  %3170 = vmatmul.mubr.bf16.gmra.mxu1 %v8135_v38  ;;  %v2662_v4 = vpop.f32.mrf.mxu0  ;;  %v2735_v8 = vpop.f32.mrf.mxu1  ;;  %v7049_v58 = vld [vmem:[%s9328_s5 + $0x200] ss:$16 sps:$4 sm:$0xff]   ;;  %v7081_v43 = vld [vmem:[%s9328_s5 + $0x364] ss:$16 sps:$4 sm:$0xff]  }
 0x35b   :  { %3980 = vmatprep.mubr.bf16.mxu0 %v8307_v6  ;;  %4021 = vmatprep.mubr.bf16.mxu1 %v8309_v44  ;;  %v8321_v60 = vadd.f32 %v2735_v8, %v2662_v4  ;;  %v7084_v28 = vld [vmem:[%s9328_s5 + $0x144] ss:$16 sps:$4 sm:$0xff]   ;;  %v1039_v4 = vrot.slane %v8271_v49, %v7627_v10  ;;  %v1047_v8 = vrot.slane %v8271_v49, %v7629_v11 }
 0x35c   :  { %3961 = vmatpush1.bf16.msra.mxu0 %v7040_v54  ;;  %4002 = vmatpush1.bf16.msra.mxu1 %v7043_v42  ;;  %v2664_v26 = vpop.f32.mrf.mxu0  ;;  %v2737_v38 = vpop.f32.mrf.mxu1  ;;  %v7087_v7 = vld [vmem:[%s9328_s5 + $0x344] ss:$16 sps:$4 sm:$0xff]   ;;  %v7088_v54 = vld [vmem:[%s9328_s5 + $0x120] ss:$16 sps:$4 sm:$0xff]  }
 0x35d   :  { %3962 = vmatprep.subr.bf16.mxu0 %v7048_v9  ;;  %4003 = vmatprep.subr.bf16.mxu1 %v7051_v52  ;;  %v8329_v56 = vadd.f32 %v2737_v38, %v2664_v26  ;;  %v7090_v15 = vld [vmem:[%s9328_s5 + $0x124] ss:$16 sps:$4 sm:$0xff]   ;;  %v7091_v42 = vld [vmem:[%s9328_s5 + $0x320] ss:$16 sps:$4 sm:$0xff]   ;;  %v8446_v49 = vpack.c.bf16 %v1047_v8, %v1047_v8  ;;  %v7129_v8 = vld [vmem:[%s9328_s5 + $0x26c] ss:$16 sps:$4 sm:$0xff]  }
 0x35e   :  { %v2666_v2 = vpop.f32.mrf.mxu0  ;;  %v2739_v16 = vpop.f32.mrf.mxu1  ;;  %v7093_v55 = vld [vmem:[%s9328_s5 + $0x324] ss:$16 sps:$4 sm:$0xff]   ;;  %v7094_v9 = vld [vmem:[%s9328_s5 + $0x100] ss:$16 sps:$4 sm:$0xff]  }
 0x35f   :  { %v8337_v62 = vadd.f32 %v2739_v16, %v2666_v2  ;;  %v7096_v57 = vld [vmem:[%s9328_s5 + $0x104] ss:$16 sps:$4 sm:$0xff]   ;;  %v7097_v52 = vld [vmem:[%s9328_s5 + $0x300] ss:$16 sps:$4 sm:$0xff]   ;;  %v8444_v2 = vpack.c.bf16 %v1039_v4, %v1039_v4  ;;  %v7103_v16 = vld [vmem:[%s9328_s5 + $0x2e8] ss:$16 sps:$4 sm:$0xff]  }
 0x360   :  { %3963 = vmatpush1.bf16.msra.mxu0 %v7046_v41  ;;  %4004 = vmatpush1.bf16.msra.mxu1 %v7049_v58  ;;  %v7099_v37 = vld [vmem:[%s9328_s5 + $0x304] ss:$16 sps:$4 sm:$0xff]   ;;  %v7102_v41 = vld [vmem:[%s9328_s5 + $0xec] ss:$16 sps:$4 sm:$0xff]  }
 0x361   :  { %3964 = vmatprep.subr.bf16.mxu0 %v7054_v1  ;;  %4005 = vmatprep.subr.bf16.mxu1 %v7057_v23  ;;  %v7105_v58 = vld [vmem:[%s9328_s5 + $0x2ec] ss:$16 sps:$4 sm:$0xff]   ;;  %v7100_v1 = vld [vmem:[%s9328_s5 + $0xe8] ss:$16 sps:$4 sm:$0xff]  }
 0x364   :  { %3965 = vmatpush2.bf16.msra.mxu0 %v7052_v22  ;;  %4006 = vmatpush2.bf16.msra.mxu1 %v7055_v32 }
 0x365   :  { %3966 = vmatprep.subr.bf16.mxu0 %v7060_v63  ;;  %4007 = vmatprep.subr.bf16.mxu1 %v7063_v46  ;;  %v7108_v63 = vld [vmem:[%s9328_s5 + $0xcc] ss:$16 sps:$4 sm:$0xff]  }
 0x366   :  { %v7111_v46 = vld [vmem:[%s9328_s5 + $0x2cc] ss:$16 sps:$4 sm:$0xff]  }
 0x368   :  { %3967 = vmatpush2.bf16.msra.mxu0 %v7058_v31  ;;  %4008 = vmatpush2.bf16.msra.mxu1 %v7061_v36 }
 0x369   :  { %3968 = vmatprep.subr.bf16.mxu0 %v7066_v19  ;;  %4009 = vmatprep.subr.bf16.mxu1 %v7069_v30  ;;  %v7106_v30 = vld [vmem:[%s9328_s5 + $0xc8] ss:$16 sps:$4 sm:$0xff]  }
 0x36c   :  { %3969 = vmatpush2.bf16.msra.mxu0 %v7064_v61  ;;  %4010 = vmatpush2.bf16.msra.mxu1 %v7067_v5  ;;  %v7109_v5 = vld [vmem:[%s9328_s5 + $0x2c8] ss:$16 sps:$4 sm:$0xff]  }
 0x36d   :  { %3970 = vmatprep.subr.bf16.mxu0 %v7072_v47  ;;  %4011 = vmatprep.subr.bf16.mxu1 %v7075_v53  ;;  %v7114_v47 = vld [vmem:[%s9328_s5 + $0xac] ss:$16 sps:$4 sm:$0xff]  }
 0x370   :  { %3971 = vmatpush2.bf16.msra.mxu0 %v7070_v3  ;;  %4012 = vmatpush2.bf16.msra.mxu1 %v7073_v12  ;;  %v7117_v3 = vld [vmem:[%s9328_s5 + $0x2ac] ss:$16 sps:$4 sm:$0xff]  }
 0x371   :  { %3972 = vmatprep.subr.bf16.mxu0 %v7078_v29  ;;  %4013 = vmatprep.subr.bf16.mxu1 %v7081_v43  ;;  %v7112_v43 = vld [vmem:[%s9328_s5 + $0xa8] ss:$16 sps:$4 sm:$0xff]  }
 0x374   :  { %3973 = vmatpush2.bf16.msra.mxu0 %v7076_v39  ;;  %4014 = vmatpush2.bf16.msra.mxu1 %v7079_v48  ;;  %v7115_v48 = vld [vmem:[%s9328_s5 + $0x2a8] ss:$16 sps:$4 sm:$0xff]  }
 0x375   :  { %3974 = vmatprep.subr.bf16.mxu0 %v7084_v28  ;;  %4015 = vmatprep.subr.bf16.mxu1 %v7087_v7  ;;  %v7120_v28 = vld [vmem:[%s9328_s5 + $0x8c] ss:$16 sps:$4 sm:$0xff]  }
 0x378   :  { %3975 = vmatpush2.bf16.msra.mxu0 %v7082_v20  ;;  %4016 = vmatpush2.bf16.msra.mxu1 %v7085_v17  ;;  %v7123_v17 = vld [vmem:[%s9328_s5 + $0x28c] ss:$16 sps:$4 sm:$0xff]  }
 0x379   :  { %3976 = vmatprep.subr.bf16.mxu0 %v7090_v15  ;;  %4017 = vmatprep.subr.bf16.mxu1 %v7093_v55 }
 0x37c   :  { %3977 = vmatpush2.bf16.msra.mxu0 %v7088_v54  ;;  %4018 = vmatpush2.bf16.msra.mxu1 %v7091_v42  ;;  %v7118_v42 = vld [vmem:[%s9328_s5 + $0x88] ss:$16 sps:$4 sm:$0xff]  }
 0x37d   :  { %3978 = vmatprep.subr.bf16.mxu0 %v7096_v57  ;;  %4019 = vmatprep.subr.bf16.mxu1 %v7099_v37  ;;  %v7121_v37 = vld [vmem:[%s9328_s5 + $0x288] ss:$16 sps:$4 sm:$0xff]  }
 0x380   :  { %3979 = vmatpush2.bf16.msra.mxu0 %v7094_v9  ;;  %4020 = vmatpush2.bf16.msra.mxu1 %v7097_v52  ;;  %v2776_v26 = vpop.f32.mrf.mxu0  ;;  %v2849_v38 = vpop.f32.mrf.mxu1  ;;  %v7126_v9 = vld [vmem:[%s9328_s5 + $0x6c] ss:$16 sps:$4 sm:$0xff]  }
 0x381   :  { %v8442_v23 = vadd.f32 %v2849_v38, %v2776_v26  ;;  %4030 = vmatprep.subr.bf16.mxu0 %v7102_v41  ;;  %4071 = vmatprep.subr.bf16.mxu1 %v7105_v58  ;;  %v7124_v38 = vld [vmem:[%s9328_s5 + $0x68] ss:$16 sps:$4 sm:$0xff]  }
 0x382   :  { %v2778_v22 = vpop.f32.mrf.mxu0  ;;  %v2851_v32 = vpop.f32.mrf.mxu1 }
 0x383   :  { %3981 = vmatmul.mubr.bf16.vlgmr.msra.gmra.mxu0 %v8444_v2  ;;  %4022 = vmatmul.mubr.bf16.vlgmr.msra.gmra.mxu1 %v8446_v49  ;;  %v8459_v31 = vadd.f32 %v2851_v32, %v2778_v22  ;;  %v7132_v22 = vld [vmem:[%s9328_s5 + $0x4c] ss:$16 sps:$4 sm:$0xff]  }
 0x384   :  { %4031 = vmatpush1.bf16.msra.mxu0 %v7100_v1  ;;  %4062 = vmatprep.mubr.bf16.mxu0 %v8307_v6  ;;  %v2780_v36 = vpop.f32.mrf.mxu0  ;;  %v2853_v19 = vpop.f32.mrf.mxu1 }
 0x385   :  { %4072 = vmatpush1.bf16.msra.mxu1 %v7103_v16  ;;  %4103 = vmatprep.mubr.bf16.mxu1 %v8309_v44  ;;  %v8466_v61 = vadd.f32 %v2853_v19, %v2780_v36  ;;  %v7127_v16 = vld [vmem:[%s9328_s5 + $0x268] ss:$16 sps:$4 sm:$0xff]  }
 0x386   :  { %4032 = vmatprep.subr.bf16.mxu0 %v7108_v63  ;;  %4073 = vmatprep.subr.bf16.mxu1 %v7111_v46  ;;  %v2782_v6 = vpop.f32.mrf.mxu0  ;;  %v2855_v53 = vpop.f32.mrf.mxu1  ;;  %v7135_v46 = vld [vmem:[%s9328_s5 + $0x24c] ss:$16 sps:$4 sm:$0xff]  }
 0x387   :  { %v8477_v12 = vadd.f32 %v2855_v53, %v2782_v6  ;;  %v7133_v6 = vld [vmem:[%s9328_s5 + $0x248] ss:$16 sps:$4 sm:$0xff]   ;;  %v7138_v53 = vld [vmem:[%s9328_s5 + $0x2c] ss:$16 sps:$4 sm:$0xff]  }
 0x388   :  { %4033 = vmatpush1.bf16.msra.mxu0 %v7106_v30  ;;  %v2786_v44 = vpop.f32.mrf.mxu0  ;;  %v2859_v29 = vpop.f32.mrf.mxu1 }
 0x389   :  { %4074 = vmatpush1.bf16.msra.mxu1 %v7109_v5  ;;  %v8482_v39 = vadd.f32 %v2859_v29, %v2786_v44  ;;  %4034 = vmatprep.subr.bf16.mxu0 %v7114_v47  ;;  %v7130_v5 = vld [vmem:[%s9328_s5 + $0x48] ss:$16 sps:$4 sm:$0xff]   ;;  %v7141_v29 = vld [vmem:[%s9328_s5 + $0x22c] ss:$16 sps:$4 sm:$0xff]  }
 0x38a   :  { %4075 = vmatprep.subr.bf16.mxu1 %v7117_v3  ;;  %v2788_v7 = vpop.f32.mrf.mxu0  ;;  %v2861_v20 = vpop.f32.mrf.mxu1 }
 0x38b   :  { %v8493_v15 = vadd.f32 %v2861_v20, %v2788_v7  ;;  %v7136_v7 = vld [vmem:[%s9328_s5 + $0x28] ss:$16 sps:$4 sm:$0xff]  }
 0x38c   :  { %4035 = vmatpush1.bf16.msra.mxu0 %v7112_v43  ;;  %v2790_v55 = vpop.f32.mrf.mxu0  ;;  %v2863_v54 = vpop.f32.mrf.mxu1 }
 0x38d   :  { %4076 = vmatpush1.bf16.msra.mxu1 %v7115_v48  ;;  %v8498_v57 = vadd.f32 %v2863_v54, %v2790_v55  ;;  %4036 = vmatprep.subr.bf16.mxu0 %v7120_v28  ;;  %v7144_v55 = vld [vmem:[%s9328_s5 + $0xc] ss:$16 sps:$4 sm:$0xff]  }
 0x38e   :  { %4077 = vmatprep.subr.bf16.mxu1 %v7123_v17  ;;  %v2792_v52 = vpop.f32.mrf.mxu0  ;;  %v2865_v4 = vpop.f32.mrf.mxu1  ;;  %v7139_v17 = vld [vmem:[%s9328_s5 + $0x228] ss:$16 sps:$4 sm:$0xff]  }
 0x38f   :  { %v8509_v41 = vadd.f32 %v2865_v4, %v2792_v52 }
 0x390   :  { %4037 = vmatpush1.bf16.msra.mxu0 %v7118_v42  ;;  %v2796_v58 = vpop.f32.mrf.mxu0  ;;  %v2869_v26 = vpop.f32.mrf.mxu1 }
 0x391   :  { %4078 = vmatpush1.bf16.msra.mxu1 %v7121_v37  ;;  %v8514_v1 = vadd.f32 %v2869_v26, %v2796_v58  ;;  %4038 = vmatprep.subr.bf16.mxu0 %v7126_v9  ;;  %v7147_v37 = vld [vmem:[%s9328_s5 + $0x20c] ss:$16 sps:$4 sm:$0xff]   ;;  %v7145_v26 = vld [vmem:[%s9328_s5 + $0x208] ss:$16 sps:$4 sm:$0xff]  }
 0x392   :  { %4079 = vmatprep.subr.bf16.mxu1 %v7129_v8  ;;  %v2798_v32 = vpop.f32.mrf.mxu0  ;;  %v2871_v63 = vpop.f32.mrf.mxu1  ;;  %v7142_v8 = vld [vmem:[%s9328_s5 + $0x8] ss:$16 sps:$4 sm:$0xff]  }
 0x393   :  { %v8525_v36 = vadd.f32 %v2871_v63, %v2798_v32  ;;  %v7153_v32 = vld [vmem:[%s9328_s5 + $0x3ec] ss:$16 sps:$4 sm:$0xff]  }
 0x394   :  { %4039 = vmatpush1.bf16.msra.mxu0 %v7124_v38  ;;  %v2800_v19 = vpop.f32.mrf.mxu0  ;;  %v2873_v30 = vpop.f32.mrf.mxu1  ;;  %v7150_v38 = vld [vmem:[%s9328_s5 + $0x1ec] ss:$16 sps:$4 sm:$0xff]  }
 0x395   :  { %4080 = vmatpush1.bf16.msra.mxu1 %v7127_v16  ;;  %v8530_v47 = vadd.f32 %v2873_v30, %v2800_v19  ;;  %4040 = vmatprep.subr.bf16.mxu0 %v7132_v22  ;;  %v7151_v19 = vld [vmem:[%s9328_s5 + $0x3e8] ss:$16 sps:$4 sm:$0xff]   ;;  %v7156_v30 = vld [vmem:[%s9328_s5 + $0x1cc] ss:$16 sps:$4 sm:$0xff]  }
 0x396   :  { %4081 = vmatprep.subr.bf16.mxu1 %v7135_v46  ;;  %v2802_v3 = vpop.f32.mrf.mxu0  ;;  %v2875_v44 = vpop.f32.mrf.mxu1  ;;  %v7148_v46 = vld [vmem:[%s9328_s5 + $0x1e8] ss:$16 sps:$4 sm:$0xff]  }
 0x397   :  { %v8541_v43 = vadd.f32 %v2875_v44, %v2802_v3  ;;  %v7162_v3 = vld [vmem:[%s9328_s5 + $0x1ac] ss:$16 sps:$4 sm:$0xff]  }
 0x398   :  { %4041 = vmatpush1.bf16.msra.mxu0 %v7130_v5  ;;  %v2806_v48 = vpop.f32.mrf.mxu0  ;;  %v2879_v28 = vpop.f32.mrf.mxu1  ;;  %v7159_v5 = vld [vmem:[%s9328_s5 + $0x3cc] ss:$16 sps:$4 sm:$0xff]  }
 0x399   :  { %4082 = vmatpush1.bf16.msra.mxu1 %v7133_v6  ;;  %v8546_v20 = vadd.f32 %v2879_v28, %v2806_v48  ;;  %4042 = vmatprep.subr.bf16.mxu0 %v7138_v53  ;;  %v7154_v6 = vld [vmem:[%s9328_s5 + $0x1c8] ss:$16 sps:$4 sm:$0xff]   ;;  %v7165_v44 = vld [vmem:[%s9328_s5 + $0x3ac] ss:$16 sps:$4 sm:$0xff]  }
 0x39a   :  { %4083 = vmatprep.subr.bf16.mxu1 %v7141_v29  ;;  %v2808_v54 = vpop.f32.mrf.mxu0  ;;  %v2881_v42 = vpop.f32.mrf.mxu1  ;;  %v7157_v53 = vld [vmem:[%s9328_s5 + $0x3c8] ss:$16 sps:$4 sm:$0xff]   ;;  %v7168_v28 = vld [vmem:[%s9328_s5 + $0x18c] ss:$16 sps:$4 sm:$0xff]  }
 0x39b   :  { %v8557_v9 = vadd.f32 %v2881_v42, %v2808_v54  ;;  %v7160_v29 = vld [vmem:[%s9328_s5 + $0x1a8] ss:$16 sps:$4 sm:$0xff]   ;;  %v7174_v54 = vld [vmem:[%s9328_s5 + $0x16c] ss:$16 sps:$4 sm:$0xff]  }
 0x39c   :  { %4043 = vmatpush1.bf16.msra.mxu0 %v7136_v7  ;;  %v2810_v52 = vpop.f32.mrf.mxu0  ;;  %v2883_v4 = vpop.f32.mrf.mxu1  ;;  %v7163_v48 = vld [vmem:[%s9328_s5 + $0x3a8] ss:$16 sps:$4 sm:$0xff]   ;;  %v7171_v7 = vld [vmem:[%s9328_s5 + $0x38c] ss:$16 sps:$4 sm:$0xff]  }
 0x39d   :  { %4084 = vmatpush1.bf16.msra.mxu1 %v7139_v17  ;;  %v8562_v58 = vadd.f32 %v2883_v4, %v2810_v52  ;;  %4044 = vmatprep.subr.bf16.mxu0 %v7144_v55  ;;  %v7166_v17 = vld [vmem:[%s9328_s5 + $0x188] ss:$16 sps:$4 sm:$0xff]   ;;  %v7177_v42 = vld [vmem:[%s9328_s5 + $0x36c] ss:$16 sps:$4 sm:$0xff]  }
 0x39e   :  { %4085 = vmatprep.subr.bf16.mxu1 %v7147_v37  ;;  %v2812_v16 = vpop.f32.mrf.mxu0  ;;  %v2885_v22 = vpop.f32.mrf.mxu1  ;;  %v7169_v55 = vld [vmem:[%s9328_s5 + $0x388] ss:$16 sps:$4 sm:$0xff]   ;;  %v7180_v4 = vld [vmem:[%s9328_s5 + $0x14c] ss:$16 sps:$4 sm:$0xff]  }
 0x39f   :  { %v8573_v63 = vadd.f32 %v2885_v22, %v2812_v16  ;;  %v7172_v37 = vld [vmem:[%s9328_s5 + $0x168] ss:$16 sps:$4 sm:$0xff]   ;;  %v7186_v16 = vld [vmem:[%s9328_s5 + $0x12c] ss:$16 sps:$4 sm:$0xff]  }
 0x3a0   :  { %4045 = vmatpush1.bf16.msra.mxu0 %v7142_v8  ;;  %v7175_v52 = vld [vmem:[%s9328_s5 + $0x368] ss:$16 sps:$4 sm:$0xff]   ;;  %v7183_v8 = vld [vmem:[%s9328_s5 + $0x34c] ss:$16 sps:$4 sm:$0xff]  }
 0x3a1   :  { %4086 = vmatpush1.bf16.msra.mxu1 %v7145_v26  ;;  %4046 = vmatprep.subr.bf16.mxu0 %v7150_v38  ;;  %v7178_v26 = vld [vmem:[%s9328_s5 + $0x148] ss:$16 sps:$4 sm:$0xff]   ;;  %v7189_v22 = vld [vmem:[%s9328_s5 + $0x32c] ss:$16 sps:$4 sm:$0xff]  }
 0x3a2   :  { %4087 = vmatprep.subr.bf16.mxu1 %v7153_v32  ;;  %v7181_v38 = vld [vmem:[%s9328_s5 + $0x348] ss:$16 sps:$4 sm:$0xff]  }
 0x3a3   :  { %v7184_v32 = vld [vmem:[%s9328_s5 + $0x128] ss:$16 sps:$4 sm:$0xff]  }
 0x3a4   :  { %4047 = vmatpush2.bf16.msra.mxu0 %v7148_v46  ;;  %v7187_v46 = vld [vmem:[%s9328_s5 + $0x328] ss:$16 sps:$4 sm:$0xff]  }
 0x3a5   :  { %4088 = vmatpush2.bf16.msra.mxu1 %v7151_v19  ;;  %4048 = vmatprep.subr.bf16.mxu0 %v7156_v30  ;;  %v7192_v19 = vld [vmem:[%s9328_s5 + $0x10c] ss:$16 sps:$4 sm:$0xff]  }
 0x3a6   :  { %4089 = vmatprep.subr.bf16.mxu1 %v7159_v5  ;;  %v7195_v30 = vld [vmem:[%s9328_s5 + $0x30c] ss:$16 sps:$4 sm:$0xff]   ;;  %v7190_v5 = vld [vmem:[%s9328_s5 + $0x108] ss:$16 sps:$4 sm:$0xff]  }
 0x3a8   :  { %4049 = vmatpush2.bf16.msra.mxu0 %v7154_v6  ;;  %v7193_v6 = vld [vmem:[%s9328_s5 + $0x308] ss:$16 sps:$4 sm:$0xff]   ;;  %s6091_s5 = sshll.u32 %s7543_s6, 4  ;;  %s6092_s5 = int_to_ptr.vmem [resolvable:$true] %s6091_s5 }
 0x3a9   :  { %4090 = vmatpush2.bf16.msra.mxu1 %v7157_v53  ;;  %4050 = vmatprep.subr.bf16.mxu0 %v7162_v3  ;;  %v4191_v53 = vld [vmem:[%s9331_s8 + $0xf8] sm:$0xff]  ;;  %s7504_s2 = scalar_lea.vmem %s6092_s5, 16  ;;  %s7508_s24 = scalar_lea.vmem %s6092_s5, 32 }
 0x3aa   :  { %4091 = vmatprep.subr.bf16.mxu1 %v7165_v44  ;;  %p7505_p6 = scmp.ne.s32.totalorder %s6092_s5, %s7504_s2  ;;  %p7509_p7 = scmp.lt.s32.totalorder %s6092_s5, %s6092_s5 }
 0x3ab   :  { %p7510_p8 = scmp.lt.s32.totalorder %s7508_s24, %s7504_s2 }
 0x3ac   :  { %4051 = vmatpush2.bf16.msra.mxu0 %v7160_v29  ;;  %v4175_v29 = vld [vmem:[%s9331_s8 + $0x78] sm:$0xff] }
 0x3ad   :  { %4092 = vmatpush2.bf16.msra.mxu1 %v7163_v48  ;;  %4052 = vmatprep.subr.bf16.mxu0 %v7168_v28  ;;  %v4190_v28 = vld [vmem:[%s9331_s8 + $0xf0] sm:$0xff]  ;;  %p7511_p9 = por %p7510_p8, %p7509_p7 }
 0x3ae   :  { %4093 = vmatprep.subr.bf16.mxu1 %v7171_v7 }
 0x3af   :  { %p7512_p10 = pnand %p7511_p9, %p7505_p6 }
 0x3b0   :  { %4053 = vmatpush2.bf16.msra.mxu0 %v7166_v17 }
 0x3b1   :  { %4094 = vmatpush2.bf16.msra.mxu1 %v7169_v55  ;;  %4054 = vmatprep.subr.bf16.mxu0 %v7174_v54  ;;  %v4174_v55 = vld [vmem:[%s9331_s8 + $0x70] sm:$0xff] }
 0x3b2   :  { %4095 = vmatprep.subr.bf16.mxu1 %v7177_v42  ;;  %v4189_v42 = vld [vmem:[%s9331_s8 + $0xe8] sm:$0xff] }
 0x3b4   :  { %4055 = vmatpush2.bf16.msra.mxu0 %v7172_v37 }
 0x3b5   :  { %4096 = vmatpush2.bf16.msra.mxu1 %v7175_v52  ;;  %4056 = vmatprep.subr.bf16.mxu0 %v7180_v4 }
 0x3b6   :  { %4097 = vmatprep.subr.bf16.mxu1 %v7183_v8 }
 0x3b8   :  { %4057 = vmatpush2.bf16.msra.mxu0 %v7178_v26 }
 0x3b9   :  { %4098 = vmatpush2.bf16.msra.mxu1 %v7181_v38  ;;  %4058 = vmatprep.subr.bf16.mxu0 %v7186_v16  ;;  %v4172_v38 = vld [vmem:[%s9331_s8 + $0x60] sm:$0xff] }
 0x3ba   :  { %4099 = vmatprep.subr.bf16.mxu1 %v7189_v22  ;;  %v4187_v22 = vld [vmem:[%s9331_s8 + $0xd8] sm:$0xff] }
 0x3bc   :  { %4059 = vmatpush2.bf16.msra.mxu0 %v7184_v32 }
 0x3bd   :  { %4100 = vmatpush2.bf16.msra.mxu1 %v7187_v46  ;;  %4060 = vmatprep.subr.bf16.mxu0 %v7192_v19  ;;  %v4171_v19 = vld [vmem:[%s9331_s8 + $0x58] sm:$0xff] }
 0x3be   :  { %4101 = vmatprep.subr.bf16.mxu1 %v7195_v30 }
 0x3c0   :  { %4061 = vmatpush2.bf16.msra.mxu0 %v7190_v5  ;;  %v4186_v5 = vld [vmem:[%s9331_s8 + $0xd0] sm:$0xff] }
 0x3c1   :  { %4102 = vmatpush2.bf16.msra.mxu1 %v7193_v6  ;;  %v2922_v3 = vpop.f32.mrf.mxu0  ;;  %v2995_v44 = vpop.f32.mrf.mxu1  ;;  %6702 = vmatprep.subr.mxu0 %v4191_v53 }
 0x3c2   :  { %v8671_v48 = vadd.f32 %v2995_v44, %v2922_v3  ;;  %v4170_v3 = vld [vmem:[%s9331_s8 + $0x50] sm:$0xff] }
 0x3c3   :  { %4063 = vmatmul.mubr.bf16.vlgmr.msra.gmra.mxu0 %v8444_v2  ;;  %v2924_v7 = vpop.f32.mrf.mxu0  ;;  %v2997_v17 = vpop.f32.mrf.mxu1  ;;  %v4173_v2 = vld [vmem:[%s9331_s8 + $0x68] sm:$0xff] }
 0x3c4   :  { %4104 = vmatmul.mubr.bf16.vlgmr.msra.gmra.mxu1 %v8446_v49  ;;  %v8681_v54 = vadd.f32 %v2997_v17, %v2924_v7  ;;  %6703 = vmatpush3.msra.mxu0 %v4175_v29  ;;  %v4188_v49 = vld [vmem:[%s9331_s8 + $0xe0] sm:$0xff]  ;;  %v4185_v29 = vld [vmem:[%s9331_s8 + $0xc8] sm:$0xff] }
 0x3c5   :  { %v2926_v37 = vpop.f32.mrf.mxu0  ;;  %v2999_v52 = vpop.f32.mrf.mxu1  ;;  %6704 = vmatprep.subr.mxu0 %v4190_v28  ;;  %v4169_v17 = vld [vmem:[%s9331_s8 + $0x48] sm:$0xff] }
 0x3c6   :  { %v8689_v4 = vadd.f32 %v2999_v52, %v2926_v37  ;;  %6705 = vmatpush3.msra.mxu0 %v4174_v55 }
 0x3c7   :  { %v2928_v8 = vpop.f32.mrf.mxu0  ;;  %v3001_v26 = vpop.f32.mrf.mxu1  ;;  %6706 = vmatprep.subr.mxu0 %v4189_v42  ;;  %v4184_v42 = vld [vmem:[%s9331_s8 + $0xc0] sm:$0xff] }
 0x3c8   :  { %v8697_v16 = vadd.f32 %v3001_v26, %v2928_v8  ;;  %6707 = vmatpush3.msra.mxu0 %v4173_v2  ;;  %v4168_v2 = vld [vmem:[%s9331_s8 + $0x40] sm:$0xff]  ;;  %v4183_v8 = vld [vmem:[%s9331_s8 + $0xb8] sm:$0xff] }
 0x3c9   :  { %v2932_v32 = vpop.f32.mrf.mxu0  ;;  %v3005_v46 = vpop.f32.mrf.mxu1  ;;  %6708 = vmatprep.subr.mxu0 %v4188_v49 }
 0x3ca   :  { %v8705_v30 = vadd.f32 %v3005_v46, %v2932_v32  ;;  %6709 = vmatpush3.msra.mxu0 %v4172_v38  ;;  %v4182_v46 = vld [vmem:[%s9331_s8 + $0xb0] sm:$0xff] }
 0x3cb   :  { %v2934_v6 = vpop.f32.mrf.mxu0  ;;  %v3007_v53 = vpop.f32.mrf.mxu1  ;;  %6710 = vmatprep.subr.mxu0 %v4187_v22  ;;  %v4167_v22 = vld [vmem:[%s9331_s8 + $0x38] sm:$0xff] }
 0x3cc   :  { %v8713_v44 = vadd.f32 %v3007_v53, %v2934_v6  ;;  %6711 = vmatpush3.msra.mxu0 %v4171_v19  ;;  %v4166_v6 = vld [vmem:[%s9331_s8 + $0x30] sm:$0xff] }
 0x3cd   :  { %v2936_v28 = vpop.f32.mrf.mxu0  ;;  %v3009_v7 = vpop.f32.mrf.mxu1  ;;  %6712 = vmatprep.subr.mxu0 %v4186_v5 }
 0x3ce   :  { %v8721_v55 = vadd.f32 %v3009_v7, %v2936_v28  ;;  %6713 = vmatpush3.msra.mxu0 %v4170_v3  ;;  %v4181_v3 = vld [vmem:[%s9331_s8 + $0xa8] sm:$0xff] }
 0x3cf   :  { %v2938_v37 = vpop.f32.mrf.mxu0  ;;  %v3011_v52 = vpop.f32.mrf.mxu1  ;;  %6714 = vmatprep.subr.mxu0 %v4185_v29  ;;  %v4165_v7 = vld [vmem:[%s9331_s8 + $0x28] sm:$0xff] }
 0x3d0   :  { %9407 = vst [vmem:[#allocation50_spill] sm:$0xff] %v8721_v55  ;;  %v8729_v49 = vadd.f32 %v3011_v52, %v2938_v37  ;;  %6715 = vmatpush3.msra.mxu0 %v4169_v17 }
 0x3d1   :  { %v2942_v26 = vpop.f32.mrf.mxu0  ;;  %v3015_v38 = vpop.f32.mrf.mxu1  ;;  %6716 = vmatprep.subr.mxu0 %v4184_v42  ;;  %v4180_v42 = vld [vmem:[%s9331_s8 + $0xa0] sm:$0xff] }
 0x3d2   :  { %9408 = vst [vmem:[#allocation51_spill] sm:$0xff] %v8729_v49  ;;  %v8737_v32 = vadd.f32 %v3015_v38, %v2942_v26  ;;  %6717 = vmatpush3.msra.mxu0 %v4168_v2  ;;  %v4164_v2 = vld [vmem:[%s9331_s8 + $0x20] sm:$0xff]  ;;  %v4179_v26 = vld [vmem:[%s9331_s8 + $0x98] sm:$0xff] }
 0x3d3   :  { %v2944_v19 = vpop.f32.mrf.mxu0  ;;  %v3017_v5 = vpop.f32.mrf.mxu1  ;;  %6718 = vmatprep.subr.mxu0 %v4183_v8 }
 0x3d4   :  { %9409 = vst [vmem:[#allocation52_spill] sm:$0xff] %v8737_v32  ;;  %v8745_v53 = vadd.f32 %v3017_v5, %v2944_v19  ;;  %6719 = vmatpush3.msra.mxu0 %v4167_v22  ;;  %v4178_v5 = vld [vmem:[%s9331_s8 + $0x90] sm:$0xff] }
 0x3d5   :  { %v2946_v29 = vpop.f32.mrf.mxu0  ;;  %v3019_v28 = vpop.f32.mrf.mxu1  ;;  %6720 = vmatprep.subr.mxu0 %v4182_v46  ;;  %v4163_v46 = vld [vmem:[%s9331_s8 + $0x18] sm:$0xff] }
 0x3d6   :  { %9410 = vst [vmem:[#allocation53_spill] sm:$0xff] %v8745_v53  ;;  %v8753_v17 = vadd.f32 %v3019_v28, %v2946_v29  ;;  %6721 = vmatpush3.msra.mxu0 %v4166_v6  ;;  %v4162_v29 = vld [vmem:[%s9331_s8 + $0x10] sm:$0xff] }
 0x3d7   :  { %v2948_v37 = vpop.f32.mrf.mxu0  ;;  %v3021_v52 = vpop.f32.mrf.mxu1  ;;  %6722 = vmatprep.subr.mxu0 %v4181_v3 }
 0x3d8   :  { %9411 = vst [vmem:[#allocation54_spill] sm:$0xff] %v8753_v17  ;;  %v8761_v8 = vadd.f32 %v3021_v52, %v2948_v37  ;;  %6723 = vmatpush3.msra.mxu0 %v4165_v7  ;;  %v4177_v7 = vld [vmem:[%s9331_s8 + $0x88] sm:$0xff] }
 0x3d9   :  { %v2952_v38 = vpop.f32.mrf.mxu0  ;;  %v3025_v22 = vpop.f32.mrf.mxu1  ;;  %6724 = vmatprep.subr.mxu0 %v4180_v42  ;;  %v4161_v52 = vld [vmem:[%s9331_s8 + $0x8] sm:$0xff] }
 0x3da   :  { %9412 = vst [vmem:[#allocation55_spill] sm:$0xff] %v8761_v8  ;;  %v8769_v19 = vadd.f32 %v3025_v22, %v2952_v38  ;;  %6725 = vmatpush3.msra.mxu0 %v4164_v2 }
 0x3db   :  { %v2954_v6 = vpop.f32.mrf.mxu0  ;;  %v3027_v3 = vpop.f32.mrf.mxu1  ;;  %6726 = vmatprep.subr.mxu0 %v4179_v26  ;;  %v4176_v26 = vld [vmem:[%s9331_s8 + $0x80] sm:$0xff] }
 0x3dc   :  { %9413 = vst [vmem:[#allocation56_spill] sm:$0xff] %v8769_v19  ;;  %v8777_v28 = vadd.f32 %v3027_v3, %v2954_v6  ;;  %6727 = vmatpush3.msra.mxu0 %v4163_v46  ;;  %v4160_v46 = vld [vmem:[%s9331_s8] sm:$0xff]  ;;  %v4207_v3 = vld [vmem:[%s9331_s8 + $0x178] sm:$0xff] }
 0x3dd   :  { %v2956_v42 = vpop.f32.mrf.mxu0  ;;  %v3029_v37 = vpop.f32.mrf.mxu1  ;;  %6728 = vmatprep.subr.mxu0 %v4178_v5  ;;  %v4223_v5 = vld [vmem:[%s9331_s8 + $0x1f8] sm:$0xff] }
 0x3de   :  { %9414 = vst [vmem:[#allocation57_spill] sm:$0xff] %v8777_v28  ;;  %v8785_v2 = vadd.f32 %v3029_v37, %v2956_v42  ;;  %6729 = vmatpush3.msra.mxu0 %v4162_v29  ;;  %v4222_v29 = vld [vmem:[%s9331_s8 + $0x1f0] sm:$0xff]  ;;  %6758 = vmatprep.subr.mxu1 %v4223_v5  ;;  %v4221_v42 = vld [vmem:[%s9331_s8 + $0x1e8] sm:$0xff] }
 0x3df   :  { %v2958_v38 = vpop.f32.mrf.mxu0  ;;  %v3031_v22 = vpop.f32.mrf.mxu1  ;;  %6730 = vmatprep.subr.mxu0 %v4177_v7  ;;  %v4206_v7 = vld [vmem:[%s9331_s8 + $0x170] sm:$0xff]  ;;  %6759 = vmatpush3.msra.mxu1 %v4207_v3  ;;  %v4205_v37 = vld [vmem:[%s9331_s8 + $0x168] sm:$0xff] }
 0x3e0   :  { %9415 = vst [vmem:[#allocation58_spill] sm:$0xff] %v8785_v2  ;;  %v8793_v6 = vadd.f32 %v3031_v22, %v2958_v38  ;;  %6731 = vmatpush3.msra.mxu0 %v4161_v52  ;;  %6760 = vmatprep.subr.mxu1 %v4222_v29  ;;  %v4220_v52 = vld [vmem:[%s9331_s8 + $0x1e0] sm:$0xff]  ;;  %v4219_v38 = vld [vmem:[%s9331_s8 + $0x1d8] sm:$0xff]  ;;  %v4202_v5 = vld [vmem:[%s9331_s8 + $0x150] sm:$0xff] }
 0x3e1   :  { %6732 = vmatprep.subr.mxu0 %v4176_v26  ;;  %6761 = vmatpush3.msra.mxu1 %v4206_v7  ;;  %v4204_v26 = vld [vmem:[%s9331_s8 + $0x160] sm:$0xff]  ;;  %v4203_v22 = vld [vmem:[%s9331_s8 + $0x158] sm:$0xff]  ;;  %v4217_v3 = vld [vmem:[%s9331_s8 + $0x1c8] sm:$0xff] }
 0x3e2   :  { %9416 = vst [vmem:[#allocation59_spill] sm:$0xff] %v8793_v6  ;;  %6733 = vmatpush3.msra.mxu0 %v4160_v46  ;;  %6762 = vmatprep.subr.mxu1 %v4221_v42  ;;  %v4218_v46 = vld [vmem:[%s9331_s8 + $0x1d0] sm:$0xff]  ;;  %v4201_v29 = vld [vmem:[%s9331_s8 + $0x148] sm:$0xff]  ;;  %v4216_v7 = vld [vmem:[%s9331_s8 + $0x1c0] sm:$0xff] }
 0x3e3   :  { %6763 = vmatpush3.msra.mxu1 %v4205_v37  ;;  %v4200_v42 = vld [vmem:[%s9331_s8 + $0x140] sm:$0xff]  ;;  %v4215_v37 = vld [vmem:[%s9331_s8 + $0x1b8] sm:$0xff] }
 0x3e4   :  { %6764 = vmatprep.subr.mxu1 %v4220_v52  ;;  %v4199_v52 = vld [vmem:[%s9331_s8 + $0x138] sm:$0xff]  ;;  %v4208_v6 = vld [vmem:[%s9331_s8 + $0x180] sm:$0xff] }
 0x3e5   :  { %6765 = vmatpush3.msra.mxu1 %v4204_v26  ;;  %v4214_v26 = vld [vmem:[%s9331_s8 + $0x1b0] sm:$0xff] }
 0x3e6   :  { %6766 = vmatprep.subr.mxu1 %v4219_v38  ;;  %v4198_v38 = vld [vmem:[%s9331_s8 + $0x130] sm:$0xff] }
 0x3e7   :  { %6767 = vmatpush3.msra.mxu1 %v4203_v22  ;;  %v4213_v22 = vld [vmem:[%s9331_s8 + $0x1a8] sm:$0xff] }
 0x3e8   :  { %6768 = vmatprep.subr.mxu1 %v4218_v46  ;;  %v4197_v46 = vld [vmem:[%s9331_s8 + $0x128] sm:$0xff] }
 0x3e9   :  { %6769 = vmatpush3.msra.mxu1 %v4202_v5 }
 0x3ea   :  { %6770 = vmatprep.subr.mxu1 %v4217_v3 }
 0x3eb   :  { %6771 = vmatpush3.msra.mxu1 %v4201_v29 }
 0x3ec   :  { %6772 = vmatprep.subr.mxu1 %v4216_v7 }
 0x3ed   :  { %6773 = vmatpush3.msra.mxu1 %v4200_v42 }
 0x3ee   :  { %6774 = vmatprep.subr.mxu1 %v4215_v37 }
 0x3ef   :  { %6775 = vmatpush3.msra.mxu1 %v4199_v52 }
 0x3f0   :  { %6776 = vmatprep.subr.mxu1 %v4214_v26  ;;  %v4212_v26 = vld [vmem:[%s9331_s8 + $0x1a0] sm:$0xff] }
 0x3f1   :  { %6777 = vmatpush3.msra.mxu1 %v4198_v38  ;;  %v4196_v38 = vld [vmem:[%s9331_s8 + $0x120] sm:$0xff] }
 0x3f2   :  { %6778 = vmatprep.subr.mxu1 %v4213_v22 }
 0x3f3   :  { %6779 = vmatpush3.msra.mxu1 %v4197_v46 }
 0x3f4   :  { %6780 = vmatprep.subr.mxu1 %v4212_v26 }
 0x3f5   :  { %6781 = vmatpush3.msra.mxu1 %v4196_v38  ;;  %v4209_v38 = vld [vmem:[%s9331_s8 + $0x188] sm:$0xff] }
 0x402   :  { %v3068_v5 = vpop.f32.mrf.mxu0  ;;  %v3141_v3 = vpop.f32.mrf.mxu1 }
 0x403   :  { %v8861_v29 = vadd.f32 %v3141_v3, %v3068_v5  ;;  %v4211_v5 = vld [vmem:[%s9331_s8 + $0x198] sm:$0xff] }
 0x404   :  { %v3070_v7 = vpop.f32.mrf.mxu0  ;;  %v3143_v42 = vpop.f32.mrf.mxu1  ;;  %6782 = vmatprep.subr.mxu1 %v4211_v5 }
 0x405   :  { %v8863_v37 = vadd.f32 %v3143_v42, %v3070_v7  ;;  %v4210_v7 = vld [vmem:[%s9331_s8 + $0x190] sm:$0xff] }
 0x406   :  { %v3072_v52 = vpop.f32.mrf.mxu0  ;;  %v3145_v14 = vpop.f32.mrf.mxu1  ;;  %v4194_v42 = vld [vmem:[%s9331_s8 + $0x110] sm:$0xff] }
 0x407   :  { %v8868_v11 = vadd.f32 %v3145_v14, %v3072_v52  ;;  %v4195_v14 = vld [vmem:[%s9331_s8 + $0x118] sm:$0xff] }
 0x408   :  { %v3074_v22 = vpop.f32.mrf.mxu0  ;;  %v3147_v46 = vpop.f32.mrf.mxu1  ;;  %6783 = vmatpush3.msra.mxu1 %v4195_v14  ;;  %v4192_v14 = vld [vmem:[%s9331_s8 + $0x100] sm:$0xff] }
 0x409   :  { %v8876_v3 = vadd.f32 %v3147_v46, %v3074_v22  ;;  %6784 = vmatprep.subr.mxu1 %v4210_v7  ;;  %v4193_v46 = vld [vmem:[%s9331_s8 + $0x108] sm:$0xff] }
 0x40a   :  { %v3078_v52 = vpop.f32.mrf.mxu0  ;;  %v3151_v26 = vpop.f32.mrf.mxu1  ;;  %6785 = vmatpush3.msra.mxu1 %v4194_v42 }
 0x40b   :  { %v8890_v22 = vadd.f32 %v3151_v26, %v3078_v52  ;;  %6786 = vmatprep.subr.mxu1 %v4209_v38 }
 0x40c   :  { %v3080_v5 = vpop.f32.mrf.mxu0  ;;  %v3153_v13 = vpop.f32.mrf.mxu1  ;;  %6787 = vmatpush3.msra.mxu1 %v4193_v46 }
 0x40d   :  { %v8898_v2 = vadd.f32 %v3153_v13, %v3080_v5  ;;  %6788 = vmatprep.subr.mxu1 %v4208_v6 }
 0x40e   :  { %v3082_v52 = vpop.f32.mrf.mxu0  ;;  %v3155_v7 = vpop.f32.mrf.mxu1  ;;  %6789 = vmatpush3.msra.mxu1 %v4192_v14 }
 0x40f   :  { %v8903_v26 = vadd.f32 %v3155_v7, %v3082_v52 }
 0x410   :  { %v3084_v28 = vpop.f32.mrf.mxu0  ;;  %v3157_v19 = vpop.f32.mrf.mxu1 }
 0x411   :  { %9417 = vst [vmem:[#allocation60_spill] sm:$0xff] %v8903_v26  ;;  %v8905_v42 = vadd.f32 %v3157_v19, %v3084_v28 }
 0x412   :  { %v3088_v8 = vpop.f32.mrf.mxu0  ;;  %v3161_v17 = vpop.f32.mrf.mxu1 }
 0x413   :  { %9418 = vst [vmem:[#allocation61_spill] sm:$0xff] %v8905_v42  ;;  %v8907_v13 = vadd.f32 %v3161_v17, %v3088_v8 }
 0x414   :  { %v3090_v38 = vpop.f32.mrf.mxu0  ;;  %v3163_v5 = vpop.f32.mrf.mxu1 }
 0x415   :  { %9419 = vst [vmem:[#allocation62_spill] sm:$0xff] %v8907_v13  ;;  %v8909_v53 = vadd.f32 %v3163_v5, %v3090_v38 }
 0x416   :  { %v3092_v32 = vpop.f32.mrf.mxu0  ;;  %v3165_v49 = vpop.f32.mrf.mxu1 }
 0x417   :  { %9420 = vst [vmem:[#allocation63_spill] sm:$0xff] %v8909_v53  ;;  %v8911_v55 = vadd.f32 %v3165_v49, %v3092_v32 }
 0x418   :  { %v3094_v46 = vpop.f32.mrf.mxu0  ;;  %v3167_v52 = vpop.f32.mrf.mxu1 }
 0x419   :  { %9421 = vst [vmem:[#allocation64_spill] sm:$0xff] %v8911_v55  ;;  %v8913_v6 = vadd.f32 %v3167_v52, %v3094_v46 }
 0x41a   :  { %v3098_v7 = vpop.f32.mrf.mxu0  ;;  %v3171_v14 = vpop.f32.mrf.mxu1 }
 0x41b   :  { %9422 = vst [vmem:[#allocation65_spill] sm:$0xff] %v8913_v6  ;;  %v8915_v19 = vadd.f32 %v3171_v14, %v3098_v7 }
 0x41c   :  { %v3100_v28 = vpop.f32.mrf.mxu0  ;;  %v3173_v42 = vpop.f32.mrf.mxu1 }
 0x41d   :  { %9423 = vst [vmem:[#allocation66_spill] sm:$0xff] %v8915_v19  ;;  %v8917_v17 = vadd.f32 %v3173_v42, %v3100_v28  ;;  %v2706_v42 = vadd.f32 %v8199_v51, %v8197_v18 }
 0x41e   :  { %v3102_v8 = vpop.f32.mrf.mxu0  ;;  %v3175_v13 = vpop.f32.mrf.mxu1 }
 0x41f   :  { %v8919_v38 = vadd.f32 %v3175_v13, %v3102_v8 }
 0x420   :  { %v3104_v5 = vpop.f32.mrf.mxu0  ;;  %v3177_v53 = vpop.f32.mrf.mxu1 }
 0x421   :  { %9424 = vst [vmem:[#allocation67_spill] sm:$0xff] %v8919_v38  ;;  %v8921_v49 = vadd.f32 %v3177_v53, %v3104_v5 }
 0x443   :  { %v3982_v32 = vpop.f32.mrf.mxu0  ;;  %v4023_v55 = vpop.f32.mrf.mxu1 }
 0x444   :  { %v4024_v46 = vadd.f32 %v4023_v55, %v3982_v32 }
 0x445   :  { %v3984_v52 = vpop.f32.mrf.mxu0  ;;  %v4025_v6 = vpop.f32.mrf.mxu1 }
 0x446   :  { %v4026_v26 = vadd.f32 %v4025_v6, %v3984_v52  ;;  %v4115_v7 = vrot.slane %v4024_v46, %v7627_v10 }
 0x447   :  { %v3986_v14 = vpop.f32.mrf.mxu0  ;;  %v4027_v19 = vpop.f32.mrf.mxu1 }
 0x448   :  { %v4119_v13 = vrot.slane %v4026_v26, %v7627_v10  ;;  %v4128_v53 = vmul.f32 %v4115_v7, %v8187_v40  ;;  %v4132_v6 = vmul.f32 %v4115_v7, %v8209_v45  ;;  %v4136_v18 = vmul.f32 %v4115_v7, %v8225_v33 }
 0x449   :  { %v3987_v28 = vpop.f32.mrf.mxu0  ;;  %v4028_v8 = vpop.f32.mrf.mxu1  ;;  %v4140_v26 = vmul.f32 %v4115_v7, %v8245_v59 }
 0x44a   :  { %v4129_v38 = vmul.f32 %v4119_v13, %v2706_v42  ;;  %v4133_v55 = vmul.f32 %v4119_v13, %v8217_v27  ;;  %v4137_v5 = vmul.f32 %v4119_v13, %v8237_v34  ;;  %v4141_v51 = vmul.f32 %v4119_v13, %v8254_v50 }
 0x44b   :  { %v4145_v40 = vmul.f32 %v4119_v13, %v8277_v0  ;;  %v4144_v27 = vmul.f32 %v4115_v7, %v8262_v35  ;;  %v4149_v45 = vmul.f32 %v4119_v13, %v8297_v25  ;;  %v4148_v34 = vmul.f32 %v4115_v7, %v8285_v21 }
 0x44c   :  { %4288 = vmatprep.mubr.f32.mxu0 %v4129_v38  ;;  %v4153_v33 = vmul.f32 %v4119_v13, %v8321_v60  ;;  %v4152_v50 = vmul.f32 %v4115_v7, %v8305_v24  ;;  %v4157_v59 = vmul.f32 %v4119_v13, %v8337_v62  ;;  %v4156_v0 = vmul.f32 %v4115_v7, %v8329_v56 }
 0x44d   :  { %4289 = vmatmul.mubr.f32.vlgmr.msra.gmra.mxu0 %v4128_v53 }
 0x44e   :  { %4293 = vmatprep.mubr.f32.mxu0 %v4133_v55 }
 0x451   :  { %4294 = vmatmul.mubr.f32.gmra.mxu0 %v4132_v6 }
 0x452   :  { %4298 = vmatprep.mubr.f32.mxu0 %v4137_v5 }
 0x455   :  { %4299 = vmatmul.mubr.f32.gmra.mxu0 %v4136_v18 }
 0x456   :  { %4303 = vmatprep.mubr.f32.mxu0 %v4141_v51 }
 0x459   :  { %4304 = vmatmul.mubr.f32.gmra.mxu0 %v4140_v26 }
 0x45a   :  { %4308 = vmatprep.mubr.f32.mxu0 %v4145_v40 }
 0x45d   :  { %4309 = vmatmul.mubr.f32.gmra.mxu0 %v4144_v27 }
 0x45e   :  { %4313 = vmatprep.mubr.f32.mxu0 %v4149_v45 }
 0x461   :  { %4314 = vmatmul.mubr.f32.gmra.mxu0 %v4148_v34 }
 0x462   :  { %4318 = vmatprep.mubr.f32.mxu0 %v4153_v33 }
 0x465   :  { %4319 = vmatmul.mubr.f32.gmra.mxu0 %v4152_v50 }
 0x466   :  { %4323 = vmatprep.mubr.f32.mxu0 %v4157_v59 }
 0x469   :  { %4324 = vmatmul.mubr.f32.gmra.mxu0 %v4156_v0 }
 0x483   :  { %v4064_v35 = vpop.f32.mrf.mxu0 }
 0x484   :  { %v4105_v19 = vpop.f32.mrf.mxu1 }
 0x485   :  { %v4106_v25 = vadd.f32 %v4105_v19, %v4064_v35  ;;  %v4066_v38 = vpop.f32.mrf.mxu0 }
 0x486   :  { %v4107_v32 = vpop.f32.mrf.mxu1 }
 0x487   :  { %v4108_v46 = vadd.f32 %v4107_v32, %v4066_v38  ;;  %v4068_v21 = vpop.f32.mrf.mxu0  ;;  %v4123_v60 = vrot.slane %v4106_v25, %v7627_v10 }
 0x488   :  { %v4109_v52 = vpop.f32.mrf.mxu1 }
 0x489   :  { %v4127_v14 = vrot.slane %v4108_v46, %v7627_v10  ;;  %v4069_v24 = vpop.f32.mrf.mxu0  ;;  %v4130_v13 = vmul.f32 %v4123_v60, %v8442_v23  ;;  %v4134_v7 = vmul.f32 %v4123_v60, %v8466_v61  ;;  %v4138_v8 = vmul.f32 %v4123_v60, %v8482_v39 }
 0x48a   :  { %v4110_v42 = vpop.f32.mrf.mxu1 }
 0x48b   :  { %v4131_v62 = vmul.f32 %v4127_v14, %v8459_v31  ;;  %v4135_v56 = vmul.f32 %v4127_v14, %v8477_v12  ;;  %v4139_v28 = vmul.f32 %v4127_v14, %v8493_v15  ;;  %v4143_v53 = vmul.f32 %v4127_v14, %v8509_v41 }
 0x48c   :  { %v4142_v31 = vmul.f32 %v4123_v60, %v8498_v57  ;;  %v4147_v23 = vmul.f32 %v4127_v14, %v8525_v36  ;;  %v4146_v12 = vmul.f32 %v4123_v60, %v8514_v1  ;;  %v4151_v61 = vmul.f32 %v4127_v14, %v8541_v43  ;;  %v4519_v43 = vld [vmem:[%s9332_s9 + $0x8] sm:$0xff] }
 0x48d   :  { %4393 = vmatprep.mubr.f32.mxu1 %v4131_v62  ;;  %v4150_v15 = vmul.f32 %v4123_v60, %v8530_v47  ;;  %v4155_v39 = vmul.f32 %v4127_v14, %v8557_v9  ;;  %v4154_v41 = vmul.f32 %v4123_v60, %v8546_v20  ;;  %v4159_v57 = vmul.f32 %v4127_v14, %v8573_v63  ;;  %v4518_v47 = vld [vmem:[%s9332_s9] sm:$0xff]  ;;  %v4521_v20 = vld [vmem:[%s9332_s9 + $0x18] sm:$0xff] }
 0x48e   :  { %4394 = vmatmul.mubr.f32.vlgmr.msra.gmra.mxu1 %v4130_v13  ;;  %v4158_v36 = vmul.f32 %v4123_v60, %v8562_v58  ;;  %4576 = vmatprep.subr.mxu0 %v4519_v43  ;;  %v4520_v58 = vld [vmem:[%s9332_s9 + $0x10] sm:$0xff]  ;;  %v7542_v63 = vmov 0.0  }
 0x48f   :  { %4398 = vmatprep.mubr.f32.mxu1 %v4135_v56  ;;  %4689 = vmatprep.subr.mxu1 %v4521_v20  ;;  %v7198_v60 = vld [vmem:[#allocation8 + $0xe4] ss:$16 sps:$4 sm:$0xff]  }
 0x490   :  { %4577 = vmatpush1.msra.mxu0 %v4518_v47  ;;  %4690 = vmatpush1.msra.mxu1 %v4520_v58  ;;  %v7201_v14 = vld [vmem:[#allocation8 + $0x2e4] ss:$16 sps:$4 sm:$0xff]  }
 0x491   :  { %4610 = vmatprep.mubr.f32.mxu0 %v7542_v63  ;;  %5650 = vmatprep.subr.bf16.mxu0 %v7198_v60 }
 0x492   :  { %4399 = vmatmul.mubr.f32.gmra.mxu1 %v4134_v7  ;;  %5691 = vmatprep.subr.bf16.mxu1 %v7201_v14 }
 0x493   :  { %4403 = vmatprep.mubr.f32.mxu1 %v4139_v28 }
 0x496   :  { %4404 = vmatmul.mubr.f32.gmra.mxu1 %v4138_v8 }
 0x497   :  { %4408 = vmatprep.mubr.f32.mxu1 %v4143_v53 }
 0x49a   :  { %4409 = vmatmul.mubr.f32.gmra.mxu1 %v4142_v31 }
 0x49b   :  { %4413 = vmatprep.mubr.f32.mxu1 %v4147_v23 }
 0x49e   :  { %4414 = vmatmul.mubr.f32.gmra.mxu1 %v4146_v12 }
 0x49f   :  { %4418 = vmatprep.mubr.f32.mxu1 %v4151_v61 }
 0x4a2   :  { %4419 = vmatmul.mubr.f32.gmra.mxu1 %v4150_v15 }
 0x4a3   :  { %4423 = vmatprep.mubr.f32.mxu1 %v4155_v39 }
 0x4a6   :  { %4424 = vmatmul.mubr.f32.gmra.mxu1 %v4154_v41 }
 0x4a7   :  { %4428 = vmatprep.mubr.f32.mxu1 %v4159_v57 }
 0x4aa   :  { %4429 = vmatmul.mubr.f32.gmra.mxu1 %v4158_v36 }
 0x4ab   :  { %4723 = vmatprep.mubr.f32.mxu1 %v7542_v63 }
 0x50d   :  { %v6734_v1 = vpop.f32.mrf.mxu0 }
 0x50f   :  { %v6735_v55 = vpop.f32.mrf.mxu0 }
 0x510   :  { %v6736_v39 = vadd.f32 %v6735_v55, %v6734_v1 }
 0x511   :  { %v6737_v9 = vpop.f32.mrf.mxu0 }
 0x513   :  { %v6738_v6 = vpop.f32.mrf.mxu0 }
 0x514   :  { %v6739_v8 = vadd.f32 %v6738_v6, %v6737_v9 }
 0x515   :  { %v6740_v5 = vpop.f32.mrf.mxu0 }
 0x517   :  { %v6741_v18 = vpop.f32.mrf.mxu0 }
 0x518   :  { %v6742_v41 = vadd.f32 %v6741_v18, %v6740_v5 }
 0x519   :  { %v6743_v51 = vpop.f32.mrf.mxu0 }
 0x51b   :  { %v6744_v26 = vpop.f32.mrf.mxu0 }
 0x51c   :  { %v6745_v57 = vadd.f32 %v6744_v26, %v6743_v51 }
 0x51d   :  { %v6746_v40 = vpop.f32.mrf.mxu0 }
 0x51f   :  { %v6747_v34 = vpop.f32.mrf.mxu0 }
 0x520   :  { %v6748_v23 = vadd.f32 %v6747_v34, %v6746_v40 }
 0x521   :  { %v6749_v59 = vpop.f32.mrf.mxu0 }
 0x523   :  { %v6750_v19 = vpop.f32.mrf.mxu0 }
 0x524   :  { %v6751_v62 = vadd.f32 %v6750_v19, %v6749_v59 }
 0x525   :  { %v6752_v32 = vpop.f32.mrf.mxu0 }
 0x527   :  { %v6753_v52 = vpop.f32.mrf.mxu0 }
 0x528   :  { %v6754_v43 = vadd.f32 %v6753_v52, %v6752_v32 }
 0x529   :  { %v6755_v13 = vpop.f32.mrf.mxu0 }
 0x52b   :  { %v6756_v47 = vpop.f32.mrf.mxu0 }
 0x54e   :  { %v6790_v27 = vpop.f32.mrf.mxu1 }
 0x550   :  { %v6791_v45 = vpop.f32.mrf.mxu1 }
 0x551   :  { %v6792_v53 = vadd.f32 %v6791_v45, %v6790_v27  ;;  %v6757_v27 = vadd.f32 %v6756_v47, %v6755_v13 }
 0x552   :  { %v6793_v33 = vpop.f32.mrf.mxu1 }
 0x553   :  { %v4396_v19 = vadd.f32 %v6792_v53, %v6736_v39 }
 0x554   :  { %v6794_v50 = vpop.f32.mrf.mxu1 }
 0x555   :  { %v6795_v56 = vadd.f32 %v6794_v50, %v6793_v33  ;;  %v4434_v55 = vmul.f32 0.125, %v4396_v19 }
 0x556   :  { %v6796_v0 = vpop.f32.mrf.mxu1 }
 0x557   :  { %v4401_v20 = vadd.f32 %v6795_v56, %v6739_v8  ;;  %v4443_v60 = vsel %vm4442_vm1, %v4434_v55, -inf }
 0x558   :  { %v6797_v35 = vpop.f32.mrf.mxu1 }
 0x559   :  { %v6798_v12 = vadd.f32 %v6797_v35, %v6796_v0  ;;  %v4435_v45 = vmul.f32 0.125, %v4401_v20 }
 0x55a   :  { %v6799_v25 = vpop.f32.mrf.mxu1 }
 0x55b   :  { %v4406_v50 = vadd.f32 %v6798_v12, %v6742_v41  ;;  %v4444_v35 = vsel %vm4442_vm1, %v4435_v45, -inf }
 0x55c   :  { %v6800_v38 = vpop.f32.mrf.mxu1 }
 0x55d   :  { %v6801_v61 = vadd.f32 %v6800_v38, %v6799_v25  ;;  %v4436_v5 = vmul.f32 0.125, %v4406_v50 }
 0x55e   :  { %v6802_v46 = vpop.f32.mrf.mxu1 }
 0x55f   :  { %v4445_v52 = vsel %vm4442_vm1, %v4436_v5, -inf }
 0x560   :  { %v6803_v21 = vpop.f32.mrf.mxu1 }
 0x561   :  { %v6804_v7 = vadd.f32 %v6803_v21, %v6802_v46  ;;  %v4411_v46 = vadd.f32 %v6801_v61, %v6745_v57 }
 0x562   :  { %v6805_v24 = vpop.f32.mrf.mxu1 }
 0x563   :  { %v4416_v58 = vadd.f32 %v6804_v7, %v6748_v23  ;;  %v4437_v18 = vmul.f32 0.125, %v4411_v46 }
 0x564   :  { %v6806_v42 = vpop.f32.mrf.mxu1 }
 0x565   :  { %v6807_v28 = vadd.f32 %v6806_v42, %v6805_v24  ;;  %v4438_v34 = vmul.f32 0.125, %v4416_v58  ;;  %v4446_v14 = vsel %vm4442_vm1, %v4437_v18, -inf }
 0x566   :  { %v6808_v31 = vpop.f32.mrf.mxu1 }
 0x567   :  { %v4421_v15 = vadd.f32 %v6807_v28, %v6751_v62  ;;  %v4447_v25 = vsel %vm4442_vm1, %v4438_v34, -inf }
 0x568   :  { %v6809_v36 = vpop.f32.mrf.mxu1  ;;  %v4448_v42 = vmax.f32 %v4443_v60, %v4447_v25 }
 0x569   :  { %v6810_v59 = vadd.f32 %v6809_v36, %v6808_v31  ;;  %v4439_v9 = vmul.f32 0.125, %v4421_v15 }
 0x56a   :  { %v6811_v33 = vpop.f32.mrf.mxu1 }
 0x56b   :  { %v4426_v6 = vadd.f32 %v6810_v59, %v6754_v43  ;;  %v4449_v51 = vsel %vm4442_vm1, %v4439_v9, -inf }
 0x56c   :  { %v6812_v40 = vpop.f32.mrf.mxu1  ;;  %v4450_v21 = vmax.f32 %v4444_v35, %v4449_v51 }
 0x56d   :  { %v4440_v0 = vmul.f32 0.125, %v4426_v6  ;;  %v6813_v1 = vadd.f32 %v6812_v40, %v6811_v33 }
 0x56e   :  { %v4455_v56 = vmax.f32 %v4448_v42, %v4450_v21 }
 0x56f   :  { %v4431_v26 = vadd.f32 %v6813_v1, %v6757_v27  ;;  %v4451_v38 = vsel %vm4442_vm1, %v4440_v0, -inf }
 0x570   :  { %v4452_v62 = vmax.f32 %v4445_v52, %v4451_v38 }
 0x571   :  { %v4441_v32 = vmul.f32 0.125, %v4431_v26 }
 0x573   :  { %v4453_v24 = vsel %vm4442_vm1, %v4441_v32, -inf }
 0x574   :  { %v4454_v13 = vmax.f32 %v4446_v14, %v4453_v24 }
 0x576   :  { %v4456_v7 = vmax.f32 %v4452_v62, %v4454_v13 }
 0x578   :  { %v4457_v28 = vmax.f32 %v4455_v56, %v4456_v7 }
 0x57a   :  { %v4458_v8 = vrot.slane %v4457_v28, 4 }
 0x57c   :  { %v4459_v53 = vmax.f32 %v4457_v28, %v4458_v8 }
 0x57e   :  { %v4460_v31 = vrot.slane %v4459_v53, 2 }
 0x580   :  { %v4461_v23 = vmax.f32 %v4459_v53, %v4460_v31 }
 0x582   :  { %v4462_v12 = vrot.slane %v4461_v23, 1 }
 0x584   :  { %v4463_v61 = vmax.f32 %v4461_v23, %v4462_v12 }
 0x586   :  { %v4464_v15 = vsub.f32 %v4434_v55, %v4463_v61  ;;  %v4465_v39 = vsub.f32 %v4435_v45, %v4463_v61  ;;  %v4466_v41 = vsub.f32 %v4436_v5, %v4463_v61  ;;  %v4467_v57 = vsub.f32 %v4437_v18, %v4463_v61 }
 0x587   :  { %v4468_v36 = vsub.f32 %v4438_v34, %v4463_v61  ;;  %v4469_v58 = vsub.f32 %v4439_v9, %v4463_v61  ;;  %v4470_v19 = vsub.f32 %v4440_v0, %v4463_v61  ;;  %v4471_v50 = vsub.f32 %v4441_v32, %v4463_v61  ;;  %v7196_v61 = vld [vmem:[#allocation8 + $0xe0] ss:$16 sps:$4 sm:$0xff]  }
 0x588   :  { %v4472_v43 = vmul.f32 1.442695, %v4464_v15  ;;  %v4474_v47 = vmul.f32 1.442695, %v4465_v39  ;;  %v4476_v20 = vmul.f32 1.442695, %v4466_v41 }
 0x589   :  { %v4478_v59 = vmul.f32 1.442695, %v4467_v57  ;;  %v4480_v33 = vmul.f32 1.442695, %v4468_v36  ;;  %v4482_v46 = vmul.f32 1.442695, %v4469_v58 }
 0x58a   :  { %7406 = vpow2.f32 %v4472_v43  ;;  %v4484_v6 = vmul.f32 1.442695, %v4470_v19  ;;  %v4486_v27 = vmul.f32 1.442695, %v4471_v50  ;;  %v7199_v15 = vld [vmem:[#allocation8 + $0x2e0] ss:$16 sps:$4 sm:$0xff]  }
 0x58b   :  { %7408 = vpow2.f32 %v4474_v47  ;;  %v7204_v39 = vld [vmem:[#allocation8 + $0xc4] ss:$16 sps:$4 sm:$0xff]   ;;  %v7202_v36 = vld [vmem:[#allocation8 + $0xc0] ss:$16 sps:$4 sm:$0xff]  }
 0x58c   :  { %7410 = vpow2.f32 %v4476_v20  ;;  %v7207_v41 = vld [vmem:[#allocation8 + $0x2c4] ss:$16 sps:$4 sm:$0xff]   ;;  %v7205_v43 = vld [vmem:[#allocation8 + $0x2c0] ss:$16 sps:$4 sm:$0xff]  }
 0x58d   :  { %7412 = vpow2.f32 %v4478_v59  ;;  %v7210_v47 = vld [vmem:[#allocation8 + $0xa4] ss:$16 sps:$4 sm:$0xff]   ;;  %v7208_v59 = vld [vmem:[#allocation8 + $0xa0] ss:$16 sps:$4 sm:$0xff]  }
 0x58e   :  { %7414 = vpow2.f32 %v4480_v33  ;;  %v7213_v20 = vld [vmem:[#allocation8 + $0x2a4] ss:$16 sps:$4 sm:$0xff]   ;;  %v7211_v19 = vld [vmem:[#allocation8 + $0x2a0] ss:$16 sps:$4 sm:$0xff]  }
 0x58f   :  { %7416 = vpow2.f32 %v4482_v46  ;;  %v7216_v33 = vld [vmem:[#allocation8 + $0x84] ss:$16 sps:$4 sm:$0xff]  }
 0x590   :  { %7418 = vpow2.f32 %v4484_v6  ;;  %v7219_v50 = vld [vmem:[#allocation8 + $0x284] ss:$16 sps:$4 sm:$0xff]   ;;  %v7214_v6 = vld [vmem:[#allocation8 + $0x80] ss:$16 sps:$4 sm:$0xff]  }
 0x591   :  { %7420 = vpow2.f32 %v4486_v27  ;;  %v7217_v27 = vld [vmem:[#allocation8 + $0x280] ss:$16 sps:$4 sm:$0xff]  }
 0x597   :  { %v7407_v40 = vpop.eup %7406 }
 0x598   :  { %v7409_v45 = vpop.eup %7408  ;;  %v4488_v34 = vsel %vm4442_vm1, %v7407_v40, 0.0 }
 0x599   :  { %v7411_v9 = vpop.eup %7410  ;;  %v4489_v1 = vsel %vm4442_vm1, %v7409_v45, 0.0 }
 0x59a   :  { %v7413_v0 = vpop.eup %7412  ;;  %v4490_v55 = vadd.f32 %v4489_v1, %v4488_v34  ;;  %v4491_v5 = vsel %vm4442_vm1, %v7411_v9, 0.0  ;;  %v7220_v1 = vld [vmem:[#allocation8 + $0x60] ss:$16 sps:$4 sm:$0xff]  }
 0x59b   :  { %v8985_v18 = vpop.eup %7414  ;;  %v4493_v26 = vsel %vm4442_vm1, %v7413_v0, 0.0 }
 0x59c   :  { %v4492_v51 = vadd.f32 %v4491_v5, %v4490_v55  ;;  %v8988_v35 = vpop.eup %7416  ;;  %v4495_v38 = vsel %vm4442_vm1, %v8985_v18, 0.0  ;;  %v7223_v55 = vld [vmem:[#allocation8 + $0x260] ss:$16 sps:$4 sm:$0xff]   ;;  %v7225_v5 = vld [vmem:[#allocation8 + $0x264] ss:$16 sps:$4 sm:$0xff]  }
 0x59d   :  { %v8992_v32 = vpop.eup %7418  ;;  %v4497_v60 = vsel %vm4442_vm1, %v8988_v35, 0.0 }
 0x59e   :  { %v4494_v25 = vadd.f32 %v4493_v26, %v4492_v51  ;;  %v8996_v52 = vpop.eup %7420  ;;  %v4499_v24 = vsel %vm4442_vm1, %v8992_v32, 0.0  ;;  %v7228_v51 = vld [vmem:[#allocation8 + $0x44] ss:$16 sps:$4 sm:$0xff]   ;;  %v7229_v26 = vld [vmem:[#allocation8 + $0x240] ss:$16 sps:$4 sm:$0xff]  }
 0x59f   :  { %v4501_v62 = vsel %vm4442_vm1, %v8996_v52, 0.0 }
 0x5a0   :  { %v4496_v21 = vadd.f32 %v4495_v38, %v4494_v25  ;;  %v7234_v25 = vld [vmem:[#allocation8 + $0x24] ss:$16 sps:$4 sm:$0xff]   ;;  %v7235_v38 = vld [vmem:[#allocation8 + $0x220] ss:$16 sps:$4 sm:$0xff]  }
 0x5a2   :  { %v4498_v14 = vadd.f32 %v4497_v60, %v4496_v21  ;;  %v7238_v21 = vld [vmem:[#allocation8] ss:$16 sps:$4 sm:$0xff]   ;;  %v7240_v60 = vld [vmem:[#allocation8 + $0x4] ss:$16 sps:$4 sm:$0xff]  }
 0x5a4   :  { %v4500_v42 = vadd.f32 %v4499_v24, %v4498_v14  ;;  %v7243_v14 = vld [vmem:[#allocation8 + $0x204] ss:$16 sps:$4 sm:$0xff]   ;;  %v7244_v24 = vld [vmem:[#allocation8 + $0x1e0] ss:$16 sps:$4 sm:$0xff]  }
 0x5a6   :  { %v4502_v13 = vadd.f32 %v4501_v62, %v4500_v42  ;;  %v7246_v42 = vld [vmem:[#allocation8 + $0x1e4] ss:$16 sps:$4 sm:$0xff]   ;;  %v7247_v62 = vld [vmem:[#allocation8 + $0x3e0] ss:$16 sps:$4 sm:$0xff]  }
 0x5a8   :  { %v4503_v56 = vrot.slane %v4502_v13, 4 }
 0x5aa   :  { %v4504_v7 = vadd.f32 %v4503_v56, %v4502_v13  ;;  %v7249_v13 = vld [vmem:[#allocation8 + $0x3e4] ss:$16 sps:$4 sm:$0xff]   ;;  %v7250_v56 = vld [vmem:[#allocation8 + $0x1c0] ss:$16 sps:$4 sm:$0xff]  }
 0x5ac   :  { %v4505_v28 = vrot.slane %v4504_v7, 2 }
 0x5ae   :  { %v4506_v8 = vadd.f32 %v4505_v28, %v4504_v7  ;;  %v7252_v7 = vld [vmem:[#allocation8 + $0x1c4] ss:$16 sps:$4 sm:$0xff]   ;;  %v7253_v28 = vld [vmem:[#allocation8 + $0x3c0] ss:$16 sps:$4 sm:$0xff]  }
 0x5b0   :  { %v4507_v53 = vrot.slane %v4506_v8, 1 }
 0x5b2   :  { %v4508_v31 = vadd.f32 %v4507_v53, %v4506_v8  ;;  %v7255_v8 = vld [vmem:[#allocation8 + $0x3c4] ss:$16 sps:$4 sm:$0xff]   ;;  %v7256_v53 = vld [vmem:[#allocation8 + $0x1a0] ss:$16 sps:$4 sm:$0xff]  }
 0x5b4   :  { %7422 = vrcp.f32 %v4508_v31  ;;  %v7258_v31 = vld [vmem:[#allocation8 + $0x1a4] ss:$16 sps:$4 sm:$0xff]  }
 0x5c1   :  { %v9002_v23 = vpop.eup %7422 }
 0x5c2   :  { %v4510_v12 = vmul.f32 %v9002_v23, %v7407_v40  ;;  %v4511_v57 = vmul.f32 %v9002_v23, %v7409_v45  ;;  %v4512_v58 = vmul.f32 %v9002_v23, %v7411_v9  ;;  %v4513_v46 = vmul.f32 %v9002_v23, %v7413_v0  ;;  %v7222_v0 = vld [vmem:[#allocation8 + $0x64] ss:$16 sps:$4 sm:$0xff]  }
 0x5c3   :  { %v4514_v40 = vmul.f32 %v9002_v23, %v8985_v18  ;;  %v4515_v45 = vmul.f32 %v9002_v23, %v8988_v35  ;;  %v4516_v34 = vmul.f32 %v9002_v23, %v8992_v32  ;;  %v4517_v9 = vmul.f32 %v9002_v23, %v8996_v52  ;;  %v7226_v18 = vld [vmem:[#allocation8 + $0x40] ss:$16 sps:$4 sm:$0xff]   ;;  %v7231_v35 = vld [vmem:[#allocation8 + $0x244] ss:$16 sps:$4 sm:$0xff]  }
 0x5c4   :  { %6558 = vmatmul.mubr.msk.f32.vlgmr.msra.gmra.mxu0 %vm4442_vm1, %v4510_v12  ;;  %6566 = vmatmul.mubr.msk.f32.vlgmr.msra.gmra.mxu1 %vm4442_vm1, %v4510_v12  ;;  %v7237_v32 = vld [vmem:[#allocation8 + $0x224] ss:$16 sps:$4 sm:$0xff]   ;;  %v7241_v52 = vld [vmem:[#allocation8 + $0x200] ss:$16 sps:$4 sm:$0xff]  }
 0x5c5   :  { %4616 = vmatprep.mubr.f32.mxu0 %v7542_v63  ;;  %4729 = vmatprep.mubr.f32.mxu1 %v7542_v63  ;;  %v7259_v23 = vld [vmem:[#allocation8 + $0x3a0] ss:$16 sps:$4 sm:$0xff]   ;;  %v7261_v12 = vld [vmem:[#allocation8 + $0x3a4] ss:$16 sps:$4 sm:$0xff]  }
 0x5c6   :  { %5651 = vmatpush1.bf16.msra.mxu0 %v7196_v61  ;;  %5692 = vmatpush1.bf16.msra.mxu1 %v7199_v15  ;;  %v7264_v61 = vld [vmem:[#allocation8 + $0x184] ss:$16 sps:$4 sm:$0xff]  }
 0x5c7   :  { %5652 = vmatprep.subr.bf16.mxu0 %v7204_v39  ;;  %5693 = vmatprep.subr.bf16.mxu1 %v7207_v41  ;;  %v7267_v15 = vld [vmem:[#allocation8 + $0x384] ss:$16 sps:$4 sm:$0xff]   ;;  %v7262_v39 = vld [vmem:[#allocation8 + $0x180] ss:$16 sps:$4 sm:$0xff]  }
 0x5c8   :  { %6559 = vmatmul.mubr.msk.f32.gmra.mxu0 %vm4442_vm1, %v4511_v57  ;;  %6567 = vmatmul.mubr.msk.f32.gmra.mxu1 %vm4442_vm1, %v4511_v57  ;;  %v7265_v41 = vld [vmem:[#allocation8 + $0x380] ss:$16 sps:$4 sm:$0xff]   ;;  %v7270_v57 = vld [vmem:[#allocation8 + $0x164] ss:$16 sps:$4 sm:$0xff]  }
 0x5c9   :  { %4622 = vmatprep.mubr.f32.mxu0 %v7542_v63  ;;  %4735 = vmatprep.mubr.f32.mxu1 %v7542_v63 }
 0x5ca   :  { %5653 = vmatpush1.bf16.msra.mxu0 %v7202_v36  ;;  %5694 = vmatpush1.bf16.msra.mxu1 %v7205_v43  ;;  %v7273_v36 = vld [vmem:[#allocation8 + $0x364] ss:$16 sps:$4 sm:$0xff]   ;;  %v7268_v43 = vld [vmem:[#allocation8 + $0x160] ss:$16 sps:$4 sm:$0xff]  }
 0x5cb   :  { %5654 = vmatprep.subr.bf16.mxu0 %v7210_v47  ;;  %5695 = vmatprep.subr.bf16.mxu1 %v7213_v20  ;;  %v7271_v47 = vld [vmem:[#allocation8 + $0x360] ss:$16 sps:$4 sm:$0xff]   ;;  %v7276_v20 = vld [vmem:[#allocation8 + $0x144] ss:$16 sps:$4 sm:$0xff]  }
 0x5cc   :  { %6560 = vmatmul.mubr.msk.f32.gmra.mxu0 %vm4442_vm1, %v4512_v58  ;;  %6568 = vmatmul.mubr.msk.f32.gmra.mxu1 %vm4442_vm1, %v4512_v58  ;;  %v7279_v58 = vld [vmem:[#allocation8 + $0x344] ss:$16 sps:$4 sm:$0xff]  }
 0x5cd   :  { %4628 = vmatprep.mubr.f32.mxu0 %v7542_v63  ;;  %4741 = vmatprep.mubr.f32.mxu1 %v7542_v63 }
 0x5ce   :  { %5655 = vmatpush1.bf16.msra.mxu0 %v7208_v59  ;;  %5696 = vmatpush1.bf16.msra.mxu1 %v7211_v19  ;;  %v7274_v59 = vld [vmem:[#allocation8 + $0x140] ss:$16 sps:$4 sm:$0xff]  }
 0x5cf   :  { %5656 = vmatprep.subr.bf16.mxu0 %v7216_v33  ;;  %5697 = vmatprep.subr.bf16.mxu1 %v7219_v50  ;;  %v7277_v19 = vld [vmem:[#allocation8 + $0x340] ss:$16 sps:$4 sm:$0xff]   ;;  %v7282_v50 = vld [vmem:[#allocation8 + $0x124] ss:$16 sps:$4 sm:$0xff]  }
 0x5d0   :  { %6561 = vmatmul.mubr.msk.f32.gmra.mxu0 %vm4442_vm1, %v4513_v46  ;;  %6569 = vmatmul.mubr.msk.f32.gmra.mxu1 %vm4442_vm1, %v4513_v46  ;;  %v7280_v33 = vld [vmem:[#allocation8 + $0x120] ss:$16 sps:$4 sm:$0xff]  }
 0x5d1   :  { %4634 = vmatprep.mubr.f32.mxu0 %v7542_v63  ;;  %4747 = vmatprep.mubr.f32.mxu1 %v7542_v63  ;;  %v7283_v46 = vld [vmem:[#allocation8 + $0x320] ss:$16 sps:$4 sm:$0xff]  }
 0x5d2   :  { %5657 = vmatpush1.bf16.msra.mxu0 %v7214_v6  ;;  %5698 = vmatpush1.bf16.msra.mxu1 %v7217_v27  ;;  %v7285_v6 = vld [vmem:[#allocation8 + $0x324] ss:$16 sps:$4 sm:$0xff]  }
 0x5d3   :  { %5658 = vmatprep.subr.bf16.mxu0 %v7222_v0  ;;  %5699 = vmatprep.subr.bf16.mxu1 %v7225_v5  ;;  %v7288_v27 = vld [vmem:[#allocation8 + $0x104] ss:$16 sps:$4 sm:$0xff]  }
 0x5d4   :  { %6562 = vmatmul.mubr.msk.f32.gmra.mxu0 %vm4442_vm1, %v4514_v40  ;;  %6570 = vmatmul.mubr.msk.f32.gmra.mxu1 %vm4442_vm1, %v4514_v40  ;;  %v7291_v40 = vld [vmem:[#allocation8 + $0x304] ss:$16 sps:$4 sm:$0xff]  }
 0x5d5   :  { %4640 = vmatprep.mubr.f32.mxu0 %v7542_v63  ;;  %4753 = vmatprep.mubr.f32.mxu1 %v7542_v63 }
 0x5d6   :  { %5659 = vmatpush1.bf16.msra.mxu0 %v7220_v1  ;;  %5700 = vmatpush1.bf16.msra.mxu1 %v7223_v55  ;;  %v7297_v1 = vld [vmem:[#allocation8 + $0x2ec] ss:$16 sps:$4 sm:$0xff]  }
 0x5d7   :  { %5660 = vmatprep.subr.bf16.mxu0 %v7228_v51  ;;  %5701 = vmatprep.subr.bf16.mxu1 %v7231_v35 }
 0x5d8   :  { %6563 = vmatmul.mubr.msk.f32.gmra.mxu0 %vm4442_vm1, %v4515_v45  ;;  %6571 = vmatmul.mubr.msk.f32.gmra.mxu1 %vm4442_vm1, %v4515_v45  ;;  %v7286_v45 = vld [vmem:[#allocation8 + $0x100] ss:$16 sps:$4 sm:$0xff]  }
 0x5d9   :  { %4646 = vmatprep.mubr.f32.mxu0 %v7542_v63  ;;  %4759 = vmatprep.mubr.f32.mxu1 %v7542_v63 }
 0x5da   :  { %5661 = vmatpush1.bf16.msra.mxu0 %v7226_v18  ;;  %5702 = vmatpush1.bf16.msra.mxu1 %v7229_v26 }
 0x5db   :  { %5662 = vmatprep.subr.bf16.mxu0 %v7234_v25  ;;  %5703 = vmatprep.subr.bf16.mxu1 %v7237_v32 }
 0x5dc   :  { %6564 = vmatmul.mubr.msk.f32.gmra.mxu0 %vm4442_vm1, %v4516_v34  ;;  %6572 = vmatmul.mubr.msk.f32.gmra.mxu1 %vm4442_vm1, %v4516_v34  ;;  %v7289_v34 = vld [vmem:[#allocation8 + $0x300] ss:$16 sps:$4 sm:$0xff]  }
 0x5dd   :  { %4652 = vmatprep.mubr.f32.mxu0 %v7542_v63  ;;  %4765 = vmatprep.mubr.f32.mxu1 %v7542_v63  ;;  %v7232_v63 = vld [vmem:[#allocation8 + $0x20] ss:$16 sps:$4 sm:$0xff]  }
 0x5de   :  { %5663 = vmatpush1.bf16.msra.mxu0 %v7232_v63  ;;  %5704 = vmatpush1.bf16.msra.mxu1 %v7235_v38 }
 0x5df   :  { %5664 = vmatprep.subr.bf16.mxu0 %v7240_v60  ;;  %5705 = vmatprep.subr.bf16.mxu1 %v7243_v14 }
 0x5e0   :  { %6565 = vmatmul.mubr.msk.f32.gmra.mxu0 %vm4442_vm1, %v4517_v9  ;;  %6573 = vmatmul.mubr.msk.f32.gmra.mxu1 %vm4442_vm1, %v4517_v9  ;;  %v7294_v9 = vld [vmem:[#allocation8 + $0xec] ss:$16 sps:$4 sm:$0xff]  }
 0x5e2   :  { %5665 = vmatpush1.bf16.msra.mxu0 %v7238_v21  ;;  %5706 = vmatpush1.bf16.msra.mxu1 %v7241_v52 }
 0x5e3   :  { %5666 = vmatprep.subr.bf16.mxu0 %v7246_v42  ;;  %5707 = vmatprep.subr.bf16.mxu1 %v7249_v13 }
 0x5e6   :  { %5667 = vmatpush2.bf16.msra.mxu0 %v7244_v24  ;;  %5708 = vmatpush2.bf16.msra.mxu1 %v7247_v62 }
 0x5e7   :  { %5668 = vmatprep.subr.bf16.mxu0 %v7252_v7  ;;  %5709 = vmatprep.subr.bf16.mxu1 %v7255_v8 }
 0x5ea   :  { %5669 = vmatpush2.bf16.msra.mxu0 %v7250_v56  ;;  %5710 = vmatpush2.bf16.msra.mxu1 %v7253_v28 }
 0x5eb   :  { %5670 = vmatprep.subr.bf16.mxu0 %v7258_v31  ;;  %5711 = vmatprep.subr.bf16.mxu1 %v7261_v12  ;;  %v9425_v12 = vld [vmem:[#allocation50_spill] sm:$0xff] }
 0x5ee   :  { %5671 = vmatpush2.bf16.msra.mxu0 %v7256_v53  ;;  %5712 = vmatpush2.bf16.msra.mxu1 %v7259_v23 }
 0x5ef   :  { %5672 = vmatprep.subr.bf16.mxu0 %v7264_v61  ;;  %5713 = vmatprep.subr.bf16.mxu1 %v7267_v15  ;;  %v9426_v15 = vld [vmem:[#allocation60_spill] sm:$0xff] }
 0x5f2   :  { %5673 = vmatpush2.bf16.msra.mxu0 %v7262_v39  ;;  %5714 = vmatpush2.bf16.msra.mxu1 %v7265_v41 }
 0x5f3   :  { %5674 = vmatprep.subr.bf16.mxu0 %v7270_v57  ;;  %5715 = vmatprep.subr.bf16.mxu1 %v7273_v36  ;;  %v9427_v36 = vld [vmem:[#allocation51_spill] sm:$0xff] }
 0x5f6   :  { %5675 = vmatpush2.bf16.msra.mxu0 %v7268_v43  ;;  %5716 = vmatpush2.bf16.msra.mxu1 %v7271_v47  ;;  %v9428_v47 = vld [vmem:[#allocation61_spill] sm:$0xff] }
 0x5f7   :  { %5676 = vmatprep.subr.bf16.mxu0 %v7276_v20  ;;  %5717 = vmatprep.subr.bf16.mxu1 %v7279_v58 }
 0x5fa   :  { %5677 = vmatpush2.bf16.msra.mxu0 %v7274_v59  ;;  %5718 = vmatpush2.bf16.msra.mxu1 %v7277_v19  ;;  %v9429_v19 = vld [vmem:[#allocation52_spill] sm:$0xff] }
 0x5fb   :  { %5678 = vmatprep.subr.bf16.mxu0 %v7282_v50  ;;  %5719 = vmatprep.subr.bf16.mxu1 %v7285_v6  ;;  %v9430_v50 = vld [vmem:[#allocation62_spill] sm:$0xff] }
 0x5fe   :  { %5679 = vmatpush2.bf16.msra.mxu0 %v7280_v33  ;;  %5720 = vmatpush2.bf16.msra.mxu1 %v7283_v46 }
 0x5ff   :  { %5680 = vmatprep.subr.bf16.mxu0 %v7288_v27  ;;  %5721 = vmatprep.subr.bf16.mxu1 %v7291_v40 }
 0x602   :  { %5681 = vmatpush2.bf16.msra.mxu0 %v7286_v45  ;;  %5722 = vmatpush2.bf16.msra.mxu1 %v7289_v34  ;;  %v9431_v34 = vld [vmem:[#allocation53_spill] sm:$0xff] }
 0x603   :  { %5732 = vmatprep.subr.bf16.mxu0 %v7294_v9  ;;  %5773 = vmatprep.subr.bf16.mxu1 %v7297_v1  ;;  %v9432_v1 = vld [vmem:[#allocation63_spill] sm:$0xff] }
 0x684   :  { %v4612_v0 = vpop.f32.mrf.mxu0  ;;  %v4725_v55 = vpop.f32.mrf.mxu1 }
 0x685   :  { %v4772_v35 = vmul.f32 %v4612_v0, %v8671_v48  ;;  %v4774_v63 = vmul.f32 %v4725_v55, %v8861_v29 }
 0x686   :  { %v4614_v5 = vpop.f32.mrf.mxu0  ;;  %v4727_v18 = vpop.f32.mrf.mxu1 }
 0x687   :  { %v4773_v32 = vmul.f32 %v4614_v5, %v8681_v54  ;;  %v4775_v21 = vmul.f32 %v4727_v18, %v8863_v37 }
 0x688   :  { %v4618_v51 = vpop.f32.mrf.mxu0  ;;  %v4731_v26 = vpop.f32.mrf.mxu1 }
 0x689   :  { %v4776_v25 = vmul.f32 %v4618_v51, %v8689_v4  ;;  %v4778_v38 = vmul.f32 %v4731_v26, %v8868_v11  ;;  %v9433_v26 = vld [vmem:[#allocation54_spill] sm:$0xff] }
 0x68a   :  { %v4620_v60 = vpop.f32.mrf.mxu0  ;;  %v4733_v52 = vpop.f32.mrf.mxu1 }
 0x68b   :  { %v4804_v14 = vadd.f32 %v4776_v25, %v4772_v35  ;;  %v4830_v24 = vadd.f32 %v4778_v38, %v4774_v63  ;;  %v4777_v42 = vmul.f32 %v4620_v60, %v8697_v16  ;;  %v4779_v62 = vmul.f32 %v4733_v52, %v8876_v3  ;;  %v9434_v63 = vld [vmem:[#allocation64_spill] sm:$0xff]  ;;  %v9435_v52 = vld [vmem:[#allocation55_spill] sm:$0xff] }
 0x68c   :  { %v4624_v13 = vpop.f32.mrf.mxu0  ;;  %v4737_v48 = vpop.f32.mrf.mxu1 }
 0x68d   :  { %v4817_v56 = vadd.f32 %v4777_v42, %v4773_v32  ;;  %v4843_v29 = vadd.f32 %v4779_v62, %v4775_v21  ;;  %v4780_v4 = vmul.f32 %v4624_v13, %v8705_v30  ;;  %v4782_v11 = vmul.f32 %v4737_v48, %v8890_v22 }
 0x68e   :  { %v4626_v7 = vpop.f32.mrf.mxu0  ;;  %v4739_v54 = vpop.f32.mrf.mxu1 }
 0x68f   :  { %v4805_v28 = vadd.f32 %v4804_v14, %v4780_v4  ;;  %v4831_v37 = vadd.f32 %v4830_v24, %v4782_v11  ;;  %v4781_v8 = vmul.f32 %v4626_v7, %v8713_v44  ;;  %v4783_v53 = vmul.f32 %v4739_v54, %v8898_v2  ;;  %v9436_v24 = vld [vmem:[#allocation65_spill] sm:$0xff]  ;;  %v9438_v11 = vld [vmem:[#allocation66_spill] sm:$0xff] }
 0x690   :  { %v4630_v31 = vpop.f32.mrf.mxu0  ;;  %v4743_v16 = vpop.f32.mrf.mxu1 }
 0x691   :  { %v4818_v23 = vadd.f32 %v4817_v56, %v4781_v8  ;;  %v4844_v3 = vadd.f32 %v4843_v29, %v4783_v53  ;;  %v4784_v61 = vmul.f32 %v4630_v31, %v9425_v12  ;;  %v4786_v39 = vmul.f32 %v4743_v16, %v9426_v15  ;;  %v9437_v29 = vld [vmem:[#allocation56_spill] sm:$0xff]  ;;  %v9439_v53 = vld [vmem:[#allocation57_spill] sm:$0xff]  ;;  %v9440_v15 = vld [vmem:[#allocation58_spill] sm:$0xff] }
 0x692   :  { %v4632_v41 = vpop.f32.mrf.mxu0  ;;  %v4745_v30 = vpop.f32.mrf.mxu1 }
 0x693   :  { %v4806_v57 = vadd.f32 %v4805_v28, %v4784_v61  ;;  %v4832_v22 = vadd.f32 %v4831_v37, %v4786_v39  ;;  %v4785_v43 = vmul.f32 %v4632_v41, %v9427_v36  ;;  %v4787_v20 = vmul.f32 %v4745_v30, %v9428_v47  ;;  %v9441_v41 = vld [vmem:[#allocation67_spill] sm:$0xff] }
 0x694   :  { %v4636_v58 = vpop.f32.mrf.mxu0  ;;  %v4749_v44 = vpop.f32.mrf.mxu1  ;;  %v9442_v47 = vld [vmem:[#allocation59_spill] sm:$0xff] }
 0x695   :  { %v4819_v59 = vadd.f32 %v4818_v23, %v4785_v43  ;;  %v4845_v2 = vadd.f32 %v4844_v3, %v4787_v20  ;;  %v4788_v33 = vmul.f32 %v4636_v58, %v9429_v19  ;;  %v4790_v46 = vmul.f32 %v4749_v44, %v9430_v50 }
 0x696   :  { %v4638_v6 = vpop.f32.mrf.mxu0  ;;  %v4751_v27 = vpop.f32.mrf.mxu1 }
 0x697   :  { %v4807_v40 = vadd.f32 %v4806_v57, %v4788_v33  ;;  %v4833_v45 = vadd.f32 %v4832_v22, %v4790_v46  ;;  %v4789_v9 = vmul.f32 %v4638_v6, %v9431_v34  ;;  %v4791_v0 = vmul.f32 %v4751_v27, %v9432_v1 }
 0x698   :  { %v4642_v55 = vpop.f32.mrf.mxu0  ;;  %v4755_v5 = vpop.f32.mrf.mxu1 }
 0x699   :  { %v4820_v18 = vadd.f32 %v4819_v59, %v4789_v9  ;;  %v4846_v51 = vadd.f32 %v4845_v2, %v4791_v0  ;;  %v4792_v35 = vmul.f32 %v4642_v55, %v9433_v26  ;;  %v4794_v25 = vmul.f32 %v4755_v5, %v9434_v63 }
 0x69a   :  { %v4644_v38 = vpop.f32.mrf.mxu0  ;;  %v4757_v32 = vpop.f32.mrf.mxu1 }
 0x69b   :  { %v4808_v21 = vadd.f32 %v4807_v40, %v4792_v35  ;;  %v4834_v60 = vadd.f32 %v4833_v45, %v4794_v25  ;;  %v4793_v14 = vmul.f32 %v4644_v38, %v9435_v52  ;;  %v4795_v42 = vmul.f32 %v4757_v32, %v9436_v24  ;;  %v7295_v52 = vld [vmem:[#allocation8 + $0x2e8] ss:$16 sps:$4 sm:$0xff]  }
 0x69c   :  { %v4648_v62 = vpop.f32.mrf.mxu0  ;;  %v4761_v13 = vpop.f32.mrf.mxu1 }
 0x69d   :  { %v4821_v48 = vadd.f32 %v4820_v18, %v4793_v14  ;;  %v4847_v56 = vadd.f32 %v4846_v51, %v4795_v42  ;;  %v4796_v4 = vmul.f32 %v4648_v62, %v9437_v29  ;;  %v4798_v7 = vmul.f32 %v4761_v13, %v9438_v11  ;;  %v7300_v42 = vld [vmem:[#allocation8 + $0xcc] ss:$16 sps:$4 sm:$0xff]   ;;  %v7298_v13 = vld [vmem:[#allocation8 + $0xc8] ss:$16 sps:$4 sm:$0xff]  }
 0x69e   :  { %v4650_v54 = vpop.f32.mrf.mxu0  ;;  %v4763_v28 = vpop.f32.mrf.mxu1  ;;  %v7303_v62 = vld [vmem:[#allocation8 + $0x2cc] ss:$16 sps:$4 sm:$0xff]   ;;  %v7307_v11 = vld [vmem:[#allocation8 + $0x2a8] ss:$16 sps:$4 sm:$0xff]  }
 0x69f   :  { %v4809_v37 = vadd.f32 %v4808_v21, %v4796_v4  ;;  %v4835_v8 = vadd.f32 %v4834_v60, %v4798_v7  ;;  %v4797_v31 = vmul.f32 %v4650_v54, %v9439_v53  ;;  %v4799_v16 = vmul.f32 %v4763_v28, %v8917_v17  ;;  %v7292_v60 = vld [vmem:[#allocation8 + $0xe8] ss:$16 sps:$4 sm:$0xff]   ;;  %v7309_v29 = vld [vmem:[#allocation8 + $0x2ac] ss:$16 sps:$4 sm:$0xff]  }
 0x6a0   :  { %v4654_v23 = vpop.f32.mrf.mxu0  ;;  %v4767_v3 = vpop.f32.mrf.mxu1  ;;  %v7304_v4 = vld [vmem:[#allocation8 + $0xa8] ss:$16 sps:$4 sm:$0xff]   ;;  %v7312_v7 = vld [vmem:[#allocation8 + $0x8c] ss:$16 sps:$4 sm:$0xff]  }
 0x6a1   :  { %v4822_v12 = vadd.f32 %v4821_v48, %v4797_v31  ;;  %v4848_v61 = vadd.f32 %v4847_v56, %v4799_v16  ;;  %v4800_v39 = vmul.f32 %v4654_v23, %v9440_v15  ;;  %v4802_v30 = vmul.f32 %v4767_v3, %v9441_v41  ;;  %v7301_v48 = vld [vmem:[#allocation8 + $0x2c8] ss:$16 sps:$4 sm:$0xff]   ;;  %v7306_v56 = vld [vmem:[#allocation8 + $0xac] ss:$16 sps:$4 sm:$0xff]  }
 0x6a2   :  { %v4656_v57 = vpop.f32.mrf.mxu0  ;;  %v4769_v22 = vpop.f32.mrf.mxu1  ;;  %v7315_v54 = vld [vmem:[#allocation8 + $0x28c] ss:$16 sps:$4 sm:$0xff]   ;;  %v7310_v28 = vld [vmem:[#allocation8 + $0x88] ss:$16 sps:$4 sm:$0xff]  }
 0x6a3   :  { %v4810_v36 = vadd.f32 %v4809_v37, %v4800_v39  ;;  %v4836_v43 = vadd.f32 %v4835_v8, %v4802_v30  ;;  %v4801_v20 = vmul.f32 %v4656_v57, %v9442_v47  ;;  %v4803_v58 = vmul.f32 %v4769_v22, %v8921_v49  ;;  %v7313_v37 = vld [vmem:[#allocation8 + $0x288] ss:$16 sps:$4 sm:$0xff]   ;;  %v7318_v8 = vld [vmem:[#allocation8 + $0x6c] ss:$16 sps:$4 sm:$0xff]  }
 0x6a4   :  { %v7321_v53 = vld [vmem:[#allocation8 + $0x26c] ss:$16 sps:$4 sm:$0xff]   ;;  %v7316_v31 = vld [vmem:[#allocation8 + $0x68] ss:$16 sps:$4 sm:$0xff]  }
 0x6a5   :  { %v4811_v44 = vrot.slane %v4810_v36, 4  ;;  %v4837_v59 = vrot.slane %v4836_v43, 4  ;;  %v4823_v2 = vadd.f32 %v4822_v12, %v4801_v20  ;;  %v4849_v17 = vadd.f32 %v4848_v61, %v4803_v58  ;;  %v7319_v16 = vld [vmem:[#allocation8 + $0x268] ss:$16 sps:$4 sm:$0xff]   ;;  %v7324_v23 = vld [vmem:[#allocation8 + $0x4c] ss:$16 sps:$4 sm:$0xff]  }
 0x6a6   :  { %v7327_v3 = vld [vmem:[#allocation8 + $0x24c] ss:$16 sps:$4 sm:$0xff]   ;;  %v7322_v12 = vld [vmem:[#allocation8 + $0x48] ss:$16 sps:$4 sm:$0xff]  }
 0x6a7   :  { %v4812_v19 = vadd.f32 %v4811_v44, %v4810_v36  ;;  %v4838_v33 = vadd.f32 %v4837_v59, %v4836_v43  ;;  %v4824_v50 = vrot.slane %v4823_v2, 4  ;;  %v4850_v46 = vrot.slane %v4849_v17, 4  ;;  %v7325_v61 = vld [vmem:[#allocation8 + $0x248] ss:$16 sps:$4 sm:$0xff]   ;;  %v7330_v15 = vld [vmem:[#allocation8 + $0x2c] ss:$16 sps:$4 sm:$0xff]  }
 0x6a8   :  { %v7333_v39 = vld [vmem:[#allocation8 + $0x22c] ss:$16 sps:$4 sm:$0xff]   ;;  %v7328_v41 = vld [vmem:[#allocation8 + $0x28] ss:$16 sps:$4 sm:$0xff]  }
 0x6a9   :  { %v4813_v6 = vrot.slane %v4812_v19, 2  ;;  %v4839_v27 = vrot.slane %v4838_v33, 2  ;;  %v4825_v40 = vadd.f32 %v4824_v50, %v4823_v2  ;;  %v4851_v45 = vadd.f32 %v4850_v46, %v4849_v17  ;;  %v7331_v30 = vld [vmem:[#allocation8 + $0x228] ss:$16 sps:$4 sm:$0xff]   ;;  %v7336_v57 = vld [vmem:[#allocation8 + $0xc] ss:$16 sps:$4 sm:$0xff]  }
 0x6aa   :  { %v7339_v22 = vld [vmem:[#allocation8 + $0x20c] ss:$16 sps:$4 sm:$0xff]   ;;  %v7334_v36 = vld [vmem:[#allocation8 + $0x8] ss:$16 sps:$4 sm:$0xff]  }
 0x6ab   :  { %v4814_v34 = vadd.f32 %v4813_v6, %v4812_v19  ;;  %v4840_v9 = vadd.f32 %v4839_v27, %v4838_v33  ;;  %v4826_v1 = vrot.slane %v4825_v40, 2  ;;  %v4852_v0 = vrot.slane %v4851_v45, 2  ;;  %v7337_v43 = vld [vmem:[#allocation8 + $0x208] ss:$16 sps:$4 sm:$0xff]   ;;  %v7342_v47 = vld [vmem:[#allocation8 + $0x1ec] ss:$16 sps:$4 sm:$0xff]  }
 0x6ac   :  { %v7345_v20 = vld [vmem:[#allocation8 + $0x3ec] ss:$16 sps:$4 sm:$0xff]   ;;  %v7340_v58 = vld [vmem:[#allocation8 + $0x1e8] ss:$16 sps:$4 sm:$0xff]  }
 0x6ad   :  { %v4815_v55 = vrot.slane %v4814_v34, 1  ;;  %v4841_v5 = vrot.slane %v4840_v9, 1  ;;  %v4827_v18 = vadd.f32 %v4826_v1, %v4825_v40  ;;  %v4853_v49 = vadd.f32 %v4852_v0, %v4851_v45  ;;  %v7343_v44 = vld [vmem:[#allocation8 + $0x3e8] ss:$16 sps:$4 sm:$0xff]   ;;  %v7348_v59 = vld [vmem:[#allocation8 + $0x1cc] ss:$16 sps:$4 sm:$0xff]  }
 0x6ae   :  { %v7351_v2 = vld [vmem:[#allocation8 + $0x3cc] ss:$16 sps:$4 sm:$0xff]   ;;  %v7346_v17 = vld [vmem:[#allocation8 + $0x1c8] ss:$16 sps:$4 sm:$0xff]  }
 0x6af   :  { %v4828_v51 = vrot.slane %v4827_v18, 1  ;;  %v4854_v26 = vrot.slane %v4853_v49, 1  ;;  %v4816_v35 = vadd.f32 %v4815_v55, %v4814_v34  ;;  %v4842_v63 = vadd.f32 %v4841_v5, %v4840_v9  ;;  %v7349_v19 = vld [vmem:[#allocation8 + $0x3c8] ss:$16 sps:$4 sm:$0xff]   ;;  %v7354_v33 = vld [vmem:[#allocation8 + $0x1ac] ss:$16 sps:$4 sm:$0xff]  }
 0x6b0   :  { %v7357_v50 = vld [vmem:[#allocation8 + $0x3ac] ss:$16 sps:$4 sm:$0xff]   ;;  %v7352_v46 = vld [vmem:[#allocation8 + $0x1a8] ss:$16 sps:$4 sm:$0xff]  }
 0x6b1   :  { %v4829_v25 = vadd.f32 %v4828_v51, %v4827_v18  ;;  %v4855_v38 = vadd.f32 %v4854_v26, %v4853_v49  ;;  %v9078_v14 = vpack.c.bf16 %v4816_v35, %v4816_v35  ;;  %v9080_v24 = vpack.c.bf16 %v4842_v63, %v4842_v63  ;;  %v7355_v6 = vld [vmem:[#allocation8 + $0x3a8] ss:$16 sps:$4 sm:$0xff]   ;;  %v7360_v27 = vld [vmem:[#allocation8 + $0x18c] ss:$16 sps:$4 sm:$0xff]  }
 0x6b2   :  { %v7363_v40 = vld [vmem:[#allocation8 + $0x38c] ss:$16 sps:$4 sm:$0xff]   ;;  %v7358_v45 = vld [vmem:[#allocation8 + $0x188] ss:$16 sps:$4 sm:$0xff]  }
 0x6b3   :  { %v4857_v32 = vpack.c.bf16 %v4829_v25, %v4829_v25  ;;  %v4859_v21 = vpack.c.bf16 %v4855_v38, %v4855_v38  ;;  %v7361_v34 = vld [vmem:[#allocation8 + $0x388] ss:$16 sps:$4 sm:$0xff]   ;;  %v7366_v9 = vld [vmem:[#allocation8 + $0x16c] ss:$16 sps:$4 sm:$0xff]  }
 0x6b4   :  { %v7369_v1 = vld [vmem:[#allocation8 + $0x36c] ss:$16 sps:$4 sm:$0xff]   ;;  %v7364_v0 = vld [vmem:[#allocation8 + $0x168] ss:$16 sps:$4 sm:$0xff]  }
 0x6b5   :  { %5682 = vmatprep.mubr.bf16.mxu0 %v4857_v32  ;;  %5723 = vmatprep.mubr.bf16.mxu1 %v4859_v21  ;;  %v7367_v55 = vld [vmem:[#allocation8 + $0x368] ss:$16 sps:$4 sm:$0xff]   ;;  %v7372_v5 = vld [vmem:[#allocation8 + $0x14c] ss:$16 sps:$4 sm:$0xff]  }
 0x6b6   :  { %5683 = vmatmul.mubr.bf16.vlgmr.msra.gmra.mxu0 %v9078_v14  ;;  %5724 = vmatmul.mubr.bf16.vlgmr.msra.gmra.mxu1 %v9080_v24  ;;  %v7375_v18 = vld [vmem:[#allocation8 + $0x34c] ss:$16 sps:$4 sm:$0xff]   ;;  %v7370_v49 = vld [vmem:[#allocation8 + $0x148] ss:$16 sps:$4 sm:$0xff]  }
 0x6b7   :  { %5733 = vmatpush1.bf16.msra.mxu0 %v7292_v60  ;;  %5774 = vmatpush1.bf16.msra.mxu1 %v7295_v52  ;;  %v7373_v51 = vld [vmem:[#allocation8 + $0x348] ss:$16 sps:$4 sm:$0xff]   ;;  %v7378_v26 = vld [vmem:[#allocation8 + $0x12c] ss:$16 sps:$4 sm:$0xff]  }
 0x6b8   :  { %5764 = vmatprep.mubr.bf16.mxu0 %v4857_v32  ;;  %5805 = vmatprep.mubr.bf16.mxu1 %v4859_v21  ;;  %v7381_v35 = vld [vmem:[#allocation8 + $0x32c] ss:$16 sps:$4 sm:$0xff]   ;;  %v7376_v63 = vld [vmem:[#allocation8 + $0x128] ss:$16 sps:$4 sm:$0xff]  }
 0x6b9   :  { %5734 = vmatprep.subr.bf16.mxu0 %v7300_v42  ;;  %5775 = vmatprep.subr.bf16.mxu1 %v7303_v62  ;;  %v7379_v25 = vld [vmem:[#allocation8 + $0x328] ss:$16 sps:$4 sm:$0xff]   ;;  %v7384_v38 = vld [vmem:[#allocation8 + $0x10c] ss:$16 sps:$4 sm:$0xff]   ;;  %v5908_v62 = vld [vmem:[%s9333_s10 + $0xf0] sm:$0xff] }
 0x6ba   :  { %v7387_v32 = vld [vmem:[#allocation8 + $0x30c] ss:$16 sps:$4 sm:$0xff]   ;;  %v7382_v21 = vld [vmem:[#allocation8 + $0x108] ss:$16 sps:$4 sm:$0xff]  }
 0x6bb   :  { %5735 = vmatpush1.bf16.msra.mxu0 %v7298_v13  ;;  %5776 = vmatpush1.bf16.msra.mxu1 %v7301_v48  ;;  %v7385_v60 = vld [vmem:[#allocation8 + $0x308] ss:$16 sps:$4 sm:$0xff]   ;;  %v5892_v13 = vld [vmem:[%s9333_s10 + $0x70] sm:$0xff] }
 0x6bc   :  { %5736 = vmatprep.subr.bf16.mxu0 %v7306_v56  ;;  %5777 = vmatprep.subr.bf16.mxu1 %v7309_v29  ;;  %v5909_v52 = vld [vmem:[%s9333_s10 + $0xf8] sm:$0xff]  ;;  %v5907_v48 = vld [vmem:[%s9333_s10 + $0xe8] sm:$0xff] }
 0x6bd   :  { %v5893_v42 = vld [vmem:[%s9333_s10 + $0x78] sm:$0xff]  ;;  %v5891_v56 = vld [vmem:[%s9333_s10 + $0x68] sm:$0xff] }
 0x6be   :  { %v5905_v29 = vld [vmem:[%s9333_s10 + $0xd8] sm:$0xff] }
 0x6bf   :  { %5737 = vmatpush1.bf16.msra.mxu0 %v7304_v4  ;;  %5778 = vmatpush1.bf16.msra.mxu1 %v7307_v11  ;;  %v5889_v4 = vld [vmem:[%s9333_s10 + $0x58] sm:$0xff]  ;;  %v5904_v11 = vld [vmem:[%s9333_s10 + $0xd0] sm:$0xff] }
 0x6c0   :  { %5738 = vmatprep.subr.bf16.mxu0 %v7312_v7  ;;  %5779 = vmatprep.subr.bf16.mxu1 %v7315_v54  ;;  %v5888_v7 = vld [vmem:[%s9333_s10 + $0x50] sm:$0xff]  ;;  %v5903_v54 = vld [vmem:[%s9333_s10 + $0xc8] sm:$0xff] }
 0x6c3   :  { %5739 = vmatpush1.bf16.msra.mxu0 %v7310_v28  ;;  %5780 = vmatpush1.bf16.msra.mxu1 %v7313_v37  ;;  %v5887_v28 = vld [vmem:[%s9333_s10 + $0x48] sm:$0xff]  ;;  %v5902_v37 = vld [vmem:[%s9333_s10 + $0xc0] sm:$0xff] }
 0x6c4   :  { %5740 = vmatprep.subr.bf16.mxu0 %v7318_v8  ;;  %5781 = vmatprep.subr.bf16.mxu1 %v7321_v53  ;;  %v5886_v8 = vld [vmem:[%s9333_s10 + $0x40] sm:$0xff]  ;;  %v5941_v53 = vld [vmem:[%s9333_s10 + $0x1f8] sm:$0xff] }
 0x6c7   :  { %5741 = vmatpush1.bf16.msra.mxu0 %v7316_v31  ;;  %5782 = vmatpush1.bf16.msra.mxu1 %v7319_v16  ;;  %v5925_v31 = vld [vmem:[%s9333_s10 + $0x178] sm:$0xff]  ;;  %v5940_v16 = vld [vmem:[%s9333_s10 + $0x1f0] sm:$0xff] }
 0x6c8   :  { %5742 = vmatprep.subr.bf16.mxu0 %v7324_v23  ;;  %5783 = vmatprep.subr.bf16.mxu1 %v7327_v3  ;;  %v5901_v23 = vld [vmem:[%s9333_s10 + $0xb8] sm:$0xff]  ;;  %v5924_v3 = vld [vmem:[%s9333_s10 + $0x170] sm:$0xff] }
 0x6cb   :  { %5743 = vmatpush1.bf16.msra.mxu0 %v7322_v12  ;;  %5784 = vmatpush1.bf16.msra.mxu1 %v7325_v61  ;;  %v5885_v12 = vld [vmem:[%s9333_s10 + $0x38] sm:$0xff]  ;;  %v5939_v61 = vld [vmem:[%s9333_s10 + $0x1e8] sm:$0xff] }
 0x6cc   :  { %5744 = vmatprep.subr.bf16.mxu0 %v7330_v15  ;;  %5785 = vmatprep.subr.bf16.mxu1 %v7333_v39  ;;  %v5900_v15 = vld [vmem:[%s9333_s10 + $0xb0] sm:$0xff]  ;;  %v5923_v39 = vld [vmem:[%s9333_s10 + $0x168] sm:$0xff] }
 0x6cf   :  { %5745 = vmatpush1.bf16.msra.mxu0 %v7328_v41  ;;  %5786 = vmatpush1.bf16.msra.mxu1 %v7331_v30  ;;  %v5884_v41 = vld [vmem:[%s9333_s10 + $0x30] sm:$0xff]  ;;  %v5938_v30 = vld [vmem:[%s9333_s10 + $0x1e0] sm:$0xff] }
 0x6d0   :  { %5746 = vmatprep.subr.bf16.mxu0 %v7336_v57  ;;  %5787 = vmatprep.subr.bf16.mxu1 %v7339_v22  ;;  %v5899_v57 = vld [vmem:[%s9333_s10 + $0xa8] sm:$0xff]  ;;  %v5922_v22 = vld [vmem:[%s9333_s10 + $0x160] sm:$0xff] }
 0x6d3   :  { %5747 = vmatpush1.bf16.msra.mxu0 %v7334_v36  ;;  %5788 = vmatpush1.bf16.msra.mxu1 %v7337_v43  ;;  %v5883_v36 = vld [vmem:[%s9333_s10 + $0x28] sm:$0xff]  ;;  %v5937_v43 = vld [vmem:[%s9333_s10 + $0x1d8] sm:$0xff] }
 0x6d4   :  { %5748 = vmatprep.subr.bf16.mxu0 %v7342_v47  ;;  %5789 = vmatprep.subr.bf16.mxu1 %v7345_v20  ;;  %v5898_v47 = vld [vmem:[%s9333_s10 + $0xa0] sm:$0xff]  ;;  %v5921_v20 = vld [vmem:[%s9333_s10 + $0x158] sm:$0xff] }
 0x6d7   :  { %5749 = vmatpush2.bf16.msra.mxu0 %v7340_v58  ;;  %5790 = vmatpush2.bf16.msra.mxu1 %v7343_v44  ;;  %v5882_v58 = vld [vmem:[%s9333_s10 + $0x20] sm:$0xff]  ;;  %v5936_v44 = vld [vmem:[%s9333_s10 + $0x1d0] sm:$0xff] }
 0x6d8   :  { %5750 = vmatprep.subr.bf16.mxu0 %v7348_v59  ;;  %5791 = vmatprep.subr.bf16.mxu1 %v7351_v2  ;;  %v5897_v59 = vld [vmem:[%s9333_s10 + $0x98] sm:$0xff]  ;;  %v5920_v2 = vld [vmem:[%s9333_s10 + $0x150] sm:$0xff] }
 0x6db   :  { %5751 = vmatpush2.bf16.msra.mxu0 %v7346_v17  ;;  %5792 = vmatpush2.bf16.msra.mxu1 %v7349_v19  ;;  %v5881_v17 = vld [vmem:[%s9333_s10 + $0x18] sm:$0xff]  ;;  %v5935_v19 = vld [vmem:[%s9333_s10 + $0x1c8] sm:$0xff] }
 0x6dc   :  { %5752 = vmatprep.subr.bf16.mxu0 %v7354_v33  ;;  %5793 = vmatprep.subr.bf16.mxu1 %v7357_v50  ;;  %v5896_v33 = vld [vmem:[%s9333_s10 + $0x90] sm:$0xff]  ;;  %v5919_v50 = vld [vmem:[%s9333_s10 + $0x148] sm:$0xff] }
 0x6df   :  { %5753 = vmatpush2.bf16.msra.mxu0 %v7352_v46  ;;  %5794 = vmatpush2.bf16.msra.mxu1 %v7355_v6  ;;  %v5880_v46 = vld [vmem:[%s9333_s10 + $0x10] sm:$0xff]  ;;  %v5934_v6 = vld [vmem:[%s9333_s10 + $0x1c0] sm:$0xff] }
 0x6e0   :  { %5754 = vmatprep.subr.bf16.mxu0 %v7360_v27  ;;  %5795 = vmatprep.subr.bf16.mxu1 %v7363_v40  ;;  %v5895_v27 = vld [vmem:[%s9333_s10 + $0x88] sm:$0xff]  ;;  %v5918_v40 = vld [vmem:[%s9333_s10 + $0x140] sm:$0xff] }
 0x6e3   :  { %5755 = vmatpush2.bf16.msra.mxu0 %v7358_v45  ;;  %5796 = vmatpush2.bf16.msra.mxu1 %v7361_v34  ;;  %v5879_v45 = vld [vmem:[%s9333_s10 + $0x8] sm:$0xff]  ;;  %v5933_v34 = vld [vmem:[%s9333_s10 + $0x1b8] sm:$0xff] }
 0x6e4   :  { %5756 = vmatprep.subr.bf16.mxu0 %v7366_v9  ;;  %5797 = vmatprep.subr.bf16.mxu1 %v7369_v1  ;;  %v5894_v9 = vld [vmem:[%s9333_s10 + $0x80] sm:$0xff]  ;;  %v5917_v1 = vld [vmem:[%s9333_s10 + $0x138] sm:$0xff] }
 0x6e7   :  { %5757 = vmatpush2.bf16.msra.mxu0 %v7364_v0  ;;  %5798 = vmatpush2.bf16.msra.mxu1 %v7367_v55  ;;  %v5878_v0 = vld [vmem:[%s9333_s10] sm:$0xff]  ;;  %v5932_v55 = vld [vmem:[%s9333_s10 + $0x1b0] sm:$0xff] }
 0x6e8   :  { %5758 = vmatprep.subr.bf16.mxu0 %v7372_v5  ;;  %5799 = vmatprep.subr.bf16.mxu1 %v7375_v18  ;;  %v5916_v5 = vld [vmem:[%s9333_s10 + $0x130] sm:$0xff]  ;;  %v5931_v18 = vld [vmem:[%s9333_s10 + $0x1a8] sm:$0xff] }
 0x6eb   :  { %5759 = vmatpush2.bf16.msra.mxu0 %v7370_v49  ;;  %5800 = vmatpush2.bf16.msra.mxu1 %v7373_v51  ;;  %v5915_v49 = vld [vmem:[%s9333_s10 + $0x128] sm:$0xff]  ;;  %v5930_v51 = vld [vmem:[%s9333_s10 + $0x1a0] sm:$0xff] }
 0x6ec   :  { %5760 = vmatprep.subr.bf16.mxu0 %v7378_v26  ;;  %5801 = vmatprep.subr.bf16.mxu1 %v7381_v35  ;;  %v5914_v26 = vld [vmem:[%s9333_s10 + $0x120] sm:$0xff]  ;;  %v5929_v35 = vld [vmem:[%s9333_s10 + $0x198] sm:$0xff] }
 0x6ef   :  { %5761 = vmatpush2.bf16.msra.mxu0 %v7376_v63  ;;  %5802 = vmatpush2.bf16.msra.mxu1 %v7379_v25  ;;  %v5913_v63 = vld [vmem:[%s9333_s10 + $0x118] sm:$0xff]  ;;  %v5928_v25 = vld [vmem:[%s9333_s10 + $0x190] sm:$0xff] }
 0x6f0   :  { %5762 = vmatprep.subr.bf16.mxu0 %v7384_v38  ;;  %5803 = vmatprep.subr.bf16.mxu1 %v7387_v32  ;;  %v5912_v38 = vld [vmem:[%s9333_s10 + $0x110] sm:$0xff]  ;;  %v5927_v32 = vld [vmem:[%s9333_s10 + $0x188] sm:$0xff] }
 0x6f3   :  { %5763 = vmatpush2.bf16.msra.mxu0 %v7382_v21  ;;  %5804 = vmatpush2.bf16.msra.mxu1 %v7385_v60  ;;  %v5911_v21 = vld [vmem:[%s9333_s10 + $0x108] sm:$0xff]  ;;  %v5926_v60 = vld [vmem:[%s9333_s10 + $0x180] sm:$0xff] }
 0x6f4   :  { %6814 = vmatprep.subr.mxu0 %v5909_v52  ;;  %6849 = vmatprep.subr.mxu1 %v5941_v53  ;;  %v5910_v52 = vld [vmem:[%s9333_s10 + $0x100] sm:$0xff] }
 0x6f6   :  { %5765 = vmatmul.mubr.bf16.vlgmr.msra.gmra.mxu0 %v9078_v14  ;;  %5806 = vmatmul.mubr.bf16.vlgmr.msra.gmra.mxu1 %v9080_v24  ;;  %v5906_v14 = vld [vmem:[%s9333_s10 + $0xe0] sm:$0xff] }
 0x6f7   :  { %6815 = vmatpush3.msra.mxu0 %v5893_v42  ;;  %v5890_v24 = vld [vmem:[%s9333_s10 + $0x60] sm:$0xff]  ;;  %6850 = vmatpush3.msra.mxu1 %v5925_v31 }
 0x6f8   :  { %6816 = vmatprep.subr.mxu0 %v5908_v62  ;;  %6851 = vmatprep.subr.mxu1 %v5940_v16  ;;  %v9443_v42 = vld [vmem:[#allocation19_spill] sm:$0xff]  ;;  %v9452_v31 = vld [vmem:[#allocation34_spill] sm:$0xff] }
 0x6f9   :  { %6817 = vmatpush3.msra.mxu0 %v5892_v13  ;;  %6852 = vmatpush3.msra.mxu1 %v5924_v3  ;;  %v9444_v62 = vld [vmem:[#allocation23_spill] sm:$0xff] }
 0x6fa   :  { %6818 = vmatprep.subr.mxu0 %v5907_v48  ;;  %6853 = vmatprep.subr.mxu1 %v5939_v61  ;;  %v5814_v13 = vadd.f32 %v9444_v62, %v9443_v42  ;;  %v9445_v48 = vld [vmem:[#allocation18_spill] sm:$0xff]  ;;  %v9462_v62 = vld [vmem:[#allocation21_spill] sm:$0xff] }
 0x6fb   :  { %6819 = vmatpush3.msra.mxu0 %v5891_v56  ;;  %6854 = vmatpush3.msra.mxu1 %v5923_v39  ;;  %v9446_v56 = vld [vmem:[#allocation22_spill] sm:$0xff] }
 0x6fc   :  { %6820 = vmatprep.subr.mxu0 %v5906_v14  ;;  %6855 = vmatprep.subr.mxu1 %v5938_v30  ;;  %v5827_v14 = vadd.f32 %v9446_v56, %v9445_v48  ;;  %v9464_v56 = vld [vmem:[#allocation28_spill] sm:$0xff] }
 0x6fd   :  { %6821 = vmatpush3.msra.mxu0 %v5890_v24  ;;  %6856 = vmatpush3.msra.mxu1 %v5922_v22  ;;  %v9447_v24 = vld [vmem:[#allocation27_spill] sm:$0xff] }
 0x6fe   :  { %6822 = vmatprep.subr.mxu0 %v5905_v29  ;;  %6857 = vmatprep.subr.mxu1 %v5937_v43  ;;  %v5815_v29 = vadd.f32 %v5814_v13, %v9447_v24  ;;  %v9463_v13 = vld [vmem:[#allocation26_spill] sm:$0xff]  ;;  %v9465_v24 = vld [vmem:[#allocation29_spill] sm:$0xff] }
 0x6ff   :  { %6823 = vmatpush3.msra.mxu0 %v5889_v4  ;;  %6858 = vmatpush3.msra.mxu1 %v5921_v20  ;;  %v9448_v4 = vld [vmem:[#allocation25_spill] sm:$0xff]  ;;  %v5853_v48 = vadd.f32 %v9463_v13, %v9462_v62 }
 0x700   :  { %6824 = vmatprep.subr.mxu0 %v5904_v11  ;;  %6859 = vmatprep.subr.mxu1 %v5936_v44  ;;  %v5828_v11 = vadd.f32 %v5827_v14, %v9448_v4  ;;  %v9466_v4 = vld [vmem:[#allocation32_spill] sm:$0xff] }
 0x701   :  { %6825 = vmatpush3.msra.mxu0 %v5888_v7  ;;  %6860 = vmatpush3.msra.mxu1 %v5920_v2  ;;  %v9449_v7 = vld [vmem:[#allocation30_spill] sm:$0xff] }
 0x702   :  { %6826 = vmatprep.subr.mxu0 %v5903_v54  ;;  %6861 = vmatprep.subr.mxu1 %v5935_v19  ;;  %v5816_v54 = vadd.f32 %v5815_v29, %v9449_v7  ;;  %v5854_v29 = vadd.f32 %v5853_v48, %v9465_v24  ;;  %v9467_v7 = vld [vmem:[#allocation33_spill] sm:$0xff] }
 0x703   :  { %6827 = vmatpush3.msra.mxu0 %v5887_v28  ;;  %6862 = vmatpush3.msra.mxu1 %v5919_v50  ;;  %v9450_v28 = vld [vmem:[#allocation31_spill] sm:$0xff] }
 0x704   :  { %6828 = vmatprep.subr.mxu0 %v5902_v37  ;;  %6863 = vmatprep.subr.mxu1 %v5934_v6  ;;  %v5829_v37 = vadd.f32 %v5828_v11, %v9450_v28  ;;  %v9468_v28 = vld [vmem:[#allocation36_spill] sm:$0xff] }
 0x705   :  { %6829 = vmatpush3.msra.mxu0 %v5886_v8  ;;  %6864 = vmatpush3.msra.mxu1 %v5918_v40  ;;  %v9451_v8 = vld [vmem:[#allocation35_spill] sm:$0xff] }
 0x706   :  { %6830 = vmatprep.subr.mxu0 %v5901_v23  ;;  %6865 = vmatprep.subr.mxu1 %v5933_v34  ;;  %v5817_v53 = vadd.f32 %v5816_v54, %v9451_v8  ;;  %v5830_v16 = vadd.f32 %v5829_v37, %v9452_v31  ;;  %v9453_v23 = vld [vmem:[#allocation39_spill] sm:$0xff]  ;;  %v5855_v54 = vadd.f32 %v5854_v29, %v9467_v7  ;;  %v9469_v8 = vld [vmem:[#allocation38_spill] sm:$0xff]  ;;  %v9470_v31 = vld [vmem:[#allocation40_spill] sm:$0xff] }
 0x707   :  { %6831 = vmatpush3.msra.mxu0 %v5885_v12  ;;  %6866 = vmatpush3.msra.mxu1 %v5917_v1  ;;  %v9454_v12 = vld [vmem:[#allocation37_spill] sm:$0xff] }
 0x708   :  { %6832 = vmatprep.subr.mxu0 %v5900_v15  ;;  %6867 = vmatprep.subr.mxu1 %v5932_v55  ;;  %v5818_v3 = vadd.f32 %v5817_v53, %v9453_v23  ;;  %v5831_v61 = vadd.f32 %v5830_v16, %v9454_v12  ;;  %v9455_v15 = vld [vmem:[#allocation42_spill] sm:$0xff]  ;;  %v5856_v53 = vadd.f32 %v5855_v54, %v9469_v8  ;;  %v9471_v23 = vld [vmem:[#allocation41_spill] sm:$0xff]  ;;  %v9472_v12 = vld [vmem:[#allocation44_spill] sm:$0xff] }
 0x709   :  { %6833 = vmatpush3.msra.mxu0 %v5884_v41  ;;  %6868 = vmatpush3.msra.mxu1 %v5916_v5  ;;  %v9456_v41 = vld [vmem:[#allocation43_spill] sm:$0xff] }
 0x70a   :  { %6834 = vmatprep.subr.mxu0 %v5899_v57  ;;  %6869 = vmatprep.subr.mxu1 %v5931_v18  ;;  %v5819_v39 = vadd.f32 %v5818_v3, %v9455_v15  ;;  %v5832_v30 = vadd.f32 %v5831_v61, %v9456_v41  ;;  %v9457_v57 = vld [vmem:[#allocation47_spill] sm:$0xff]  ;;  %v5857_v3 = vadd.f32 %v5856_v53, %v9471_v23  ;;  %v9473_v15 = vld [vmem:[#allocation46_spill] sm:$0xff]  ;;  %v9474_v41 = vld [vmem:[#allocation48_spill] sm:$0xff] }
 0x70b   :  { %6835 = vmatpush3.msra.mxu0 %v5883_v36  ;;  %6870 = vmatpush3.msra.mxu1 %v5915_v49  ;;  %v9458_v36 = vld [vmem:[#allocation45_spill] sm:$0xff] }
 0x70c   :  { %6836 = vmatprep.subr.mxu0 %v5898_v47  ;;  %6871 = vmatprep.subr.mxu1 %v5930_v51  ;;  %v5820_v22 = vadd.f32 %v5819_v39, %v9457_v57  ;;  %v5833_v43 = vadd.f32 %v5832_v30, %v9458_v36  ;;  %v5858_v39 = vadd.f32 %v5857_v3, %v9473_v15  ;;  %v9475_v57 = vld [vmem:[#allocation49_spill] sm:$0xff] }
 0x70d   :  { %6837 = vmatpush3.msra.mxu0 %v5882_v58  ;;  %6872 = vmatpush3.msra.mxu1 %v5914_v26 }
 0x70e   :  { %6838 = vmatprep.subr.mxu0 %v5897_v59  ;;  %6873 = vmatprep.subr.mxu1 %v5929_v35  ;;  %v5821_v47 = vrot.slane %v5820_v22, 4  ;;  %v5834_v20 = vrot.slane %v5833_v43, 4 }
 0x70f   :  { %6839 = vmatpush3.msra.mxu0 %v5881_v17  ;;  %6874 = vmatpush3.msra.mxu1 %v5913_v63  ;;  %v4988_v17 = vld [vmem:[%s9330_s7] sm:$0xf] }
 0x710   :  { %6840 = vmatprep.subr.mxu0 %v5896_v33  ;;  %6875 = vmatprep.subr.mxu1 %v5928_v25  ;;  %v5822_v58 = vadd.f32 %v5821_v47, %v5820_v22  ;;  %v5835_v44 = vadd.f32 %v5834_v20, %v5833_v43  ;;  %v5633_v33 = vrot.slane %v4988_v17, %v7627_v10 }
 0x711   :  { %6841 = vmatpush3.msra.mxu0 %v5880_v46  ;;  %6876 = vmatpush3.msra.mxu1 %v5912_v38  ;;  %v9459_v46 = vld [vmem:[#allocation16_spill] sm:$0xff]  ;;  %v5859_v22 = vadd.f32 %v5858_v39, %v9475_v57 }
 0x712   :  { %6842 = vmatprep.subr.mxu0 %v5895_v27  ;;  %6877 = vmatprep.subr.mxu1 %v5927_v32  ;;  %v5823_v59 = vrot.slane %v5822_v58, 2  ;;  %v5836_v2 = vrot.slane %v5835_v44, 2  ;;  %v5637_v6 = vrot.slane %v4988_v17, %v9459_v46 }
 0x713   :  { %6843 = vmatpush3.msra.mxu0 %v5879_v45  ;;  %6878 = vmatpush3.msra.mxu1 %v5911_v21  ;;  %v5860_v43 = vrot.slane %v5859_v22, 4 }
 0x714   :  { %6844 = vmatprep.subr.mxu0 %v5894_v9  ;;  %6879 = vmatprep.subr.mxu1 %v5926_v60  ;;  %v5824_v19 = vadd.f32 %v5823_v59, %v5822_v58  ;;  %v5837_v50 = vadd.f32 %v5836_v2, %v5835_v44  ;;  %v9460_v60 = vld [vmem:[#allocation20_spill] sm:$0xff]  ;;  %v9476_v2 = vld [vmem:[#allocation15_spill] sm:$0xff] }
 0x715   :  { %6845 = vmatpush3.msra.mxu0 %v5878_v0  ;;  %6880 = vmatpush3.msra.mxu1 %v5910_v52  ;;  %v9461_v52 = vld [vmem:[#allocation24_spill] sm:$0xff]  ;;  %v5861_v20 = vadd.f32 %v5860_v43, %v5859_v22 }
 0x716   :  { %v5825_v45 = vrot.slane %v5824_v19, 1  ;;  %v5838_v9 = vrot.slane %v5837_v50, 1  ;;  %v5840_v42 = vadd.f32 %v9461_v52, %v9460_v60  ;;  %v5942_v52 = vld [vmem:[%s9334_s11] sm:$0x1] }
 0x717   :  { %v5862_v44 = vrot.slane %v5861_v20, 2 }
 0x718   :  { %v5826_v18 = vadd.f32 %v5825_v45, %v5824_v19  ;;  %v5839_v35 = vadd.f32 %v5838_v9, %v5837_v50  ;;  %v5841_v14 = vadd.f32 %v5840_v42, %v9464_v56  ;;  %v5641_v19 = vrot.slane %v4988_v17, %v9476_v2  ;;  %v9477_v50 = vld [vmem:[#allocation17_spill] sm:$0xff] }
 0x719   :  { %v5645_v46 = vrot.slane %v4988_v17, %v9477_v50 }
 0x71a   :  { %v5842_v11 = vadd.f32 %v5841_v14, %v9466_v4 }
 0x71c   :  { %v5843_v37 = vadd.f32 %v5842_v11, %v9468_v28 }
 0x71e   :  { %v5844_v16 = vadd.f32 %v5843_v37, %v9470_v31 }
 0x720   :  { %v5845_v61 = vadd.f32 %v5844_v16, %v9472_v12 }
 0x722   :  { %v5846_v30 = vadd.f32 %v5845_v61, %v9474_v41 }
 0x724   :  { %v5847_v36 = vrot.slane %v5846_v30, 4 }
 0x726   :  { %v5848_v47 = vadd.f32 %v5847_v36, %v5846_v30 }
 0x728   :  { %v5849_v58 = vrot.slane %v5848_v47, 2 }
 0x72a   :  { %v5850_v59 = vadd.f32 %v5849_v58, %v5848_v47 }
 0x776   :  { %v5684_v27 = vpop.f32.mrf.mxu0  ;;  %v5725_v40 = vpop.f32.mrf.mxu1 }
 0x777   :  { %v5685_v34 = vadd.f32 %v5684_v27, %v5633_v33  ;;  %v5863_v33 = vadd.f32 %v5862_v44, %v5861_v20 }
 0x778   :  { %v5686_v1 = vpop.f32.mrf.mxu0  ;;  %v5727_v0 = vpop.f32.mrf.mxu1 }
 0x779   :  { %v5726_v55 = vadd.f32 %v5725_v40, %v5685_v34  ;;  %v5687_v5 = vadd.f32 %v5686_v1, %v5637_v6  ;;  %v5851_v40 = vrot.slane %v5850_v59, 1  ;;  %v5864_v34 = vrot.slane %v5863_v33, 1 }
 0x77a   :  { %v5688_v49 = vpop.f32.mrf.mxu0  ;;  %v5729_v51 = vpop.f32.mrf.mxu1 }
 0x77b   :  { %v5728_v26 = vadd.f32 %v5727_v0, %v5687_v5  ;;  %v5870_v63 = vadd.f32 %v5826_v18, %v5726_v55  ;;  %v5852_v5 = vadd.f32 %v5851_v40, %v5850_v59 }
 0x77c   :  { %v5689_v25 = vpop.f32.mrf.mxu0  ;;  %v5730_v10 = vpop.f32.mrf.mxu1 }
 0x77d   :  { %v5871_v38 = vadd.f32 %v5839_v35, %v5728_v26  ;;  %v5874_v21 = vmul.f32 0.015384615, %v5870_v63  ;;  %v5865_v26 = vadd.f32 %v5864_v34, %v5863_v33 }
 0x77f   :  { %v5875_v32 = vmul.f32 0.015384615, %v5871_v38 }
 0x781   :  { %6007 = vmatprep.mubr.f32.mxu0 %v5875_v32 }
 0x782   :  { %6008 = vmatmul.mubr.f32.vlgmr.msra.gmra.mxu0 %v5874_v21 }
 0x7b6   :  { %v5766_v6 = vpop.f32.mrf.mxu0  ;;  %v5807_v27 = vpop.f32.mrf.mxu1 }
 0x7b7   :  { %v5767_v45 = vadd.f32 %v5766_v6, %v5641_v19 }
 0x7b8   :  { %v5768_v9 = vpop.f32.mrf.mxu0  ;;  %v5809_v1 = vpop.f32.mrf.mxu1 }
 0x7b9   :  { %v5808_v0 = vadd.f32 %v5807_v27, %v5767_v45  ;;  %v5769_v55 = vadd.f32 %v5768_v9, %v5645_v46 }
 0x7ba   :  { %v5770_v18 = vpop.f32.mrf.mxu0  ;;  %v5811_v49 = vpop.f32.mrf.mxu1 }
 0x7bb   :  { %v5810_v51 = vadd.f32 %v5809_v1, %v5769_v55  ;;  %v5872_v35 = vadd.f32 %v5852_v5, %v5808_v0 }
 0x7bc   :  { %v5771_v63 = vpop.f32.mrf.mxu0  ;;  %v5812_v25 = vpop.f32.mrf.mxu1 }
 0x7bd   :  { %v5873_v10 = vadd.f32 %v5865_v26, %v5810_v51  ;;  %v5876_v17 = vmul.f32 0.015384615, %v5872_v35 }
 0x7bf   :  { %v5877_v38 = vmul.f32 0.015384615, %v5873_v10 }
 0x7c1   :  { %6077 = vmatprep.mubr.f32.mxu1 %v5877_v38 }
 0x7c2   :  { %6078 = vmatmul.mubr.f32.vlgmr.msra.gmra.mxu1 %v5876_v17 }
 0x842   :  { %v6846_v32 = vpop.f32.mrf.mxu0 }
 0x844   :  { %v6847_v21 = vpop.f32.mrf.mxu0 }
 0x845   :  { %v6848_v60 = vadd.f32 %v6847_v21, %v6846_v32 }
 0x847   :  { %v6010_v13 = vadd.f32 %v6848_v60, %v5942_v52 }
 0x882   :  { %v6881_v42 = vpop.f32.mrf.mxu1 }
 0x884   :  { %v6882_v62 = vpop.f32.mrf.mxu1 }
 0x885   :  { %v6883_v48 = vadd.f32 %v6882_v62, %v6881_v42 }
 0x887   :  { %v6080_v56 = vadd.f32 %v6883_v48, %v6010_v13 }
 0x889   :  { %6084 = vst.msk [vmem:[#allocation10] sm:$0x1] %vm6083_vm2, %v6080_v56 }
 0x88a   :  { %7515 = shalt.err (!%p7512_p10)
}
 0x88b   :  { %6094 = dma.vmem_to_hbm [thread:$0]  %s6092_s5, 16, %s9335_s12, [#allocation4]  }
 0x88c   :  { %7530 = dma.done.wait [#allocation4], 16  }
 0x88d   :  { %7531 = vsyncadd [#allocation4], 4294967280 }
 0x88e   :  { %6098 = vsyncpa [#allocation3], 1 }
 0x88f   :  { %6099 = vsyncpa [#allocation6], 1 }
 0x890   :  { %6100 = vsyncpa [#allocation9], 1 }
 0x891   :  { %6101 = vsyncpa [#allocation4], 1 }

</bundles_post_ra>
